<compile_context>
chip_gen: v5e
topology: v5e:2x2
jax: 0.10.0
libtpu: 0.0.40
codegen_flags: <defaults>
</compile_context>

<pallas_src>
import functools

import jax
import jax.numpy as jnp
from jax.experimental import pallas as pl
from jax.experimental.pallas import tpu as pltpu


# ----------------------------------------------------------------------------
# Generation-aware VMEM limit and window-block sizing
# ----------------------------------------------------------------------------
def _vmem_limit_bytes():
    cap = 128 * 1024 * 1024
    try:
        cap = int(getattr(pltpu.get_tpu_info(), "vmem_capacity_bytes", cap))
    except Exception:
        pass
    # leave headroom for Mosaic internal scratch / semaphores / double buffers
    return int(min(cap * 3 // 4, 112 * 1024 * 1024))


def _mosaic_params(num_parallel_dims, vmem_limit):
    return pltpu.CompilerParams(
        dimension_semantics=("parallel",) * num_parallel_dims,
        vmem_limit_bytes=vmem_limit,
    )


def _pick_window_block(nwb, n_win, batch, seq, c, out_bytes, vmem_limit):
    """Windows per grid step: as many as fit a conservative VMEM budget, while
    keeping >= 2 grid steps when possible (megacore) and dividing the window
    count so the per-window mask indexing stays a contiguous slice / whole
    mask tile."""
    per_win = seq * (
        2 * 2 * c              # x block (bf16, double buffered)
        + 2 * out_bytes * c    # output block (double buffered)
        + 4 * 3 * c            # f32 qkv accumulator
        + 2 * c                # bf16 attention scratch
        + 4 * c                # f32 proj accumulator
        + 3 * 4 * seq          # live f32 score / prob tiles
    ) + 4096
    budget = max(vmem_limit // 2, per_win)
    max_wb = max(1, budget // per_win)
    target = min(max_wb, max(1, nwb // 2))      # keep >= 2 grid steps if we can
    if target >= n_win:
        kb = max(1, min(batch, target // n_win))
        while batch % kb:
            kb -= 1
        return n_win * kb
    wb = max(1, target)
    while n_win % wb:
        wb -= 1
    return wb


# ----------------------------------------------------------------------------
# Fused kernel: QKV projection + windowed masked attention + output projection
# ----------------------------------------------------------------------------
def _fused_window_attn_kernel(x_ref, wqkv_ref, bqkv_ref, wp_ref, bp_ref,
                              m_ref, o_ref, attn_ref, *,
                              scale, num_heads, head_dim, seq, wb, n_mask,
                              compute_dtype):
    c = num_heads * head_dim
    rows = wb * seq

    # ---- fused QKV projection: one (R, C) x (C, 3C) MXU matmul, f32 acc ----
    x = x_ref[...].reshape(rows, c)                    # leading-dim merge only
    qkv = jnp.dot(x, wqkv_ref[...],
                  preferred_element_type=jnp.float32) + bqkv_ref[...]
    q_all = (qkv[:, :c] * scale).astype(compute_dtype)   # scale folded into q
    k_all = qkv[:, c:2 * c].astype(compute_dtype)
    v_all = qkv[:, 2 * c:].astype(compute_dtype)

    # ---- per-window additive mask for this block (mask is VMEM resident) ----
    if wb % n_mask == 0:
        reps = wb // n_mask
        mask_blk = m_ref[...]
        if reps > 1:
            mask_blk = jnp.broadcast_to(mask_blk[None],
                                        (reps, n_mask, seq, seq))
            mask_blk = mask_blk.reshape(wb, seq, seq)
    else:  # n_mask % wb == 0 (guaranteed by the wrapper)
        start = (pl.program_id(0) * wb) % n_mask
        mask_blk = m_ref[pl.ds(start, wb)]

    # ---- window-batched attention, per-head lane slices of the accumulator --
    for h in range(num_heads):
        lo, hi = h * head_dim, (h + 1) * head_dim
        q = q_all[:, lo:hi].reshape(wb, seq, head_dim)
        k = k_all[:, lo:hi].reshape(wb, seq, head_dim)
        v = v_all[:, lo:hi].reshape(wb, seq, head_dim)
        s = jnp.einsum("bqd,bkd->bqk", q, k,
                       preferred_element_type=jnp.float32) + mask_blk
        s = s - jnp.max(s, axis=-1, keepdims=True)
        p = jnp.exp(s)
        p = p * pl.reciprocal(jnp.sum(p, axis=-1, keepdims=True), approx=True)
        pv = jnp.einsum("bqk,bkd->bqd", p.astype(compute_dtype), v,
                        preferred_element_type=jnp.float32)
        attn_ref[:, lo:hi] = pv.reshape(rows, head_dim).astype(compute_dtype)

    # ---- fused output projection ----
    out = jnp.dot(attn_ref[...], wp_ref[...],
                  preferred_element_type=jnp.float32) + bp_ref[...]
    o_ref[...] = out.reshape(wb, seq, c).astype(o_ref.dtype)


def _fused_window_attention(x_win, wqkv, bqkv, wproj, bproj, mask, *,
                            scale, num_heads, head_dim, n_win, batch,
                            out_dtype, compute_dtype):
    nwb, seq, c = x_win.shape
    n_mask = mask.shape[0]
    vmem_limit = _vmem_limit_bytes()
    out_bytes = jnp.dtype(out_dtype).itemsize

    wb = _pick_window_block(nwb, n_win, batch, seq, c, out_bytes, vmem_limit)
    if not (wb % n_mask == 0 or n_mask % wb == 0):
        wb = n_mask if nwb % n_mask == 0 else 1     # mask-compatible fallback
    assert nwb % wb == 0

    kernel = functools.partial(
        _fused_window_attn_kernel, scale=scale, num_heads=num_heads,
        head_dim=head_dim, seq=seq, wb=wb, n_mask=n_mask,
        compute_dtype=compute_dtype)

    win_spec = pl.BlockSpec((wb, seq, c), lambda i: (i, 0, 0))
    return pl.pallas_call(
        kernel,
        out_shape=jax.ShapeDtypeStruct((nwb, seq, c), out_dtype),
        grid_spec=pltpu.PrefetchScalarGridSpec(
            num_scalar_prefetch=0,
            grid=(nwb // wb,),
            in_specs=[
                win_spec,
                pl.BlockSpec((c, 3 * c), lambda i: (0, 0)),           # qkv W
                pl.BlockSpec((1, 3 * c), lambda i: (0, 0)),           # qkv b
                pl.BlockSpec((c, c), lambda i: (0, 0)),                # proj W
                pl.BlockSpec((1, c), lambda i: (0, 0)),                # proj b
                pl.BlockSpec((n_mask, seq, seq), lambda i: (0, 0, 0)),  # mask
            ],
            out_specs=win_spec,
            scratch_shapes=[pltpu.VMEM((wb * seq, c), compute_dtype)],
        ),
        compiler_params=_mosaic_params(1, vmem_limit),
    )(x_win, wqkv, bqkv, wproj, bproj, mask)


# ----------------------------------------------------------------------------
# window_partition (pure relayout glue, identical to the PyTorch helper)
# ----------------------------------------------------------------------------
def window_partition(x, window_size):
    """(B, T, H, W, C) -> (B*num_windows, T*wh*ww, C)."""
    b, t, h, w, c = x.shape
    wh, ww = window_size
    x = x.reshape(b, t, h // wh, wh, w // ww, ww, c)
    x = jnp.transpose(x, (0, 2, 4, 1, 3, 5, 6))
    return x.reshape(-1, t * wh * ww, c)


# ----------------------------------------------------------------------------
# WindowAttention module equivalent
# ----------------------------------------------------------------------------
class WindowAttention:
    def __init__(self, dim, expand_size, window_size, focal_window, focal_level,
                 num_heads, qkv_bias, pool_method, key,
                 compute_dtype=jnp.bfloat16, out_dtype=jnp.float32):
        if any(i > 0 for i in expand_size) and focal_level > 0:
            # TODO(synk): rolled (expanded-neighborhood) K/V gather path
            # (valid_ind_rolled) not ported to Pallas.
            raise NotImplementedError("expand_size > 0 path not implemented")
        if pool_method != "none" and focal_level > 1:
            # TODO(synk): pooled focal-level K/V path (nn.Unfold towers +
            # unfold masks) not ported to Pallas.
            raise NotImplementedError("pooled focal levels not implemented")

        self.dim = dim
        self.expand_size = expand_size
        self.window_size = window_size
        self.pool_method = pool_method
        self.num_heads = num_heads
        self.head_dim = dim // num_heads
        self.scale = self.head_dim ** (-0.5)
        self.focal_level = focal_level
        self.focal_window = focal_window
        self.compute_dtype = compute_dtype
        self.out_dtype = out_dtype

        kqw, kqb, kpw, kpb = jax.random.split(key, 4)
        bound = 1.0 / (dim ** 0.5)
        # weights stored transposed: (in, out)
        self.qkv_w = jax.random.uniform(kqw, (dim, 3 * dim), jnp.float32,
                                        -bound, bound)
        if qkv_bias:
            self.qkv_b = jax.random.uniform(kqb, (3 * dim,), jnp.float32,
                                            -bound, bound)
        else:
            self.qkv_b = jnp.zeros((3 * dim,), jnp.float32)
        self.proj_w = jax.random.uniform(kpw, (dim, dim), jnp.float32,
                                         -bound, bound)
        self.proj_b = jax.random.uniform(kpb, (dim,), jnp.float32,
                                         -bound, bound)

    def __call__(self, x_all, mask_all):
        x = x_all[0]                                   # (B, T, H, W, C)
        b, t, h, w, c = x.shape
        wh, ww = self.window_size
        seq = t * wh * ww
        n_win = (h // wh) * (w // ww)
        cd = self.compute_dtype

        # Single relayout of the activation into window-partitioned layout;
        # q/k/v and attention scores stay on-chip inside the fused kernel.
        x_win = window_partition(x.astype(cd), self.window_size)

        # ---- per-window additive mask (mask_all[0], or zeros if empty) ----
        mask0 = mask_all[0]
        if mask0 is None or mask0.size == 0:
            mask = jnp.zeros((1, seq, seq), jnp.float32)
        else:
            mask = mask0.astype(jnp.float32)
            assert n_win % mask.shape[0] == 0

        return _fused_window_attention(
            x_win,
            self.qkv_w.astype(cd), self.qkv_b.reshape(1, -1),
            self.proj_w.astype(cd), self.proj_b.reshape(1, -1),
            mask,
            scale=self.scale, num_heads=self.num_heads,
            head_dim=self.head_dim, n_win=n_win, batch=b,
            out_dtype=self.out_dtype, compute_dtype=cd,
        )                                              # (nW*B, T*wh*ww, C)


# ----------------------------------------------------------------------------
# Plain-JAX reference (mirrors the same bf16-input / f32-accum math).
# ----------------------------------------------------------------------------
def _reference_forward(mod, x, mask0):
    b, t, h, w, c = x.shape
    wh, ww = mod.window_size
    nh, d = mod.num_heads, mod.head_dim
    cd = mod.compute_dtype
    seq = t * wh * ww
    n_win = (h // wh) * (w // ww)

    x_win = window_partition(x.astype(cd), mod.window_size)   # (nwb, seq, C)
    nwb = x_win.shape[0]
    x2d = x_win.reshape(-1, c)
    qkv = jnp.dot(x2d, mod.qkv_w.astype(cd),
                  preferred_element_type=jnp.float32) + mod.qkv_b
    q = (qkv[:, :c] * mod.scale).astype(cd)
    k = qkv[:, c:2 * c].astype(cd)
    v = qkv[:, 2 * c:].astype(cd)

    if mask0 is None or mask0.size == 0:
        mask = jnp.zeros((1, seq, seq), jnp.float32)
    else:
        mask = mask0.astype(jnp.float32)
    mask_full = mask[jnp.arange(nwb) % mask.shape[0]]          # (nwb, seq, seq)

    outs = []
    for hd in range(nh):
        sl = slice(hd * d, (hd + 1) * d)
        qh = q[:, sl].reshape(nwb, seq, d)
        kh = k[:, sl].reshape(nwb, seq, d)
        vh = v[:, sl].reshape(nwb, seq, d)
        s = jnp.einsum("bqd,bkd->bqk", qh, kh,
                       preferred_element_type=jnp.float32) + mask_full
        s = s - jnp.max(s, axis=-1, keepdims=True)
        p = jnp.exp(s)
        p = p / jnp.sum(p, axis=-1, keepdims=True)
        outs.append(jnp.einsum("bqk,bkd->bqd", p.astype(cd), vh,
                               preferred_element_type=jnp.float32).astype(cd))
    att = jnp.concatenate(outs, axis=-1).reshape(-1, c)
    out = jnp.dot(att, mod.proj_w.astype(cd),
                  preferred_element_type=jnp.float32) + mod.proj_b
    return out.reshape(nwb, seq, c).astype(mod.out_dtype)


if __name__ == "__main__":
    key = jax.random.PRNGKey(0)
    kx, kp, km = jax.random.split(key, 3)

    # Small config: B=2, T=2, spatial 8x8, C=32, 4 heads, 4x4 windows.
    B, T, H, W, C = 2, 2, 8, 8, 32
    num_heads = 4
    window_size = (4, 4)

    mod = WindowAttention(dim=C, expand_size=(0, 0), window_size=window_size,
                          focal_window=(3, 3), focal_level=1,
                          num_heads=num_heads, qkv_bias=True,
                          pool_method="none", key=kp)

    x = jax.random.normal(kx, (B, T, H, W, C), jnp.float32)
    seq = T * window_size[0] * window_size[1]
    n_win = (H // window_size[0]) * (W // window_size[1])
    # (0 / -100) additive attention mask per window, as produced upstream.
    mask0 = jnp.where(jax.random.uniform(km, (n_win, seq, seq)) > 0.2,
                      0.0, -100.0).astype(jnp.float32)

    out = mod([x], [mask0])
    out = jax.block_until_ready(out)

    ref = _reference_forward(mod, x, mask0)
    assert out.shape == (B * n_win, seq, C), out.shape
    err = float(jnp.max(jnp.abs(out.astype(jnp.float32)
                                - ref.astype(jnp.float32))))
    assert err < 5e-2, f"max abs err {err}"
    print("KERNEL_OK")
</pallas_src>

<mosaic_0001>
module attributes {stable_mosaic.version = 11 : i64} {
  func.func @_fused_window_attn_kernel(%arg0: i32, %arg1: memref<4x32x32xbf16, #tpu.memory_space<vmem>>, %arg2: memref<32x96xbf16, #tpu.memory_space<vmem>>, %arg3: memref<1x96xf32, #tpu.memory_space<vmem>>, %arg4: memref<32x32xbf16, #tpu.memory_space<vmem>>, %arg5: memref<1x32xf32, #tpu.memory_space<vmem>>, %arg6: memref<4x32x32xf32, #tpu.memory_space<vmem>>, %arg7: memref<4x32x32xf32, #tpu.memory_space<vmem>>, %arg8: memref<128x32xbf16, #tpu.memory_space<vmem>>) attributes {dimension_semantics = [#tpu.dimension_semantics<parallel>], iteration_bounds = array<i64: 2>, scalar_prefetch = 0 : i64, scratch_operands = 1 : i64, tpu.core_type = #tpu.core_type<tc>, window_params = [{transform_indices = @transform_0, window_bounds = array<i64: 4, 32, 32>}, {pipeline_mode = #tpu.pipeline_mode<synchronous>, transform_indices = @transform_1, window_bounds = array<i64: 32, 96>}, {pipeline_mode = #tpu.pipeline_mode<synchronous>, transform_indices = @transform_2, window_bounds = array<i64: 1, 96>}, {pipeline_mode = #tpu.pipeline_mode<synchronous>, transform_indices = @transform_3, window_bounds = array<i64: 32, 32>}, {pipeline_mode = #tpu.pipeline_mode<synchronous>, transform_indices = @transform_4, window_bounds = array<i64: 1, 32>}, {pipeline_mode = #tpu.pipeline_mode<synchronous>, transform_indices = @transform_5, window_bounds = array<i64: 4, 32, 32>}, {transform_indices = @transform_6, window_bounds = array<i64: 4, 32, 32>}]} {
    %c0 = arith.constant 0 : index
    %c0_0 = arith.constant 0 : index
    %c0_1 = arith.constant 0 : index
    %0 = vector.load %arg1[%c0, %c0_0, %c0_1] : memref<4x32x32xbf16, #tpu.memory_space<vmem>>, vector<4x32x32xbf16>
    %1 = vector.shape_cast %0 : vector<4x32x32xbf16> to vector<128x32xbf16>
    %c0_2 = arith.constant 0 : index
    %c0_3 = arith.constant 0 : index
    %2 = vector.load %arg2[%c0_2, %c0_3] : memref<32x96xbf16, #tpu.memory_space<vmem>>, vector<32x96xbf16>
    %cst = arith.constant dense<0.000000e+00> : vector<128x96xf32>
    %3 = tpu.matmul %1, %2, %cst {dimension_numbers = #tpu.dot_dimension_numbers<[1], [0], [0], [1], [0, 0, 1, 1], [], []>} : vector<128x32xbf16>, vector<32x96xbf16>, vector<128x96xf32> -> vector<128x96xf32>
    %c0_4 = arith.constant 0 : index
    %c0_5 = arith.constant 0 : index
    %4 = vector.load %arg3[%c0_4, %c0_5] : memref<1x96xf32, #tpu.memory_space<vmem>>, vector<1x96xf32>
    %5 = vector.broadcast %4 : vector<1x96xf32> to vector<128x96xf32>
    %6 = arith.addf %3, %5 : vector<128x96xf32>
    %7 = vector.extract_strided_slice %6 {offsets = [0, 0], sizes = [128, 32], strides = [1, 1]} : vector<128x96xf32> to vector<128x32xf32>
    %cst_6 = arith.constant 0.353553385 : f32
    %8 = vector.broadcast %cst_6 : f32 to vector<128x32xf32>
    %9 = arith.mulf %7, %8 : vector<128x32xf32>
    %10 = arith.truncf %9 : vector<128x32xf32> to vector<128x32xbf16>
    %11 = vector.extract_strided_slice %6 {offsets = [0, 32], sizes = [128, 32], strides = [1, 1]} : vector<128x96xf32> to vector<128x32xf32>
    %12 = arith.truncf %11 : vector<128x32xf32> to vector<128x32xbf16>
    %13 = vector.extract_strided_slice %6 {offsets = [0, 64], sizes = [128, 32], strides = [1, 1]} : vector<128x96xf32> to vector<128x32xf32>
    %14 = arith.truncf %13 : vector<128x32xf32> to vector<128x32xbf16>
    %c0_7 = arith.constant 0 : index
    %c0_8 = arith.constant 0 : index
    %c0_9 = arith.constant 0 : index
    %15 = vector.load %arg6[%c0_7, %c0_8, %c0_9] : memref<4x32x32xf32, #tpu.memory_space<vmem>>, vector<4x32x32xf32>
    %16 = vector.extract_strided_slice %10 {offsets = [0, 0], sizes = [128, 8], strides = [1, 1]} : vector<128x32xbf16> to vector<128x8xbf16>
    %17 = vector.shape_cast %16 : vector<128x8xbf16> to vector<4x32x8xbf16>
    %18 = vector.extract_strided_slice %12 {offsets = [0, 0], sizes = [128, 8], strides = [1, 1]} : vector<128x32xbf16> to vector<128x8xbf16>
    %19 = vector.shape_cast %18 : vector<128x8xbf16> to vector<4x32x8xbf16>
    %20 = vector.extract_strided_slice %14 {offsets = [0, 0], sizes = [128, 8], strides = [1, 1]} : vector<128x32xbf16> to vector<128x8xbf16>
    %21 = vector.shape_cast %20 : vector<128x8xbf16> to vector<4x32x8xbf16>
    "tpu.trace_start"() <{level = 10 : i32, message = "bqd,bkd->bqk"}> : () -> ()
    %cst_10 = arith.constant dense<0.000000e+00> : vector<4x32x32xf32>
    %22 = tpu.matmul %17, %19, %cst_10 {dimension_numbers = #tpu.dot_dimension_numbers<[2], [2], [1], [1], [0, 0, 0, 1, 1, 1], [0], [0]>} : vector<4x32x8xbf16>, vector<4x32x8xbf16>, vector<4x32x32xf32> -> vector<4x32x32xf32>
    "tpu.trace_stop"() : () -> ()
    %23 = arith.addf %22, %15 : vector<4x32x32xf32>
    %cst_11 = arith.constant dense<0xFF800000> : vector<4x32xf32>
    %24 = vector.multi_reduction <maximumf>, %23, %cst_11 [2] : vector<4x32x32xf32> to vector<4x32xf32>
    %25 = vector.shape_cast %24 : vector<4x32xf32> to vector<4x32x1xf32>
    %26 = vector.broadcast %25 : vector<4x32x1xf32> to vector<4x32x32xf32>
    %27 = arith.subf %23, %26 : vector<4x32x32xf32>
    %28 = math.exp %27 : vector<4x32x32xf32>
    %cst_12 = arith.constant dense<0.000000e+00> : vector<4x32xf32>
    %29 = vector.multi_reduction <add>, %28, %cst_12 [2] : vector<4x32x32xf32> to vector<4x32xf32>
    %30 = vector.shape_cast %29 : vector<4x32xf32> to vector<4x32x1xf32>
    %31 = tpu.reciprocal %30 {approx = true} : vector<4x32x1xf32> -> vector<4x32x1xf32>
    %32 = vector.broadcast %31 : vector<4x32x1xf32> to vector<4x32x32xf32>
    %33 = arith.mulf %28, %32 : vector<4x32x32xf32>
    %34 = arith.truncf %33 : vector<4x32x32xf32> to vector<4x32x32xbf16>
    "tpu.trace_start"() <{level = 10 : i32, message = "bqk,bkd->bqd"}> : () -> ()
    %cst_13 = arith.constant dense<0.000000e+00> : vector<4x32x8xf32>
    %35 = tpu.matmul %34, %21, %cst_13 {dimension_numbers = #tpu.dot_dimension_numbers<[2], [1], [1], [2], [0, 0, 0, 1, 1, 2], [0], [0]>} : vector<4x32x32xbf16>, vector<4x32x8xbf16>, vector<4x32x8xf32> -> vector<4x32x8xf32>
    "tpu.trace_stop"() : () -> ()
    %36 = vector.shape_cast %35 : vector<4x32x8xf32> to vector<128x8xf32>
    %37 = arith.truncf %36 : vector<128x8xf32> to vector<128x8xbf16>
    %c0_14 = arith.constant 0 : index
    %c0_15 = arith.constant 0 : index
    %38 = vector.load %arg8[%c0_14, %c0_15] : memref<128x32xbf16, #tpu.memory_space<vmem>>, vector<128x8xbf16>
    tpu.vector_store %arg8[%c0_14, %c0_15], %37 {strides = array<i32>} : memref<128x32xbf16, #tpu.memory_space<vmem>>, vector<128x8xbf16>,
    %39 = vector.extract_strided_slice %10 {offsets = [0, 8], sizes = [128, 8], strides = [1, 1]} : vector<128x32xbf16> to vector<128x8xbf16>
    %40 = vector.shape_cast %39 : vector<128x8xbf16> to vector<4x32x8xbf16>
    %41 = vector.extract_strided_slice %12 {offsets = [0, 8], sizes = [128, 8], strides = [1, 1]} : vector<128x32xbf16> to vector<128x8xbf16>
    %42 = vector.shape_cast %41 : vector<128x8xbf16> to vector<4x32x8xbf16>
    %43 = vector.extract_strided_slice %14 {offsets = [0, 8], sizes = [128, 8], strides = [1, 1]} : vector<128x32xbf16> to vector<128x8xbf16>
    %44 = vector.shape_cast %43 : vector<128x8xbf16> to vector<4x32x8xbf16>
    "tpu.trace_start"() <{level = 10 : i32, message = "bqd,bkd->bqk"}> : () -> ()
    %cst_16 = arith.constant dense<0.000000e+00> : vector<4x32x32xf32>
    %45 = tpu.matmul %40, %42, %cst_16 {dimension_numbers = #tpu.dot_dimension_numbers<[2], [2], [1], [1], [0, 0, 0, 1, 1, 1], [0], [0]>} : vector<4x32x8xbf16>, vector<4x32x8xbf16>, vector<4x32x32xf32> -> vector<4x32x32xf32>
    "tpu.trace_stop"() : () -> ()
    %46 = arith.addf %45, %15 : vector<4x32x32xf32>
    %cst_17 = arith.constant dense<0xFF800000> : vector<4x32xf32>
    %47 = vector.multi_reduction <maximumf>, %46, %cst_17 [2] : vector<4x32x32xf32> to vector<4x32xf32>
    %48 = vector.shape_cast %47 : vector<4x32xf32> to vector<4x32x1xf32>
    %49 = vector.broadcast %48 : vector<4x32x1xf32> to vector<4x32x32xf32>
    %50 = arith.subf %46, %49 : vector<4x32x32xf32>
    %51 = math.exp %50 : vector<4x32x32xf32>
    %cst_18 = arith.constant dense<0.000000e+00> : vector<4x32xf32>
    %52 = vector.multi_reduction <add>, %51, %cst_18 [2] : vector<4x32x32xf32> to vector<4x32xf32>
    %53 = vector.shape_cast %52 : vector<4x32xf32> to vector<4x32x1xf32>
    %54 = tpu.reciprocal %53 {approx = true} : vector<4x32x1xf32> -> vector<4x32x1xf32>
    %55 = vector.broadcast %54 : vector<4x32x1xf32> to vector<4x32x32xf32>
    %56 = arith.mulf %51, %55 : vector<4x32x32xf32>
    %57 = arith.truncf %56 : vector<4x32x32xf32> to vector<4x32x32xbf16>
    "tpu.trace_start"() <{level = 10 : i32, message = "bqk,bkd->bqd"}> : () -> ()
    %cst_19 = arith.constant dense<0.000000e+00> : vector<4x32x8xf32>
    %58 = tpu.matmul %57, %44, %cst_19 {dimension_numbers = #tpu.dot_dimension_numbers<[2], [1], [1], [2], [0, 0, 0, 1, 1, 2], [0], [0]>} : vector<4x32x32xbf16>, vector<4x32x8xbf16>, vector<4x32x8xf32> -> vector<4x32x8xf32>
    "tpu.trace_stop"() : () -> ()
    %59 = vector.shape_cast %58 : vector<4x32x8xf32> to vector<128x8xf32>
    %60 = arith.truncf %59 : vector<128x8xf32> to vector<128x8xbf16>
    %c0_20 = arith.constant 0 : index
    %c8 = arith.constant 8 : index
    %61 = vector.load %arg8[%c0_20, %c8] : memref<128x32xbf16, #tpu.memory_space<vmem>>, vector<128x8xbf16>
    tpu.vector_store %arg8[%c0_20, %c8], %60 {strides = array<i32>} : memref<128x32xbf16, #tpu.memory_space<vmem>>, vector<128x8xbf16>,
    %62 = vector.extract_strided_slice %10 {offsets = [0, 16], sizes = [128, 8], strides = [1, 1]} : vector<128x32xbf16> to vector<128x8xbf16>
    %63 = vector.shape_cast %62 : vector<128x8xbf16> to vector<4x32x8xbf16>
    %64 = vector.extract_strided_slice %12 {offsets = [0, 16], sizes = [128, 8], strides = [1, 1]} : vector<128x32xbf16> to vector<128x8xbf16>
    %65 = vector.shape_cast %64 : vector<128x8xbf16> to vector<4x32x8xbf16>
    %66 = vector.extract_strided_slice %14 {offsets = [0, 16], sizes = [128, 8], strides = [1, 1]} : vector<128x32xbf16> to vector<128x8xbf16>
    %67 = vector.shape_cast %66 : vector<128x8xbf16> to vector<4x32x8xbf16>
    "tpu.trace_start"() <{level = 10 : i32, message = "bqd,bkd->bqk"}> : () -> ()
    %cst_21 = arith.constant dense<0.000000e+00> : vector<4x32x32xf32>
    %68 = tpu.matmul %63, %65, %cst_21 {dimension_numbers = #tpu.dot_dimension_numbers<[2], [2], [1], [1], [0, 0, 0, 1, 1, 1], [0], [0]>} : vector<4x32x8xbf16>, vector<4x32x8xbf16>, vector<4x32x32xf32> -> vector<4x32x32xf32>
    "tpu.trace_stop"() : () -> ()
    %69 = arith.addf %68, %15 : vector<4x32x32xf32>
    %cst_22 = arith.constant dense<0xFF800000> : vector<4x32xf32>
    %70 = vector.multi_reduction <maximumf>, %69, %cst_22 [2] : vector<4x32x32xf32> to vector<4x32xf32>
    %71 = vector.shape_cast %70 : vector<4x32xf32> to vector<4x32x1xf32>
    %72 = vector.broadcast %71 : vector<4x32x1xf32> to vector<4x32x32xf32>
    %73 = arith.subf %69, %72 : vector<4x32x32xf32>
    %74 = math.exp %73 : vector<4x32x32xf32>
    %cst_23 = arith.constant dense<0.000000e+00> : vector<4x32xf32>
    %75 = vector.multi_reduction <add>, %74, %cst_23 [2] : vector<4x32x32xf32> to vector<4x32xf32>
    %76 = vector.shape_cast %75 : vector<4x32xf32> to vector<4x32x1xf32>
    %77 = tpu.reciprocal %76 {approx = true} : vector<4x32x1xf32> -> vector<4x32x1xf32>
    %78 = vector.broadcast %77 : vector<4x32x1xf32> to vector<4x32x32xf32>
    %79 = arith.mulf %74, %78 : vector<4x32x32xf32>
    %80 = arith.truncf %79 : vector<4x32x32xf32> to vector<4x32x32xbf16>
    "tpu.trace_start"() <{level = 10 : i32, message = "bqk,bkd->bqd"}> : () -> ()
    %cst_24 = arith.constant dense<0.000000e+00> : vector<4x32x8xf32>
    %81 = tpu.matmul %80, %67, %cst_24 {dimension_numbers = #tpu.dot_dimension_numbers<[2], [1], [1], [2], [0, 0, 0, 1, 1, 2], [0], [0]>} : vector<4x32x32xbf16>, vector<4x32x8xbf16>, vector<4x32x8xf32> -> vector<4x32x8xf32>
    "tpu.trace_stop"() : () -> ()
    %82 = vector.shape_cast %81 : vector<4x32x8xf32> to vector<128x8xf32>
    %83 = arith.truncf %82 : vector<128x8xf32> to vector<128x8xbf16>
    %c0_25 = arith.constant 0 : index
    %c16 = arith.constant 16 : index
    %84 = vector.load %arg8[%c0_25, %c16] : memref<128x32xbf16, #tpu.memory_space<vmem>>, vector<128x8xbf16>
    tpu.vector_store %arg8[%c0_25, %c16], %83 {strides = array<i32>} : memref<128x32xbf16, #tpu.memory_space<vmem>>, vector<128x8xbf16>,
    %85 = vector.extract_strided_slice %10 {offsets = [0, 24], sizes = [128, 8], strides = [1, 1]} : vector<128x32xbf16> to vector<128x8xbf16>
    %86 = vector.shape_cast %85 : vector<128x8xbf16> to vector<4x32x8xbf16>
    %87 = vector.extract_strided_slice %12 {offsets = [0, 24], sizes = [128, 8], strides = [1, 1]} : vector<128x32xbf16> to vector<128x8xbf16>
    %88 = vector.shape_cast %87 : vector<128x8xbf16> to vector<4x32x8xbf16>
    %89 = vector.extract_strided_slice %14 {offsets = [0, 24], sizes = [128, 8], strides = [1, 1]} : vector<128x32xbf16> to vector<128x8xbf16>
    %90 = vector.shape_cast %89 : vector<128x8xbf16> to vector<4x32x8xbf16>
    "tpu.trace_start"() <{level = 10 : i32, message = "bqd,bkd->bqk"}> : () -> ()
    %cst_26 = arith.constant dense<0.000000e+00> : vector<4x32x32xf32>
    %91 = tpu.matmul %86, %88, %cst_26 {dimension_numbers = #tpu.dot_dimension_numbers<[2], [2], [1], [1], [0, 0, 0, 1, 1, 1], [0], [0]>} : vector<4x32x8xbf16>, vector<4x32x8xbf16>, vector<4x32x32xf32> -> vector<4x32x32xf32>
    "tpu.trace_stop"() : () -> ()
    %92 = arith.addf %91, %15 : vector<4x32x32xf32>
    %cst_27 = arith.constant dense<0xFF800000> : vector<4x32xf32>
    %93 = vector.multi_reduction <maximumf>, %92, %cst_27 [2] : vector<4x32x32xf32> to vector<4x32xf32>
    %94 = vector.shape_cast %93 : vector<4x32xf32> to vector<4x32x1xf32>
    %95 = vector.broadcast %94 : vector<4x32x1xf32> to vector<4x32x32xf32>
    %96 = arith.subf %92, %95 : vector<4x32x32xf32>
    %97 = math.exp %96 : vector<4x32x32xf32>
    %cst_28 = arith.constant dense<0.000000e+00> : vector<4x32xf32>
    %98 = vector.multi_reduction <add>, %97, %cst_28 [2] : vector<4x32x32xf32> to vector<4x32xf32>
    %99 = vector.shape_cast %98 : vector<4x32xf32> to vector<4x32x1xf32>
    %100 = tpu.reciprocal %99 {approx = true} : vector<4x32x1xf32> -> vector<4x32x1xf32>
    %101 = vector.broadcast %100 : vector<4x32x1xf32> to vector<4x32x32xf32>
    %102 = arith.mulf %97, %101 : vector<4x32x32xf32>
    %103 = arith.truncf %102 : vector<4x32x32xf32> to vector<4x32x32xbf16>
    "tpu.trace_start"() <{level = 10 : i32, message = "bqk,bkd->bqd"}> : () -> ()
    %cst_29 = arith.constant dense<0.000000e+00> : vector<4x32x8xf32>
    %104 = tpu.matmul %103, %90, %cst_29 {dimension_numbers = #tpu.dot_dimension_numbers<[2], [1], [1], [2], [0, 0, 0, 1, 1, 2], [0], [0]>} : vector<4x32x32xbf16>, vector<4x32x8xbf16>, vector<4x32x8xf32> -> vector<4x32x8xf32>
    "tpu.trace_stop"() : () -> ()
    %105 = vector.shape_cast %104 : vector<4x32x8xf32> to vector<128x8xf32>
    %106 = arith.truncf %105 : vector<128x8xf32> to vector<128x8xbf16>
    %c0_30 = arith.constant 0 : index
    %c24 = arith.constant 24 : index
    %107 = vector.load %arg8[%c0_30, %c24] : memref<128x32xbf16, #tpu.memory_space<vmem>>, vector<128x8xbf16>
    tpu.vector_store %arg8[%c0_30, %c24], %106 {strides = array<i32>} : memref<128x32xbf16, #tpu.memory_space<vmem>>, vector<128x8xbf16>,
    %c0_31 = arith.constant 0 : index
    %c0_32 = arith.constant 0 : index
    %108 = vector.load %arg8[%c0_31, %c0_32] : memref<128x32xbf16, #tpu.memory_space<vmem>>, vector<128x32xbf16>
    %c0_33 = arith.constant 0 : index
    %c0_34 = arith.constant 0 : index
    %109 = vector.load %arg4[%c0_33, %c0_34] : memref<32x32xbf16, #tpu.memory_space<vmem>>, vector<32x32xbf16>
    %cst_35 = arith.constant dense<0.000000e+00> : vector<128x32xf32>
    %110 = tpu.matmul %108, %109, %cst_35 {dimension_numbers = #tpu.dot_dimension_numbers<[1], [0], [0], [1], [0, 0, 1, 1], [], []>} : vector<128x32xbf16>, vector<32x32xbf16>, vector<128x32xf32> -> vector<128x32xf32>
    %c0_36 = arith.constant 0 : index
    %c0_37 = arith.constant 0 : index
    %111 = vector.load %arg5[%c0_36, %c0_37] : memref<1x32xf32, #tpu.memory_space<vmem>>, vector<1x32xf32>
    %112 = vector.broadcast %111 : vector<1x32xf32> to vector<128x32xf32>
    %113 = arith.addf %110, %112 : vector<128x32xf32>
    %114 = vector.shape_cast %113 : vector<128x32xf32> to vector<4x32x32xf32>
    %c0_38 = arith.constant 0 : index
    %c0_39 = arith.constant 0 : index
    %c0_40 = arith.constant 0 : index
    %115 = vector.load %arg7[%c0_38, %c0_39, %c0_40] : memref<4x32x32xf32, #tpu.memory_space<vmem>>, vector<4x32x32xf32>
    tpu.vector_store %arg7[%c0_38, %c0_39, %c0_40], %114 {strides = array<i32>} : memref<4x32x32xf32, #tpu.memory_space<vmem>>, vector<4x32x32xf32>,
    return
  }
  func.func @transform_0(%arg0: i32) -> (i32, i32, i32) {
    %c0_i32 = arith.constant 0 : i32
    %c0_i32_0 = arith.constant 0 : i32
    %c0_i32_1 = arith.constant 0 : i32
    return %arg0, %c0_i32, %c0_i32_0 : i32, i32, i32
  }
  func.func @transform_1(%arg0: i32) -> (i32, i32) {
    %c0_i32 = arith.constant 0 : i32
    %c0_i32_0 = arith.constant 0 : i32
    %c0_i32_1 = arith.constant 0 : i32
    return %c0_i32, %c0_i32_0 : i32, i32
  }
  func.func @transform_2(%arg0: i32) -> (i32, i32) {
    %c0_i32 = arith.constant 0 : i32
    %c0_i32_0 = arith.constant 0 : i32
    %c0_i32_1 = arith.constant 0 : i32
    return %c0_i32, %c0_i32_0 : i32, i32
  }
  func.func @transform_3(%arg0: i32) -> (i32, i32) {
    %c0_i32 = arith.constant 0 : i32
    %c0_i32_0 = arith.constant 0 : i32
    %c0_i32_1 = arith.constant 0 : i32
    return %c0_i32, %c0_i32_0 : i32, i32
  }
  func.func @transform_4(%arg0: i32) -> (i32, i32) {
    %c0_i32 = arith.constant 0 : i32
    %c0_i32_0 = arith.constant 0 : i32
    %c0_i32_1 = arith.constant 0 : i32
    return %c0_i32, %c0_i32_0 : i32, i32
  }
  func.func @transform_5(%arg0: i32) -> (i32, i32, i32) {
    %c0_i32 = arith.constant 0 : i32
    %c0_i32_0 = arith.constant 0 : i32
    %c0_i32_1 = arith.constant 0 : i32
    %c0_i32_2 = arith.constant 0 : i32
    return %c0_i32, %c0_i32_0, %c0_i32_1 : i32, i32, i32
  }
  func.func @transform_6(%arg0: i32) -> (i32, i32, i32) {
    %c0_i32 = arith.constant 0 : i32
    %c0_i32_0 = arith.constant 0 : i32
    %c0_i32_1 = arith.constant 0 : i32
    return %arg0, %c0_i32, %c0_i32_0 : i32, i32, i32
  }
}

</mosaic_0001>

<bundles_post_ra>
// kernel: tpu_custom_call.1
= control target key start
LH: loop header
LB: loop body
LE: loop exit
PB: predicated region body
PF: predicated region fallthrough
CT: control target
= control target key end

     0   :  { %11 = vsyncpa [#allocation4], 0  ;;  %s5749_s0 = inlined_call_operand.hbm [shape: bf16[8,32,32], index: 0, kind: input, shape index: {}]   ;;  %s5750_s1 = inlined_call_operand.hbm [shape: bf16[32,96], index: 1, kind: input, shape index: {}]   ;;  %s5751_s2 = inlined_call_operand.vmem [shape: f32[1,96], index: 2, kind: input, shape index: {}]   ;;  %s5752_s3 = inlined_call_operand.hbm [shape: bf16[32,32], index: 3, kind: input, shape index: {}]   ;;  %s5753_s4 = inlined_call_operand.vmem [shape: f32[1,32], index: 4, kind: input, shape index: {}]   ;;  %s5754_s5 = inlined_call_operand.hbm [shape: f32[4,32,32], index: 5, kind: input, shape index: {}]   ;;  %s5755_s6 = inlined_call_operand.hbm [shape: f32[8,32,32], index: 6, kind: output, shape index: {}]  }
   0x1   :  { %13 = vsyncpa [#allocation4 + $0x1], 0 }
   0x2   :  { %14 = vsyncpa [#allocation7], 0 }
   0x3   :  { %15 = vsyncpa [#allocation10], 0 }
   0x4   :  { %16 = vsyncpa [#allocation5], 0 }
   0x5   :  { %18 = vsyncpa [#allocation5 + $0x1], 0  ;;  %s4096_s21 = smov 0   ;;  %s4098_s22 = smov 0  }
   0x6   :  { %s4100_s23 = smov 0   ;;  %s4102_s24 = smov 0  }
   0x7 LB: > { %s4117_s25 = sadd.s32 4294967295, %s4037_s24   ;;  %s3261_s26 = sadd.s32 4294967294, %s4037_s24   ;;  %s4037_s24 = sphi %s4102_s24, %s5828_s24   ;;  %s4033_s23 = sphi %s4100_s23, %s5827_s23   ;;  %s4029_s22 = sphi %s4098_s22, %s5826_s22   ;;  %s4025_s21 = sphi %s4096_s21, %s5825_s21  }
   0x8   : > { %p44_p0 = scmp.ne.s32.totalorder %s4029_s22, %s4025_s21  ;;  %p45_p1 = scmp.eq.s32.totalorder %s4117_s25, 0 }
   0x9   : > { %p173_p2 = scmp.eq.s32.totalorder %s4117_s25, 1  ;;  %p179_p3 = scmp.eq.s32.totalorder %s3261_s26, 1 }
   0xa   : > { %p4126_p4 = por %p45_p1, %p44_p0  ;;  %p3262_p5 = scmp.ge.s32.totalorder %s4037_s24, 1 }
   0xb   : > { %p4131_p6 = por %p179_p3, %p44_p0  ;;  %p186_p7 = scmp.lt.s32.totalorder %s4037_s24, 3 }
   0xc   : > { %s197_s7 = sshll.u32 %s5750_s1, 4  ;;  %s4039_s9 = smov [#allocation6]   ;;  %s198_s7 = int_to_ptr.hbm [resolvable:$true] %s197_s7 }
   0xd   : > { %p4139_p8 = pnand %p3262_p5, %p186_p7  ;;  %s199_s10 = sshll.u32 %s4039_s9, 4  ;;  %s200_s10 = int_to_ptr.vmem [resolvable:$true] %s199_s10 }
   0xe   : > { %s214_s14 = sshll.u32 %s5752_s3, 4  ;;  %s5756_s15 = smov 64   ;;  %s215_s14 = int_to_ptr.hbm [resolvable:$true] %s214_s14 }
   0xf   : > { %p3489_p9 = pneg %p4139_p8  ;;  %s5757_s16 = smov 4  }
  0x10   : > { %s4042_s17 = smov [#allocation8]   ;;  %s231_s26 = sshll.u32 %s5754_s5, 4  ;;  %s232_s26 = int_to_ptr.hbm [resolvable:$true] %s231_s26 }
  0x11   : > { %p4147_p10 = pnand %p3489_p9, %p45_p1  ;;  %s216_s18 = sshll.u32 %s4042_s17, 4  ;;  %s217_s18 = int_to_ptr.vmem [resolvable:$true] %s216_s18 }
  0x12   : > { %s4043_s29 = smov [#allocation9]   ;;  %s4045_s9 = smov 8  }
  0x13   : > { %3492 = dma.hbm_to_vmem [thread:$0]  (!%p4147_p10), %s198_s7, 256, %s200_s10, [#allocation7], %s5756_s15, %s5756_s15, %s5757_s16  }
  0x14   : > { %3495 = dma.hbm_to_vmem [thread:$0]  (!%p4147_p10), %s215_s14, 256, %s217_s18, [#allocation7], %s5756_s15, %s5756_s15, %s5757_s16  }
  0x15   : > { %s233_s30 = sshll.u32 %s4043_s29, 4  ;;  %s4044_s7 = smov 128   ;;  %s234_s30 = int_to_ptr.vmem [resolvable:$true] %s233_s30 }
  0x16   : > { %3498 = dma.hbm_to_vmem [thread:$0]  (!%p4147_p10), %s232_s26, 2048, %s234_s30, [#allocation10], %s4044_s7, %s4044_s7, %s4045_s9  }
  0x17   : > { %s4171_s10 = sadd.s32 1, %s4037_s24   ;;  %s31_s13 = sadd.s32 1, %s4033_s23 }
  0x18   : > { %s28_s12 = ssub.s32 %s4037_s24, %s4171_s10  ;;  %p38_p13 = scmp.ne.s32.totalorder %s4033_s23, %s4029_s22 }
  0x19   : > { %p29_p12 = scmp.eq.s32.totalorder %s28_s12, 0  ;;  %p39_p0 = scmp.eq.s32.totalorder %s4037_s24, 0 }
  0x1a   : > { %p4184_p3 = por %p173_p2, %p38_p13  ;;  %p3510_p5 = scmp.lt.s32.totalorder %s4037_s24, 2 }
  0x1b   : > { %s4180_s17 = scalar_select %p29_p12, %s4033_s23, %s31_s13  }
  0x1c   : > { %s247_s18 = sand.u32 1, %s4033_s23   ;;  %s3444_s19 = sshll.u32 %s4037_s24, 6 }
  0x1d   : > { %p40_p7 = por %p39_p0, %p38_p13  ;;  %s3267_s11 = sshll.u32 %s247_s18, 6 }
  0x1e   : > { %s257_s29 = scalar_lea.hbm %s5749_s0, %s3444_s19  ;;  %s251_s7 = scalar_lea.vmem [#allocation3], %s3267_s11 }
  0x1f   : > { %s258_s30 = sshll.u32 %s257_s29, 4  ;;  %s260_s9 = sshll.u32 %s251_s7, 4  ;;  %s259_s30 = int_to_ptr.hbm [resolvable:$true] %s258_s30  ;;  %s261_s9 = int_to_ptr.vmem [resolvable:$true] %s260_s9 }
  0x20   : > { %p4194_p9 = pnand %p3510_p5, %p40_p7  ;;  %s248_s13 = scalar_lea.sflag [#allocation4], %s247_s18 }
  0x21   : > { %s3933_s15 = sshra.s32 %s259_s30, 4  ;;  %s3940_s11 = scalar_lea.hbm %s5749_s0, 128  ;;  %s3934_s15 = int_to_ptr.hbm [resolvable:$true] %s3933_s15 }
  0x22   : > { %s3935_s16 = scalar_lea.hbm %s3934_s15, 64  ;;  %p3937_p10 = pneg %p4194_p9 }
  0x23   : > { %p3936_p2 = scmp.ne.s32.totalorder %s3934_s15, %s3935_s16  ;;  %p3941_p0 = scmp.lt.s32.totalorder %s3934_s15, %s5749_s0 }
  0x24   : > { %p3942_p5 = scmp.lt.s32.totalorder %s3940_s11, %s3935_s16 }
  0x25   : > { %p3938_p12 = pnand %p3937_p10, %p3936_p2 }
  0x26   : > { %p3943_p7 = por %p3942_p5, %p3941_p0 }
  0x27   : > { %p3939_p13 = pneg %p3938_p12 }
  0x29   : > { %p3944_p11 = pnand %p3943_p7, %p3939_p13 }
  0x2b   : > { %3947 = shalt.err (!%p3944_p11)
}
  0x2c   : > { %s5780_s18 = smov 4   ;;  %s5781_s7 = smov 64  }
  0x2d   : > { %3502 = dma.hbm_to_vmem [thread:$0]  (!%p4194_p9), %s259_s30, 1024, %s261_s9, %s248_s13, %s5781_s7, %s5781_s7, %s5780_s18  }
  0x2e   : > { %272 = sbr.rel (%p4139_p8) target bundleno = 2790 (0xae6), region = 44 }
  0x33   : > { %s4214_s19 = sand.u32 1, %s4029_s22  }
  0x34   : > { %s3272_s15 = sshll.u32 %s4214_s19, 6  ;;  %s275_s16 = scalar_lea.sflag [#allocation4], %s4214_s19 }
  0x35   : > { %s278_s20 = scalar_lea.vmem [#allocation3], %s3272_s15 }
  0x36   : > { %4008 = dma.done.wait (%p4126_p4), %s275_s16, 1024  }
  0x37   : > { %4010 = vsyncadd (%p4126_p4), %s275_s16, 4294966272 }
  0x38   : > { %4012 = dma.done.wait (%p45_p1), [#allocation7], 512  }
  0x39   : > { %4014 = vsyncadd (%p45_p1), [#allocation7], 4294966784 }
  0x3a   : > { %4016 = dma.done.wait (%p45_p1), [#allocation10], 2048  }
  0x3b   : > { %4018 = vsyncadd (%p45_p1), [#allocation10], 4294965248  ;;  %v3454_v0 = vld [vmem:[#allocation6 + $0x8] sm:$0xff]  ;;  %v3453_v1 = vld [vmem:[#allocation6] sm:$0xff]  ;;  %vm402_vm0 = vcmask 261120   ;;  %s4046_s30 = smov 96  }
  0x3c   : > { %433 = vmatpush.bf16.msra.mxu0 %v3454_v0  ;;  %3467 = vmatpush.bf16.msra.mxu1 %v3454_v0  ;;  %v3445_v2 = vld [vmem:[%s278_s20] sm:$0xff]  ;;  %v3447_v3 = vld [vmem:[%s278_s20 + $0x10] sm:$0xff]  ;;  %v3446_v6 = vld [vmem:[%s278_s20 + $0x8] sm:$0xff]  ;;  %s4047_s9 = smov 64   ;;  %s4048_s12 = smov 88   ;;  %vm564_vm1 = vcmask 64512  }
  0x3d   : > { %3468 = vmatpush.bf16.msra.mxu2 %v3454_v0  ;;  %3469 = vmatpush.bf16.msra.mxu3 %v3454_v0  ;;  %v3449_v4 = vld [vmem:[%s278_s20 + $0x20] sm:$0xff]  ;;  %v3451_v5 = vld [vmem:[%s278_s20 + $0x30] sm:$0xff]  ;;  %v3448_v7 = vld [vmem:[%s278_s20 + $0x18] sm:$0xff]  ;;  %s4049_s13 = smov 120   ;;  %s4050_s11 = smov 56   ;;  %vm1133_vm2 = vcmask 60416  }
  0x3e   : > { %v3450_v8 = vld [vmem:[%s278_s20 + $0x28] sm:$0xff]  ;;  %v3452_v9 = vld [vmem:[%s278_s20 + $0x38] sm:$0xff]  ;;  %v4241_v10 = vld [vmem:[%s5751_s2] ss:$0 sm:$0xff]  ;;  %s4051_s26 = smov 80   ;;  %s4052_s29 = smov 112  }
  0x3f   : > { %s4053_s18 = smov 48   ;;  %s4054_s7 = smov 104   ;;  %vm1742_vm3 = vcmask 126016   ;;  %vm2351_vm4 = vcmask 191616   ;;  %vm2960_vm5 = vcmask 257216  }
  0x40   : > { %434 = vmatpush.bf16.msra.mxu0 %v3453_v1  ;;  %3470 = vmatpush.bf16.msra.mxu1 %v3453_v1  ;;  %s4055_s15 = smov 72   ;;  %s4056_s16 = smov 40  }
  0x41   : > { %3471 = vmatpush.bf16.msra.mxu2 %v3453_v1  ;;  %3472 = vmatpush.bf16.msra.mxu3 %v3453_v1  ;;  %s4057_s20 = smov 8   ;;  %s4058_s27 = smov 16  }
  0x42   : > { %s4059_s8 = smov 24  }
  0x43   : > { %3317 = vmatmul.msk.bf16.vlgmr.msra.gmra.mxu0 %vm402_vm0, %v3445_v2  ;;  %3319 = vmatmul.msk.bf16.vlgmr.msra.gmra.mxu1 %vm402_vm0, %v3447_v3 }
  0x44   : > { %3321 = vmatmul.msk.bf16.vlgmr.msra.gmra.mxu2 %vm402_vm0, %v3449_v4  ;;  %3323 = vmatmul.msk.bf16.vlgmr.msra.gmra.mxu3 %vm402_vm0, %v3451_v5 }
  0x53   : > { %3318 = vmatmul.msk.bf16.gmra.mxu0 %vm402_vm0, %v3446_v6  ;;  %3320 = vmatmul.msk.bf16.gmra.mxu1 %vm402_vm0, %v3448_v7 }
  0x54   : > { %3322 = vmatmul.msk.bf16.gmra.mxu2 %vm402_vm0, %v3450_v8  ;;  %3324 = vmatmul.msk.bf16.gmra.mxu3 %vm402_vm0, %v3452_v9 }
  0xc0   : > { %v436_v11 = vpop.f32.mrf.mxu0  ;;  %v446_v12 = vpop.f32.mrf.mxu1 }
  0xc1   : > { %v4244_v13 = vadd.f32 %v4241_v10, %v446_v12  ;;  %v4247_v14 = vadd.f32 %v4241_v10, %v436_v11 }
  0xc3   : > { %v480_v15 = vmul.f32 0.35355338, %v4244_v13  ;;  %v508_v21 = vpack.c.bf16 %v4247_v14, %v4247_v14 }
  0xc5   : > { %v496_v25 = vpack.c.bf16 %v480_v15, %v480_v15  ;;  %v554_v30 = vunpack.c.l.b16 %v508_v21  ;;  %v512_v21 = vpack.c.bf16 %v4244_v13, %v4244_v13 }
  0xc7   : > { %v456_v16 = vpop.f32.mrf.mxu2  ;;  %v466_v17 = vpop.f32.mrf.mxu3  ;;  %v600_v33 = vunpack.c.l.b16 %v496_v25 }
  0xc8   : > { %v4251_v18 = vadd.f32 %v4241_v10, %v456_v16  ;;  %v438_v19 = vpop.f32.mrf.mxu0  ;;  %v448_v20 = vpop.f32.mrf.mxu1  ;;  %v4262_v24 = vadd.f32 %v4241_v10, %v466_v17 }
  0xc9   : > { %v4256_v22 = vadd.f32 %v4241_v10, %v438_v19  ;;  %v4259_v23 = vadd.f32 %v4241_v10, %v448_v20 }
  0xca   : > { %v484_v26 = vmul.f32 0.35355338, %v4251_v18  ;;  %v488_v29 = vmul.f32 0.35355338, %v4262_v24  ;;  %v520_v11 = vpack.c.bf16 %v4262_v24, %v4262_v24 }
  0xcb   : > { %v509_v27 = vpack.c.bf16 %v4256_v22, %v4256_v22  ;;  %v481_v28 = vmul.f32 0.35355338, %v4259_v23  ;;  %v513_v25 = vpack.c.bf16 %v4259_v23, %v4259_v23 }
  0xcc   : > { %v500_v34 = vpack.c.bf16 %v484_v26, %v484_v26  ;;  %v504_v42 = vpack.c.bf16 %v488_v29, %v488_v29 }
  0xcd   : > { %v555_v31 = vunpack.c.l.b16 %v509_v27  ;;  %v497_v32 = vpack.c.bf16 %v481_v28, %v481_v28 }
  0xce   : > { %v655_v48 = vunpack.c.l.b16 %v500_v34  ;;  %v710_v51 = vunpack.c.l.b16 %v504_v42 }
  0xcf   : > { %v4269_v35 = vpack.c.b16 %v555_v31, %v554_v30  ;;  %v601_v36 = vunpack.c.l.b16 %v497_v32  ;;  %v458_v37 = vpop.f32.mrf.mxu2  ;;  %v468_v38 = vpop.f32.mrf.mxu3 }
  0xd0   : > { %v4272_v39 = vadd.f32 %v4241_v10, %v458_v37  ;;  %v441_v40 = vpop.f32.mrf.mxu0  ;;  %v451_v41 = vpop.f32.mrf.mxu1  ;;  %v469_v43 = vadd.f32 %v4241_v10, %v468_v38  ;;  %v720_v37 = vunpack.c.l.b16 %v520_v11 }
  0xd1   : > { %5782 = vst [vmem:[#allocation16_spill] sm:$0xff] %v4269_v35  ;;  %v4275_v44 = vpack.c.b16 %v601_v36, %v600_v33  ;;  %560 = vrot.lane.b32.xlu1 %v4269_v35, %s4046_s30  ;;  %v452_v46 = vadd.f32 %v4241_v10, %v451_v41  ;;  %v4282_v50 = vadd.f32 %v4241_v10, %v441_v40 }
  0xd2   : > { %v485_v45 = vmul.f32 0.35355338, %v4272_v39  ;;  %v489_v47 = vmul.f32 0.35355338, %v469_v43  ;;  %v521_v12 = vpack.c.bf16 %v469_v43, %v469_v43  ;;  %v610_v43 = vunpack.c.l.b16 %v512_v21 }
  0xd3   : > { %5783 = vst [vmem:[#allocation17_spill] sm:$0xff] %v4275_v44  ;;  %v482_v54 = vmul.f32 0.35355338, %v452_v46  ;;  %v510_v59 = vpack.c.bf16 %v4282_v50, %v4282_v50  ;;  %v514_v63 = vpack.c.bf16 %v452_v46, %v452_v46 }
  0xd4   : > { %v501_v49 = vpack.c.bf16 %v485_v45, %v485_v45  ;;  %v505_v52 = vpack.c.bf16 %v489_v47, %v489_v47  ;;  %v721_v38 = vunpack.c.l.b16 %v521_v12  ;;  %v611_v45 = vunpack.c.l.b16 %v513_v25 }
  0xd5   : > { %v498_v3 = vpack.c.bf16 %v482_v54, %v482_v54  ;;  %v556_v9 = vunpack.c.l.b16 %v510_v59  ;;  %v612_v16 = vunpack.c.l.b16 %v514_v63 }
  0xd6   : > { %v656_v53 = vunpack.c.l.b16 %v501_v49  ;;  %v711_v55 = vunpack.c.l.b16 %v505_v52  ;;  %v4318_v52 = vpack.c.b16 %v721_v38, %v720_v37 }
  0xd7   : > { %v461_v56 = vpop.f32.mrf.mxu2  ;;  %v471_v57 = vpop.f32.mrf.mxu3  ;;  %v602_v26 = vunpack.c.l.b16 %v498_v3 }
  0xd8   : > { %v4284_v58 = vpack.c.b16 %v656_v53, %v655_v48  ;;  %v443_v60 = vpop.f32.mrf.mxu0  ;;  %v453_v61 = vpop.f32.mrf.mxu1  ;;  %v4288_v62 = vpack.c.b16 %v711_v55, %v710_v51  ;;  %v462_v0 = vadd.f32 %v4241_v10, %v461_v56  ;;  %v472_v4 = vadd.f32 %v4241_v10, %v471_v57  ;;  %5787 = vst [vmem:[#allocation21_spill] sm:$0xff] %v4318_v52 }
  0xd9   : > { %v4292_v1 = vadd.f32 %v4241_v10, %v443_v60  ;;  %v454_v2 = vadd.f32 %v4241_v10, %v453_v61  ;;  %v516_v51 = vpack.c.bf16 %v4251_v18, %v4251_v18  ;;  %v517_v55 = vpack.c.bf16 %v4272_v39, %v4272_v39 }
  0xda   : > { %5784 = vst [vmem:[#allocation18_spill] sm:$0xff] %v4288_v62  ;;  %v486_v5 = vmul.f32 0.35355338, %v462_v0  ;;  %v490_v15 = vmul.f32 0.35355338, %v472_v4  ;;  %v518_v27 = vpack.c.bf16 %v462_v0, %v462_v0  ;;  %v522_v53 = vpack.c.bf16 %v472_v4, %v472_v4 }
  0xdb   : > { %v511_v6 = vpack.c.bf16 %v4292_v1, %v4292_v1  ;;  %v483_v7 = vmul.f32 0.35355338, %v454_v2  ;;  %v515_v8 = vpack.c.bf16 %v454_v2, %v454_v2  ;;  %v4324_v60 = vpack.c.b16 %v611_v45, %v610_v43 }
  0xdc   : > { %v502_v28 = vpack.c.bf16 %v486_v5, %v486_v5  ;;  %v506_v34 = vpack.c.bf16 %v490_v15, %v490_v15  ;;  %v667_v23 = vunpack.c.l.b16 %v518_v27  ;;  %v722_v18 = vunpack.c.l.b16 %v522_v53 }
  0xdd   : > { %v557_v17 = vunpack.c.l.b16 %v511_v6  ;;  %v499_v19 = vpack.c.bf16 %v483_v7, %v483_v7  ;;  %v613_v20 = vunpack.c.l.b16 %v515_v8  ;;  %v665_v39 = vunpack.c.l.b16 %v516_v51 }
  0xde   : > { %v657_v46 = vunpack.c.l.b16 %v502_v28  ;;  %v666_v2 = vunpack.c.l.b16 %v517_v55  ;;  %v477_v5 = vmul.f32 0.35355338, %v4256_v22  ;;  %v476_v6 = vmul.f32 0.35355338, %v4247_v14 }
  0xdf   : > { %v4304_v29 = vpack.c.b16 %v557_v17, %v556_v9  ;;  %v603_v30 = vunpack.c.l.b16 %v499_v19  ;;  %v4306_v31 = vpack.c.b16 %v613_v20, %v612_v16  ;;  %v463_v24 = vpop.f32.mrf.mxu2  ;;  %v473_v32 = vpop.f32.mrf.mxu3  ;;  %v479_v14 = vmul.f32 0.35355338, %v4292_v1 }
  0xe0   : > { %v464_v33 = vadd.f32 %v4241_v10, %v463_v24  ;;  %v474_v36 = vadd.f32 %v4241_v10, %v473_v32  ;;  %v712_v10 = vunpack.c.l.b16 %v506_v34  ;;  %v4338_v4 = vpack.c.b16 %v666_v2, %v665_v39  ;;  %v4406_v39 = vld [vmem:[#allocation9 + $0x40] sm:$0xff] }
  0xe1   : > { %5785 = vst [vmem:[#allocation19_spill] sm:$0xff] %v4304_v29  ;;  %v4310_v13 = vpack.c.b16 %v603_v30, %v602_v26  ;;  %618 = vrot.lane.b32.xlu0 %v4306_v31, %s4046_s30  ;;  %562 = vrot.lane.b32.xlu1 %v4304_v29, %s4046_s30  ;;  %v493_v7 = vpack.c.bf16 %v477_v5, %v477_v5  ;;  %v478_v22 = vmul.f32 0.35355338, %v4282_v50 }
  0xe2   : > { %v487_v40 = vmul.f32 0.35355338, %v464_v33  ;;  %v519_v41 = vpack.c.bf16 %v464_v33, %v464_v33  ;;  %v491_v42 = vmul.f32 0.35355338, %v474_v36  ;;  %v523_v54 = vpack.c.bf16 %v474_v36, %v474_v36 }
  0xe3   : > { %5786 = vst [vmem:[#allocation20_spill] sm:$0xff] %v4310_v13  ;;  %v492_v8 = vpack.c.bf16 %v476_v6, %v476_v6  ;;  %v545_v9 = vunpack.c.l.b16 %v493_v7  ;;  %v495_v15 = vpack.c.bf16 %v479_v14, %v479_v14  ;;  %v494_v16 = vpack.c.bf16 %v478_v22, %v478_v22  ;;  %v4413_v7 = vld [vmem:[#allocation9] sm:$0xff] }
  0xe4   : > { %v503_v47 = vpack.c.bf16 %v487_v40, %v487_v40  ;;  %v668_v48 = vunpack.c.l.b16 %v519_v41  ;;  %v507_v49 = vpack.c.bf16 %v491_v42, %v491_v42  ;;  %v723_v0 = vunpack.c.l.b16 %v523_v54  ;;  %v4420_v14 = vld [vmem:[#allocation9 + $0x20] sm:$0xff] }
  0xe5   : > { %v544_v11 = vunpack.c.l.b16 %v492_v8  ;;  %v547_v17 = vunpack.c.l.b16 %v495_v15  ;;  %v546_v19 = vunpack.c.l.b16 %v494_v16 }
  0xe6   : > { %v658_v56 = vunpack.c.l.b16 %v503_v47  ;;  %v4322_v57 = vpack.c.b16 %v668_v48, %v667_v23  ;;  %v713_v59 = vunpack.c.l.b16 %v507_v49  ;;  %v4336_v3 = vpack.c.b16 %v723_v0, %v722_v18 }
  0xe7   : > { %v4355_v12 = vpack.c.b16 %v545_v9, %v544_v11  ;;  %v4367_v20 = vpack.c.b16 %v547_v17, %v546_v19 }
  0xe8   : > { %v4326_v61 = vpack.c.b16 %v658_v56, %v657_v46  ;;  %673 = vrot.lane.b32.xlu2 %v4322_v57, %s4046_s30  ;;  %v4330_v63 = vpack.c.b16 %v713_v59, %v712_v10 }
  0xe9   : > { %616 = vrot.lane.b32.xlu0 %v4324_v60, %s4046_s30  ;;  %726 = vrot.lane.b32.xlu1 %v4318_v52, %s4046_s30 }
  0xea   : > { %5788 = vst [vmem:[#allocation22_spill] sm:$0xff] %v4326_v61 }
  0xeb   : > { %5789 = vst [vmem:[#allocation23_spill] sm:$0xff] %v4330_v63 }
  0xf0   : > { %671 = vrot.lane.b32.xlu2 %v4338_v4, %s4046_s30 }
  0xf1   : > { %728 = vrot.lane.b32.xlu0 %v4336_v3, %s4046_s30  ;;  %963 = vrot.lane.b32.xlu1 %v4269_v35, %s4047_s9  ;;  %s3276_s30 = sshll.u32 %s4214_s19, 7 }
  0xf8   : > { %1006 = vrot.lane.b32.xlu2 %v4306_v31, %s4047_s9 }
  0xf9   : > { %1004 = vrot.lane.b32.xlu0 %v4324_v60, %s4047_s9  ;;  %1195 = vrot.lane.b32.xlu1 %v4306_v31, %s4048_s12 }
 0x100   : > { %1156 = vrot.lane.b32.xlu2 %v4304_v29, %s4048_s12 }
 0x101   : > { %965 = vrot.lane.b32.xlu0 %v4304_v29, %s4047_s9  ;;  %1047 = vrot.lane.b32.xlu1 %v4322_v57, %s4047_s9 }
 0x108   : > { %1154 = vrot.lane.b32.xlu2 %v4269_v35, %s4048_s12 }
 0x109   : > { %1234 = vrot.lane.b32.xlu1 %v4322_v57, %s4048_s12  ;;  %1150 = vrot.lane.b32.xlu0 %v4355_v12, %s4049_s13 }
 0x110   : > { %1086 = vrot.lane.b32.xlu2 %v4318_v52, %s4047_s9 }
 0x111   : > { %1045 = vrot.lane.b32.xlu0 %v4338_v4, %s4047_s9 }
 0x118   : > { %1088 = vrot.lane.b32.xlu2 %v4336_v3, %s4047_s9  ;;  %s3983_s9 = scalar_lea.hbm %s5755_s6, 256 }
 0x119   : > { %1152 = vrot.lane.b32.xlu0 %v4367_v20, %s4049_s13 }
 0x121   : > { %1193 = vrot.lane.b32.xlu0 %v4324_v60, %s4048_s12 }
 0x142   : > { %v674_v50 = vpop.permute.xlu2 %673 }
 0x143   : > { %v685_v1 = vsel %vm564_vm1, %v674_v50, 0  ;;  %v561_v25 = vpop.permute.xlu1 %560  ;;  %v4427_v50 = vld [vmem:[#allocation9 + $0x8] sm:$0xff] }
 0x144   : > { %693 = vmatpush.bf16.xpose.msrb.mxu3 %v685_v1  ;;  %v572_v37 = vsel %vm564_vm1, %v561_v25, 0  ;;  %v4429_v1 = vld [vmem:[#allocation9 + $0x28] sm:$0xff] }
 0x14a   : > { %v672_v21 = vpop.permute.xlu2 %671 }
 0x14b   : > { %v682_v26 = vsel %vm564_vm1, %v672_v21, 0 }
 0x14c   : > { %694 = vmatpush.bf16.xpose.msrb.mxu3 %v682_v26  ;;  %v4434_v26 = vld [vmem:[#allocation9 + $0x10] sm:$0xff] }
 0x152   : > { %v1007_v27 = vpop.permute.xlu2 %1006 }
 0x153   : > { %3329 = vmatmul.msk.bf16.vlgmr.msrb.gmra.mxu3 %vm564_vm1, %v4284_v58  ;;  %v619_v28 = vpop.permute.xlu0 %618  ;;  %v563_v30 = vpop.permute.xlu1 %562 }
 0x154   : > { %1022 = vmatpush.bf16.msra.mxu3 %v1007_v27  ;;  %v575_v24 = vsel %vm564_vm1, %v563_v30, 0  ;;  %v630_v32 = vsel %vm564_vm1, %v619_v28, 0 }
 0x155   : > { %583 = vmatpush.bf16.xpose.msrb.mxu1 %v575_v24  ;;  %638 = vmatpush.bf16.xpose.msrb.mxu2 %v630_v32 }
 0x15a   : > { %v1157_v33 = vpop.permute.xlu2 %1156 }
 0x15b   : > { %v617_v34 = vpop.permute.xlu0 %616  ;;  %v727_v36 = vpop.permute.xlu1 %726  ;;  %v1168_v47 = vsel %vm564_vm1, %v1157_v33, 0  ;;  %v4446_v33 = vld [vmem:[#allocation9 + $0x50] sm:$0xff] }
 0x15c   : > { %v627_v38 = vsel %vm564_vm1, %v617_v34, 0  ;;  %v737_v43 = vsel %vm564_vm1, %v727_v36, 0 }
 0x15d   : > { %584 = vmatpush.bf16.xpose.msrb.mxu1 %v572_v37  ;;  %639 = vmatpush.bf16.xpose.msrb.mxu2 %v627_v38  ;;  %v4450_v37 = vld [vmem:[#allocation9 + $0x48] sm:$0xff]  ;;  %v4452_v38 = vld [vmem:[#allocation9 + $0x30] sm:$0xff] }
 0x162   : > { %v1155_v42 = vpop.permute.xlu2 %1154 }
 0x163   : > { %3330 = vmatmul.msk.bf16.gmra.mxu3 %vm564_vm1, %v4326_v61  ;;  %v729_v23 = vpop.permute.xlu0 %728  ;;  %v964_v40 = vpop.permute.xlu1 %963  ;;  %v1165_v51 = vsel %vm564_vm1, %v1155_v42, 0 }
 0x164   : > { %v740_v41 = vsel %vm564_vm1, %v729_v23, 0  ;;  %3325 = vmatmul.msk.bf16.vlgmr.msrb.gmra.mxu1 %vm564_vm1, %v4355_v12  ;;  %3327 = vmatmul.msk.bf16.vlgmr.msrb.gmra.mxu2 %vm564_vm1, %v4275_v44 }
 0x165   : > { %748 = vmatpush.bf16.xpose.msra.mxu1 %v740_v41 }
 0x16a   : > { %v1087_v48 = vpop.permute.xlu2 %1086 }
 0x16b   : > { %v1005_v45 = vpop.permute.xlu0 %1004  ;;  %v1196_v46 = vpop.permute.xlu1 %1195 }
 0x16c   : > { %1023 = vmatpush.bf16.msra.mxu3 %v1005_v45  ;;  %v1207_v56 = vsel %vm564_vm1, %v1196_v46, 0 }
 0x16d   : > { %749 = vmatpush.bf16.xpose.msra.mxu1 %v737_v43 }
 0x170   : > { %1176 = vmatpush.bf16.xpose.msrb.mxu3 %v1168_v47  ;;  %v4467_v47 = vld [vmem:[#allocation9 + $0x18] sm:$0xff] }
 0x172   : > { %v1089_v53 = vpop.permute.xlu2 %1088 }
 0x173   : > { %v966_v10 = vpop.permute.xlu0 %965  ;;  %v1048_v49 = vpop.permute.xlu1 %1047 }
 0x174   : > { %3326 = vmatmul.msk.bf16.gmra.mxu1 %vm564_vm1, %v4367_v20  ;;  %3328 = vmatmul.msk.bf16.gmra.mxu2 %vm564_vm1, %v4310_v13 }
 0x175   : > { %981 = vmatpush.bf16.msra.mxu2 %v966_v10  ;;  %1063 = vmatpush.bf16.msrb.mxu1 %v1048_v49  ;;  %v4471_v10 = vld [vmem:[#allocation9 + $0x58] sm:$0xff] }
 0x178   : > { %1177 = vmatpush.bf16.xpose.msrb.mxu3 %v1165_v51  ;;  %v4473_v51 = vld [vmem:[#allocation9 + $0x38] sm:$0xff] }
 0x179   : > { %982 = vmatpush.bf16.msra.mxu2 %v964_v40 }
 0x17b   : > { %v4396_v54 = vpop.permute.xlu0 %1150 }
 0x17d   : > { %1104 = vmatpush.bf16.msrb.mxu2 %v1089_v53 }
 0x181   : > { %1105 = vmatpush.bf16.msrb.mxu2 %v1087_v48 }
 0x183   : > { %v1046_v55 = vpop.permute.xlu0 %1045 }
 0x184   : > { %3331 = vmatmul.msk.bf16.vlgmr.msra.gmra.mxu1 %vm564_vm1, %v4288_v62 }
 0x185   : > { %1064 = vmatpush.bf16.msrb.mxu1 %v1046_v55 }
 0x189   : > { %1215 = vmatpush.bf16.xpose.msra.mxu1 %v1207_v56 }
 0x18b   : > { %v4401_v59 = vpop.permute.xlu0 %1152 }
 0x193   : > { %v1194_v18 = vpop.permute.xlu0 %1193 }
 0x194   : > { %3332 = vmatmul.msk.bf16.gmra.mxu1 %vm564_vm1, %v4330_v63  ;;  %v1204_v0 = vsel %vm564_vm1, %v1194_v18, 0 }
 0x195   : > { %1216 = vmatpush.bf16.xpose.msra.mxu1 %v1204_v0 }
 0x1d6   : > { %v696_v2 = vpop.f32.mrf.mxu3 }
 0x1d7   : > { %v4409_v5 = vadd.f32 %v696_v2, %v4406_v39 }
 0x1d9   : > { %v785_v6 = vsel %vm402_vm0, %v4409_v5, -inf }
 0x1da   : > { %786 = vmax.xlane.f32.xlu0 %v785_v6 }
 0x1de   : > { %v698_v16 = vpop.f32.mrf.mxu3 }
 0x1df   : > { %v4458_v41 = vadd.f32 %v698_v16, %v4450_v37  ;;  %v4495_v16 = vld [vmem:[#allocation9 + $0x68] sm:$0xff] }
 0x1e1   : > { %v586_v8 = vpop.f32.mrf.mxu1  ;;  %v788_v48 = vsel %vm402_vm0, %v4458_v41, -inf }
 0x1e2   : > { %v4416_v9 = vadd.f32 %v586_v8, %v4413_v7  ;;  %v4488_v8 = vld [vmem:[#allocation9 + $0x60] sm:$0xff] }
 0x1e4   : > { %v761_v11 = vsel %vm402_vm0, %v4416_v9, -inf }
 0x1e5   : > { %762 = vmax.xlane.f32.xlu1 %v761_v11 }
 0x1e6   : > { %v701_v34 = vpop.f32.mrf.mxu3 }
 0x1e7   : > { %v641_v22 = vpop.f32.mrf.mxu2  ;;  %v4455_v23 = vadd.f32 %v701_v34, %v4446_v33 }
 0x1e8   : > { %v4423_v15 = vadd.f32 %v641_v22, %v4420_v14 }
 0x1e9   : > { %v588_v17 = vpop.f32.mrf.mxu1  ;;  %v791_v45 = vsel %vm402_vm0, %v4455_v23, -inf }
 0x1ea   : > { %v773_v19 = vsel %vm402_vm0, %v4423_v15, -inf  ;;  %v4432_v21 = vadd.f32 %v588_v17, %v4427_v50 }
 0x1eb   : > { %774 = vmax.xlane.f32.xlu2 %v773_v19 }
 0x1ec   : > { %v764_v32 = vsel %vm402_vm0, %v4432_v21, -inf }
 0x1ee   : > { %v703_v49 = vpop.f32.mrf.mxu3 }
 0x1ef   : > { %v643_v25 = vpop.f32.mrf.mxu2  ;;  %v4479_v56 = vadd.f32 %v703_v49, %v4471_v10 }
 0x1f0   : > { %v4437_v27 = vadd.f32 %v643_v25, %v4429_v1 }
 0x1f1   : > { %v591_v28 = vpop.f32.mrf.mxu1  ;;  %v794_v11 = vsel %vm402_vm0, %v4479_v56, -inf }
 0x1f2   : > { %v4440_v30 = vadd.f32 %v591_v28, %v4434_v26  ;;  %v776_v24 = vsel %vm402_vm0, %v4437_v27, -inf }
 0x1f3   : > { %777 = vmax.xlane.f32.xlu0 %v776_v24  ;;  %765 = vmax.xlane.f32.xlu2 %v764_v32  ;;  %v4504_v24 = vld [vmem:[#allocation9 + $0x70] sm:$0xff] }
 0x1f4   : > { %v767_v36 = vsel %vm402_vm0, %v4440_v30, -inf }
 0x1f5   : > { %768 = vmax.xlane.f32.xlu1 %v767_v36 }
 0x1f7   : > { %v646_v40 = vpop.f32.mrf.mxu2 }
 0x1f8   : > { %v4461_v42 = vadd.f32 %v646_v40, %v4452_v38  ;;  %v4515_v40 = vld [vmem:[#allocation9 + $0x78] sm:$0xff] }
 0x1f9   : > { %v593_v43 = vpop.f32.mrf.mxu1 }
 0x1fa   : > { %v779_v46 = vsel %vm402_vm0, %v4461_v42, -inf  ;;  %v4476_v53 = vadd.f32 %v593_v43, %v4467_v47 }
 0x1fb   : > { %792 = vmax.xlane.f32.xlu0 %v791_v45  ;;  %780 = vmax.xlane.f32.xlu2 %v779_v46 }
 0x1fc   : > { %v770_v6 = vsel %vm402_vm0, %v4476_v53, -inf }
 0x1fd   : > { %789 = vmax.xlane.f32.xlu1 %v788_v48 }
 0x1ff   : > { %v648_v55 = vpop.f32.mrf.mxu2 }
 0x200   : > { %v4482_v18 = vadd.f32 %v648_v55, %v4473_v51  ;;  %v4523_v55 = vpop.permute.xlu1 %1234 }
 0x201   : > { %v751_v0 = vpop.f32.mrf.mxu1 }
 0x202   : > { %v782_v2 = vsel %vm402_vm0, %v4482_v18, -inf  ;;  %v4493_v22 = vadd.f32 %v751_v0, %v4488_v8 }
 0x203   : > { %783 = vmax.xlane.f32.xlu0 %v782_v2  ;;  %771 = vmax.xlane.f32.xlu2 %v770_v6 }
 0x204   : > { %v797_v25 = vsel %vm402_vm0, %v4493_v22, -inf }
 0x205   : > { %795 = vmax.xlane.f32.xlu1 %v794_v11 }
 0x209   : > { %v753_v17 = vpop.f32.mrf.mxu1 }
 0x20a   : > { %v4498_v19 = vadd.f32 %v753_v17, %v4495_v16 }
 0x20b   : > { %798 = vmax.xlane.f32.xlu2 %v797_v25 }
 0x20c   : > { %v800_v28 = vsel %vm402_vm0, %v4498_v19, -inf }
 0x20d   : > { %801 = vmax.xlane.f32.xlu0 %v800_v28 }
 0x211   : > { %v756_v32 = vpop.f32.mrf.mxu1 }
 0x212   : > { %v4507_v34 = vadd.f32 %v756_v32, %v4504_v24 }
 0x214   : > { %v803_v36 = vsel %vm402_vm0, %v4507_v34, -inf }
 0x215   : > { %804 = vmax.xlane.f32.xlu0 %v803_v36 }
 0x219   : > { %v758_v43 = vpop.f32.mrf.mxu1 }
 0x21a   : > { %v4518_v45 = vadd.f32 %v758_v43, %v4515_v40 }
 0x21c   : > { %v806_v46 = vsel %vm402_vm0, %v4518_v45, -inf }
 0x21e   : > { %1232 = vrot.lane.b32.xlu1 %v4338_v4, %s4048_s12 }
 0x229   : > { %1189 = vrot.lane.b32.xlu0 %v4275_v44, %s4049_s13 }
 0x248   : > { %807 = vmax.xlane.f32.xlu1 %v806_v46 }
 0x24d   : > { %v787_v48 = vpop.xlane.xlu0 %786 }
 0x24e   : > { %v817_v49 = vsub.f32 %v4409_v5, %v787_v48 }
 0x250   : > { %v841_v0 = vmul.f32 1.442695, %v817_v49 }
 0x252   : > { %3571 = vpow2.f32 %v841_v0 }
 0x258   : > { %v4525_v2 = vpop.eup %3571  ;;  %v763_v6 = vpop.xlane.xlu1 %762 }
 0x259   : > { %v809_v11 = vsub.f32 %v4416_v9, %v763_v6  ;;  %v881_v17 = vsel %vm402_vm0, %v4525_v2, 0.0 }
 0x25a   : > { %882 = vadd.xlane.f32.xlu0 %v881_v17 }
 0x25b   : > { %v825_v25 = vmul.f32 1.442695, %v809_v11 }
 0x25d   : > { %3573 = vpow2.f32 %v825_v25 }
 0x25e   : > { %v775_v28 = vpop.xlane.xlu2 %774 }
 0x25f   : > { %v813_v32 = vsub.f32 %v4423_v15, %v775_v28 }
 0x261   : > { %v833_v36 = vmul.f32 1.442695, %v813_v32 }
 0x263   : > { %v4531_v5 = vpop.eup %3573  ;;  %3575 = vpow2.f32 %v833_v36 }
 0x264   : > { %v857_v43 = vsel %vm402_vm0, %v4531_v5, 0.0 }
 0x265   : > { %858 = vadd.xlane.f32.xlu1 %v857_v43 }
 0x266   : > { %v778_v46 = vpop.xlane.xlu0 %777  ;;  %v766_v48 = vpop.xlane.xlu2 %765 }
 0x267   : > { %v814_v9 = vsub.f32 %v4437_v27, %v778_v46  ;;  %v810_v49 = vsub.f32 %v4432_v21, %v766_v48 }
 0x268   : > { %v769_v0 = vpop.xlane.xlu1 %768 }
 0x269   : > { %v4537_v6 = vpop.eup %3575  ;;  %v835_v11 = vmul.f32 1.442695, %v814_v9  ;;  %v827_v17 = vmul.f32 1.442695, %v810_v49  ;;  %v811_v15 = vsub.f32 %v4440_v30, %v769_v0 }
 0x26a   : > { %v869_v28 = vsel %vm402_vm0, %v4537_v6, 0.0 }
 0x26b   : > { %3577 = vpow2.f32 %v835_v11  ;;  %v829_v25 = vmul.f32 1.442695, %v811_v15 }
 0x26c   : > { %3579 = vpow2.f32 %v827_v17 }
 0x26d   : > { %3581 = vpow2.f32 %v829_v25  ;;  %870 = vadd.xlane.f32.xlu1 %v869_v28 }
 0x26e   : > { %v781_v32 = vpop.xlane.xlu2 %780  ;;  %v793_v11 = vpop.xlane.xlu0 %792 }
 0x26f   : > { %v815_v27 = vsub.f32 %v4461_v42, %v781_v32  ;;  %v819_v28 = vsub.f32 %v4455_v23, %v793_v11 }
 0x270   : > { %v790_v36 = vpop.xlane.xlu1 %789 }
 0x271   : > { %v4543_v21 = vpop.eup %3577  ;;  %v837_v43 = vmul.f32 1.442695, %v815_v27  ;;  %v818_v46 = vsub.f32 %v4458_v41, %v790_v36 }
 0x272   : > { %v4546_v48 = vpop.eup %3579  ;;  %v872_v30 = vsel %vm402_vm0, %v4543_v21, 0.0 }
 0x273   : > { %v4550_v9 = vpop.eup %3581  ;;  %v843_v49 = vmul.f32 1.442695, %v818_v46  ;;  %873 = vadd.xlane.f32.xlu2 %v872_v30  ;;  %3583 = vpow2.f32 %v837_v43  ;;  %v860_v0 = vsel %vm402_vm0, %v4546_v48, 0.0  ;;  %v845_v43 = vmul.f32 1.442695, %v819_v28 }
 0x274   : > { %v863_v42 = vsel %vm402_vm0, %v4550_v9, 0.0 }
 0x275   : > { %3585 = vpow2.f32 %v843_v49  ;;  %861 = vadd.xlane.f32.xlu1 %v860_v0  ;;  %864 = vadd.xlane.f32.xlu0 %v863_v42 }
 0x276   : > { %v772_v41 = vpop.xlane.xlu2 %771 }
 0x277   : > { %v812_v17 = vsub.f32 %v4476_v53, %v772_v41  ;;  %v784_v53 = vpop.xlane.xlu0 %783 }
 0x278   : > { %v796_v46 = vpop.xlane.xlu1 %795  ;;  %v816_v11 = vsub.f32 %v4482_v18, %v784_v53 }
 0x279   : > { %v831_v15 = vmul.f32 1.442695, %v812_v17  ;;  %v4557_v25 = vpop.eup %3583  ;;  %v820_v0 = vsub.f32 %v4479_v56, %v796_v46 }
 0x27a   : > { %v875_v27 = vsel %vm402_vm0, %v4557_v25, 0.0 }
 0x27b   : > { %v4560_v32 = vpop.eup %3585  ;;  %3587 = vpow2.f32 %v831_v15  ;;  %876 = vadd.xlane.f32.xlu2 %v875_v27  ;;  %v847_v17 = vmul.f32 1.442695, %v820_v0  ;;  %v839_v15 = vmul.f32 1.442695, %v816_v11 }
 0x27c   : > { %v884_v36 = vsel %vm402_vm0, %v4560_v32, 0.0  ;;  %3589 = vpow2.f32 %v845_v43 }
 0x27d   : > { %885 = vadd.xlane.f32.xlu0 %v884_v36 }
 0x27e   : > { %v799_v30 = vpop.xlane.xlu2 %798 }
 0x27f   : > { %v821_v49 = vsub.f32 %v4493_v22, %v799_v30 }
 0x280   : > { %v802_v30 = vpop.xlane.xlu0 %801 }
 0x281   : > { %v849_v23 = vmul.f32 1.442695, %v821_v49  ;;  %v4568_v42 = vpop.eup %3587  ;;  %v822_v53 = vsub.f32 %v4498_v19, %v802_v30 }
 0x282   : > { %v866_v41 = vsel %vm402_vm0, %v4568_v42, 0.0  ;;  %v4573_v28 = vpop.eup %3589 }
 0x283   : > { %3591 = vpow2.f32 %v849_v23  ;;  %867 = vadd.xlane.f32.xlu1 %v866_v41  ;;  %v887_v22 = vsel %vm402_vm0, %v4573_v28, 0.0  ;;  %v851_v49 = vmul.f32 1.442695, %v822_v53 }
 0x284   : > { %3593 = vpow2.f32 %v847_v17 }
 0x285   : > { %3595 = vpow2.f32 %v839_v15 }
 0x286   : > { %3597 = vpow2.f32 %v851_v49 }
 0x288   : > { %v805_v11 = vpop.xlane.xlu0 %804 }
 0x289   : > { %v4575_v27 = vpop.eup %3591 }
 0x28a   : > { %v893_v56 = vsel %vm402_vm0, %v4575_v27, 0.0  ;;  %v4581_v18 = vpop.eup %3593 }
 0x28b   : > { %894 = vadd.xlane.f32.xlu0 %v893_v56  ;;  %888 = vadd.xlane.f32.xlu1 %v887_v22  ;;  %v4583_v36 = vpop.eup %3595  ;;  %v890_v43 = vsel %vm402_vm0, %v4581_v18, 0.0 }
 0x28c   : > { %v878_v46 = vsel %vm402_vm0, %v4583_v36, 0.0  ;;  %v4602_v0 = vpop.eup %3597 }
 0x28d   : > { %v896_v23 = vsel %vm402_vm0, %v4602_v0, 0.0 }
 0x290   : > { %v4614_v19 = vpop.permute.xlu1 %1232 }
 0x293   : > { %891 = vadd.xlane.f32.xlu0 %v890_v43  ;;  %1191 = vrot.lane.b32.xlu2 %v4310_v13, %s4049_s13  ;;  %v823_v43 = vsub.f32 %v4507_v34, %v805_v11 }
 0x294   : > { %879 = vadd.xlane.f32.xlu1 %v878_v46 }
 0x29b   : > { %v4622_v17 = vpop.permute.xlu0 %1189 }
 0x2a7   : > { %1228 = vrot.lane.b32.xlu0 %v4284_v58, %s4049_s13 }
 0x2ad   : > { %1230 = vrot.lane.b32.xlu1 %v4326_v61, %s4049_s13 }
 0x2af   : > { %1273 = vrot.lane.b32.xlu0 %v4336_v3, %s4048_s12 }
 0x2b5   : > { %1271 = vrot.lane.b32.xlu1 %v4318_v52, %s4048_s12 }
 0x2b7   : > { %1267 = vrot.lane.b32.xlu0 %v4288_v62, %s4049_s13 }
 0x2bb   : > { %v808_v41 = vpop.xlane.xlu1 %807 }
 0x2bc   : > { %897 = vadd.xlane.f32.xlu2 %v896_v23  ;;  %v853_v23 = vmul.f32 1.442695, %v823_v43 }
 0x2bd   : > { %1269 = vrot.lane.b32.xlu1 %v4330_v63, %s4049_s13  ;;  %s5654_s13 = scalar_lea.vmem [#allocation11], %s3276_s30 }
 0x2bf   : > { %1510 = vrot.lane.b32.xlu0 %v4304_v29, %s4050_s11 }
 0x2c5   : > { %1765 = vrot.lane.b32.xlu1 %v4304_v29, %s4051_s26 }
 0x2c7   : > { %1763 = vrot.lane.b32.xlu0 %v4269_v35, %s4051_s26 }
 0x2cd   : > { %1551 = vrot.lane.b32.xlu1 %v4306_v31, %s4050_s11  ;;  %v883_v56 = vpop.xlane.xlu0 %882 }
 0x2cf   : > { %1549 = vrot.lane.b32.xlu0 %v4324_v60, %s4050_s11 }
 0x2d4   : > { %1508 = vrot.lane.b32.xlu2 %v4269_v35, %s4050_s11  ;;  %v824_v35 = vsub.f32 %v4518_v45, %v808_v41 }
 0x2d6   : > { %v855_v11 = vmul.f32 1.442695, %v824_v35 }
 0x2d8   : > { %v859_v15 = vpop.xlane.xlu1 %858 }
 0x2e0   : > { %v871_v22 = vpop.xlane.xlu1 %870 }
 0x2e1   : > { %3599 = vrcp.f32 %v871_v22 }
 0x2e2   : > { %3601 = vrcp.f32 %v859_v15 }
 0x2e6   : > { %v874_v46 = vpop.xlane.xlu2 %873 }
 0x2e7   : > { %v3600_v30 = vpop.eup %3599  ;;  %3603 = vrcp.f32 %v874_v46 }
 0x2e8   : > { %v865_v53 = vpop.xlane.xlu0 %864  ;;  %v862_v49 = vpop.xlane.xlu1 %861  ;;  %v925_v63 = vmul.f32 %v3600_v30, %v4537_v6 }
 0x2e9   : > { %v3602_v29 = vpop.eup %3601  ;;  %3605 = vrcp.f32 %v862_v49 }
 0x2ea   : > { %3607 = vrcp.f32 %v883_v56  ;;  %v921_v22 = vmul.f32 %v3602_v29, %v4531_v5  ;;  %v941_v15 = vpack.c.bf16 %v925_v63, %v925_v63 }
 0x2eb   : > { %3609 = vpow2.f32 %v853_v23 }
 0x2ec   : > { %v937_v43 = vpack.c.bf16 %v921_v22, %v921_v22  ;;  %v998_v6 = vunpack.c.l.b16 %v941_v15 }
 0x2ed   : > { %v3604_v62 = vpop.eup %3603 }
 0x2ee   : > { %v926_v34 = vmul.f32 %v3604_v62, %v4543_v21  ;;  %v957_v62 = vunpack.c.l.b16 %v937_v43 }
 0x2ef   : > { %v3606_v61 = vpop.eup %3605 }
 0x2f0   : > { %v942_v46 = vpack.c.bf16 %v926_v34, %v926_v34  ;;  %v886_v13 = vpop.xlane.xlu0 %885  ;;  %v3608_v44 = vpop.eup %3607  ;;  %v922_v52 = vmul.f32 %v3606_v61, %v4546_v48 }
 0x2f1   : > { %3611 = vrcp.f32 %v886_v13  ;;  %v4630_v45 = vpop.eup %3609  ;;  %v929_v29 = vmul.f32 %v3608_v44, %v4525_v2  ;;  %v1246_v44 = vsel %vm564_vm1, %v4523_v55, 0 }
 0x2f2   : > { %v999_v30 = vunpack.c.l.b16 %v942_v46  ;;  %3613 = vpow2.f32 %v855_v11  ;;  %v938_v41 = vpack.c.bf16 %v922_v52, %v922_v52  ;;  %v899_v5 = vsel %vm402_vm0, %v4630_v45, 0.0  ;;  %v877_v46 = vpop.xlane.xlu2 %876 }
 0x2f3   : > { %3615 = vrcp.f32 %v865_v53  ;;  %v945_v48 = vpack.c.bf16 %v929_v29, %v929_v29 }
 0x2f4   : > { %v1002_v63 = vpack.c.b16 %v999_v30, %v998_v6  ;;  %v958_v35 = vunpack.c.l.b16 %v938_v41  ;;  %v1243_v6 = vsel %vm564_vm1, %v4614_v19, 0 }
 0x2f5   : > { %v1039_v49 = vunpack.c.l.b16 %v945_v48 }
 0x2f6   : > { %3335 = vmatmul.msk.bf16.vlgmr.msra.gmra.mxu3 %vm402_vm0, %v1002_v63  ;;  %v961_v61 = vpack.c.b16 %v958_v35, %v957_v62  ;;  %v868_v13 = vpop.xlane.xlu1 %867 }
 0x2f7   : > { %v3612_v21 = vpop.eup %3611  ;;  %900 = vadd.xlane.f32.xlu1 %v899_v5  ;;  %3617 = vrcp.f32 %v868_v13 }
 0x2f8   : > { %v930_v56 = vmul.f32 %v3612_v21, %v4560_v32  ;;  %v4637_v52 = vpop.eup %3613  ;;  %3333 = vmatmul.msk.bf16.vlgmr.msra.gmra.mxu2 %vm402_vm0, %v961_v61 }
 0x2f9   : > { %v3616_v2 = vpop.eup %3615  ;;  %1254 = vmatpush.bf16.xpose.msra.mxu2 %v1246_v44  ;;  %v902_v22 = vsel %vm402_vm0, %v4637_v52, 0.0 }
 0x2fa   : > { %v946_v53 = vpack.c.bf16 %v930_v56, %v930_v56  ;;  %v923_v15 = vmul.f32 %v3616_v2, %v4550_v9 }
 0x2fc   : > { %v1040_v23 = vunpack.c.l.b16 %v946_v53  ;;  %v939_v30 = vpack.c.bf16 %v923_v15, %v923_v15 }
 0x2fd   : > { %v3618_v34 = vpop.eup %3617  ;;  %903 = vadd.xlane.f32.xlu2 %v902_v22 }
 0x2fe   : > { %v1043_v32 = vpack.c.b16 %v1040_v23, %v1039_v49  ;;  %v895_v11 = vpop.xlane.xlu0 %894  ;;  %v889_v43 = vpop.xlane.xlu1 %888  ;;  %v924_v55 = vmul.f32 %v3618_v34, %v4568_v42  ;;  %v959_v9 = vunpack.c.l.b16 %v939_v30 }
 0x2ff   : > { %3619 = vrcp.f32 %v889_v43 }
 0x300   : > { %3337 = vmatmul.msk.bf16.vlgmr.msrb.gmra.mxu1 %vm402_vm0, %v1043_v32  ;;  %v940_v41 = vpack.c.bf16 %v924_v55, %v924_v55  ;;  %3621 = vrcp.f32 %v877_v46  ;;  %v1192_v55 = vpop.permute.xlu2 %1191 }
 0x301   : > { %1255 = vmatpush.bf16.xpose.msra.mxu2 %v1243_v6 }
 0x302   : > { %v960_v29 = vunpack.c.l.b16 %v940_v41 }
 0x304   : > { %v962_v5 = vpack.c.b16 %v960_v29, %v959_v9 }
 0x305   : > { %v3620_v62 = vpop.eup %3619 }
 0x306   : > { %v892_v63 = vpop.xlane.xlu0 %891  ;;  %v3622_v21 = vpop.eup %3621  ;;  %v931_v42 = vmul.f32 %v3620_v62, %v4573_v28 }
 0x307   : > { %3623 = vrcp.f32 %v892_v63  ;;  %v880_v35 = vpop.xlane.xlu1 %879  ;;  %v927_v61 = vmul.f32 %v3622_v21, %v4557_v25 }
 0x308   : > { %3625 = vrcp.f32 %v880_v35  ;;  %3334 = vmatmul.msk.bf16.gmra.mxu2 %vm402_vm0, %v962_v5  ;;  %v947_v56 = vpack.c.bf16 %v931_v42, %v931_v42 }
 0x309   : > { %v943_v2 = vpack.c.bf16 %v927_v61, %v927_v61  ;;  %3627 = vrcp.f32 %v895_v11 }
 0x30a   : > { %v1041_v23 = vunpack.c.l.b16 %v947_v56 }
 0x30b   : > { %v1000_v15 = vunpack.c.l.b16 %v943_v2 }
 0x30d   : > { %v3624_v19 = vpop.eup %3623 }
 0x30e   : > { %v3626_v13 = vpop.eup %3625  ;;  %v932_v48 = vmul.f32 %v3624_v19, %v4581_v18 }
 0x30f   : > { %v928_v44 = vmul.f32 %v3626_v13, %v4583_v36  ;;  %v3628_v9 = vpop.eup %3627 }
 0x310   : > { %1592 = vrot.lane.b32.xlu1 %v4322_v57, %s4050_s11  ;;  %v948_v53 = vpack.c.bf16 %v932_v48, %v932_v48  ;;  %v933_v62 = vmul.f32 %v3628_v9, %v4575_v27 }
 0x311   : > { %v944_v49 = vpack.c.bf16 %v928_v44, %v928_v44 }
 0x312   : > { %v1042_v22 = vunpack.c.l.b16 %v948_v53  ;;  %v949_v35 = vpack.c.bf16 %v933_v62, %v933_v62 }
 0x313   : > { %v1001_v34 = vunpack.c.l.b16 %v944_v49 }
 0x314   : > { %v1044_v28 = vpack.c.b16 %v1042_v22, %v1041_v23  ;;  %v1080_v19 = vunpack.c.l.b16 %v949_v35 }
 0x315   : > { %v1003_v32 = vpack.c.b16 %v1001_v34, %v1000_v15  ;;  %1759 = vrot.lane.b32.xlu2 %v4355_v12, %s4052_s29 }
 0x316   : > { %3338 = vmatmul.msk.bf16.gmra.mxu1 %vm402_vm0, %v1044_v28 }
 0x317   : > { %3336 = vmatmul.msk.bf16.gmra.mxu3 %vm402_vm0, %v1003_v32 }
 0x319   : > { %v4660_v25 = vpop.permute.xlu0 %1228 }
 0x31d   : > { %1590 = vrot.lane.b32.xlu2 %v4338_v4, %s4050_s11 }
 0x31f   : > { %v4664_v18 = vpop.permute.xlu1 %1230 }
 0x321   : > { %v1274_v36 = vpop.permute.xlu0 %1273 }
 0x322   : > { %v1285_v46 = vsel %vm564_vm1, %v1274_v36, 0 }
 0x323   : > { %1293 = vmatpush.bf16.xpose.msra.mxu3 %v1285_v46 }
 0x326   : > { %3343 = vmatmul.msk.bf16.vlgmr.msra.gmra.mxu1 %vm564_vm1, %v4622_v17 }
 0x327   : > { %3341 = vmatmul.msk.bf16.vlgmr.msrb.gmra.mxu3 %vm564_vm1, %v4396_v54  ;;  %v1272_v43 = vpop.permute.xlu1 %1271 }
 0x328   : > { %v1282_v30 = vsel %vm564_vm1, %v1272_v43, 0 }
 0x329   : > { %v1268_v6 = vpop.permute.xlu0 %1267 }
 0x32b   : > { %1294 = vmatpush.bf16.xpose.msra.mxu3 %v1282_v30 }
 0x32f   : > { %v1270_v41 = vpop.permute.xlu1 %1269  ;;  %v898_v29 = vpop.xlane.xlu2 %897 }
 0x330   : > { %3629 = vrcp.f32 %v898_v29 }
 0x331   : > { %v1511_v63 = vpop.permute.xlu0 %1510 }
 0x332   : > { %1526 = vmatpush.bf16.msrb.mxu0 %v1511_v63 }
 0x336   : > { %3344 = vmatmul.msk.bf16.gmra.mxu1 %vm564_vm1, %v1192_v55  ;;  %v3630_v17 = vpop.eup %3629 }
 0x337   : > { %3342 = vmatmul.msk.bf16.gmra.mxu3 %vm564_vm1, %v4401_v59  ;;  %v1766_v54 = vpop.permute.xlu1 %1765  ;;  %v934_v5 = vmul.f32 %v3630_v17, %v4602_v0  ;;  %v1509_v21 = vpop.permute.xlu2 %1508 }
 0x338   : > { %v1777_v11 = vsel %vm564_vm1, %v1766_v54, 0  ;;  %1527 = vmatpush.bf16.msrb.mxu0 %v1509_v21 }
 0x339   : > { %v1764_v42 = vpop.permute.xlu0 %1763  ;;  %v950_v61 = vpack.c.bf16 %v934_v5, %v934_v5 }
 0x33a   : > { %v1774_v59 = vsel %vm564_vm1, %v1764_v42, 0 }
 0x33b   : > { %v1081_v13 = vunpack.c.l.b16 %v950_v61 }
 0x33c   : > { %1785 = vmatpush.bf16.xpose.msra.mxu0 %v1777_v11 }
 0x33d   : > { %v1084_v27 = vpack.c.b16 %v1081_v13, %v1080_v19 }
 0x33f   : > { %v1552_v48 = vpop.permute.xlu1 %1551  ;;  %3339 = vmatmul.msk.bf16.vlgmr.msrb.gmra.mxu2 %vm402_vm0, %v1084_v27 }
 0x340   : > { %1567 = vmatpush.bf16.msrb.mxu1 %v1552_v48 }
 0x341   : > { %v1550_v56 = vpop.permute.xlu0 %1549 }
 0x344   : > { %1786 = vmatpush.bf16.xpose.msra.mxu0 %v1774_v59  ;;  %1568 = vmatpush.bf16.msrb.mxu1 %v1550_v56 }
 0x347   : > { %3347 = vmatmul.msk.bf16.vlgmr.msra.gmra.mxu3 %vm564_vm1, %v1268_v6 }
 0x357   : > { %3348 = vmatmul.msk.bf16.gmra.mxu3 %vm564_vm1, %v1270_v41 }
 0x36a   : > { %v901_v0 = vpop.xlane.xlu1 %900 }
 0x36b   : > { %3631 = vrcp.f32 %v901_v0 }
 0x370   : > { %v904_v44 = vpop.xlane.xlu2 %903 }
 0x371   : > { %v3632_v2 = vpop.eup %3631  ;;  %3633 = vrcp.f32 %v904_v44 }
 0x372   : > { %v935_v53 = vmul.f32 %v3632_v2, %v4630_v45 }
 0x374   : > { %v951_v15 = vpack.c.bf16 %v935_v53, %v935_v53 }
 0x376   : > { %v1082_v55 = vunpack.c.l.b16 %v951_v15 }
 0x377   : > { %v3634_v49 = vpop.eup %3633 }
 0x378   : > { %v936_v22 = vmul.f32 %v3634_v49, %v4637_v52  ;;  %v4684_v32 = vpop.permute.xlu2 %1759 }
 0x379   : > { %v1025_v23 = vpop.f32.mrf.mxu3 }
 0x37a   : > { %v1121_v34 = vpack.c.bf16 %v1025_v23, %v1025_v23  ;;  %v952_v28 = vpack.c.bf16 %v936_v22, %v936_v22 }
 0x37b   : > { %v984_v36 = vpop.f32.mrf.mxu2 }
 0x37c   : > { %1138 = vst.msk [vmem:[#allocation2 + $0x10] sm:$0xf] %vm1133_vm2, %v1121_v34  ;;  %v1117_v46 = vpack.c.bf16 %v984_v36, %v984_v36  ;;  %v1083_v6 = vunpack.c.l.b16 %v952_v28 }
 0x37d   : > { %v1066_v43 = vpop.f32.mrf.mxu1 }
 0x37e   : > { %v1125_v30 = vpack.c.bf16 %v1066_v43, %v1066_v43  ;;  %1134 = vst.msk [vmem:[#allocation2] sm:$0xf] %vm1133_vm2, %v1117_v46  ;;  %v1085_v45 = vpack.c.b16 %v1083_v6, %v1082_v55 }
 0x380   : > { %1142 = vst.msk [vmem:[#allocation2 + $0x20] sm:$0xf] %vm1133_vm2, %v1125_v30  ;;  %3340 = vmatmul.msk.bf16.gmra.mxu2 %vm402_vm0, %v1085_v45  ;;  %v1591_v17 = vpop.permute.xlu2 %1590 }
 0x381   : > { %v1027_v52 = vpop.f32.mrf.mxu3 }
 0x382   : > { %v1122_v41 = vpack.c.bf16 %v1027_v52, %v1027_v52  ;;  %v1593_v29 = vpop.permute.xlu1 %1592 }
 0x383   : > { %1608 = vmatpush.bf16.msrb.mxu2 %v1593_v29  ;;  %v986_v9 = vpop.f32.mrf.mxu2 }
 0x384   : > { %1139 = vst.msk [vmem:[#allocation2 + $0x14] sm:$0xf] %vm1133_vm2, %v1122_v41  ;;  %v1118_v63 = vpack.c.bf16 %v986_v9, %v986_v9 }
 0x385   : > { %v1068_v62 = vpop.f32.mrf.mxu1 }
 0x386   : > { %v1126_v54 = vpack.c.bf16 %v1068_v62, %v1068_v62  ;;  %1135 = vst.msk [vmem:[#allocation2 + $0x4] sm:$0xf] %vm1133_vm2, %v1118_v63 }
 0x387   : > { %1609 = vmatpush.bf16.msrb.mxu2 %v1591_v17 }
 0x388   : > { %1143 = vst.msk [vmem:[#allocation2 + $0x24] sm:$0xf] %vm1133_vm2, %v1126_v54 }
 0x38b   : > { %v989_v35 = vpop.f32.mrf.mxu2 }
 0x38c   : > { %v1119_v5 = vpack.c.bf16 %v989_v35, %v989_v35 }
 0x38e   : > { %1136 = vst.msk [vmem:[#allocation2 + $0x8] sm:$0xf] %vm1133_vm2, %v1119_v5 }
 0x390   : > { %3345 = vmatmul.msk.bf16.vlgmr.msra.gmra.mxu2 %vm564_vm1, %v4660_v25 }
 0x393   : > { %v1071_v11 = vpop.f32.mrf.mxu1  ;;  %v991_v21 = vpop.f32.mrf.mxu2 }
 0x394   : > { %v1127_v42 = vpack.c.bf16 %v1071_v11, %v1071_v11  ;;  %v1120_v61 = vpack.c.bf16 %v991_v21, %v991_v21 }
 0x396   : > { %1144 = vst.msk [vmem:[#allocation2 + $0x28] sm:$0xf] %vm1133_vm2, %v1127_v42 }
 0x397   : > { %1137 = vst.msk [vmem:[#allocation2 + $0xc] sm:$0xf] %vm1133_vm2, %v1120_v61 }
 0x39a   : > { %v1030_v19 = vpop.f32.mrf.mxu3 }
 0x39b   : > { %v1123_v13 = vpack.c.bf16 %v1030_v19, %v1030_v19  ;;  %v1073_v27 = vpop.f32.mrf.mxu1 }
 0x39c   : > { %v1128_v48 = vpack.c.bf16 %v1073_v27, %v1073_v27 }
 0x39d   : > { %1140 = vst.msk [vmem:[#allocation2 + $0x18] sm:$0xf] %vm1133_vm2, %v1123_v13 }
 0x39e   : > { %1145 = vst.msk [vmem:[#allocation2 + $0x2c] sm:$0xf] %vm1133_vm2, %v1128_v48 }
 0x3a0   : > { %3346 = vmatmul.msk.bf16.gmra.mxu2 %vm564_vm1, %v4664_v18 }
 0x3a2   : > { %v1032_v25 = vpop.f32.mrf.mxu3 }
 0x3a3   : > { %v1124_v56 = vpack.c.bf16 %v1032_v25, %v1032_v25  ;;  %v1218_v59 = vpop.f32.mrf.mxu1 }
 0x3a4   : > { %v4703_v0 = vadd.f32 %v1218_v59, %v4420_v14 }
 0x3a5   : > { %1141 = vst.msk [vmem:[#allocation2 + $0x1c] sm:$0xf] %vm1133_vm2, %v1124_v56 }
 0x3a6   : > { %v1318_v44 = vsel %vm402_vm0, %v4703_v0, -inf }
 0x3a7   : > { %1319 = vmax.xlane.f32.xlu2 %v1318_v44 }
 0x3aa   : > { %v1179_v2 = vpop.f32.mrf.mxu3 }
 0x3ab   : > { %v4709_v53 = vadd.f32 %v1179_v2, %v4413_v7  ;;  %v1220_v49 = vpop.f32.mrf.mxu1 }
 0x3ac   : > { %v4712_v23 = vadd.f32 %v1220_v49, %v4429_v1 }
 0x3ad   : > { %v1306_v18 = vsel %vm402_vm0, %v4709_v53, -inf }
 0x3ae   : > { %1307 = vmax.xlane.f32.xlu0 %v1306_v18  ;;  %v1321_v14 = vsel %vm402_vm0, %v4712_v23, -inf }
 0x3af   : > { %1322 = vmax.xlane.f32.xlu1 %v1321_v14 }
 0x3b2   : > { %v1181_v22 = vpop.f32.mrf.mxu3 }
 0x3b3   : > { %v4719_v15 = vadd.f32 %v1181_v22, %v4427_v50  ;;  %v1223_v28 = vpop.f32.mrf.mxu1 }
 0x3b4   : > { %v4729_v46 = vadd.f32 %v1223_v28, %v4452_v38 }
 0x3b5   : > { %v1309_v7 = vsel %vm402_vm0, %v4719_v15, -inf }
 0x3b6   : > { %1310 = vmax.xlane.f32.xlu2 %v1309_v7  ;;  %v1324_v30 = vsel %vm402_vm0, %v4729_v46, -inf }
 0x3ba   : > { %v1184_v34 = vpop.f32.mrf.mxu3 }
 0x3bb   : > { %v4724_v1 = vadd.f32 %v1184_v34, %v4434_v26  ;;  %v1225_v45 = vpop.f32.mrf.mxu1 }
 0x3bc   : > { %v4740_v38 = vadd.f32 %v1225_v45, %v4473_v51 }
 0x3bd   : > { %v1312_v36 = vsel %vm402_vm0, %v4724_v1, -inf }
 0x3be   : > { %1313 = vmax.xlane.f32.xlu1 %v1312_v36 }
 0x3c2   : > { %v1186_v43 = vpop.f32.mrf.mxu3  ;;  %v1107_v55 = vpop.f32.mrf.mxu2 }
 0x3c3   : > { %v4732_v50 = vadd.f32 %v1186_v43, %v4467_v47  ;;  %v1129_v6 = vpack.c.bf16 %v1107_v55, %v1107_v55  ;;  %v1327_v47 = vsel %vm402_vm0, %v4740_v38, -inf }
 0x3c5   : > { %v1315_v26 = vsel %vm402_vm0, %v4732_v50, -inf  ;;  %1146 = vst.msk [vmem:[#allocation2 + $0x30] sm:$0xf] %vm1133_vm2, %v1129_v6 }
 0x3c6   : > { %1325 = vmax.xlane.f32.xlu1 %v1324_v30  ;;  %1316 = vmax.xlane.f32.xlu0 %v1315_v26 }
 0x3ca   : > { %v1109_v52 = vpop.f32.mrf.mxu2  ;;  %v1296_v29 = vpop.f32.mrf.mxu3 }
 0x3cb   : > { %v1130_v41 = vpack.c.bf16 %v1109_v52, %v1109_v52  ;;  %v4748_v9 = vadd.f32 %v1296_v29, %v4488_v8 }
 0x3cd   : > { %1147 = vst.msk [vmem:[#allocation2 + $0x34] sm:$0xf] %vm1133_vm2, %v1130_v41  ;;  %v1342_v51 = vsel %vm402_vm0, %v4748_v9, -inf }
 0x3ce   : > { %1328 = vmax.xlane.f32.xlu0 %v1327_v47 }
 0x3d2   : > { %v1298_v17 = vpop.f32.mrf.mxu3 }
 0x3d3   : > { %v4754_v54 = vadd.f32 %v1298_v17, %v4495_v16 }
 0x3d5   : > { %v1345_v8 = vsel %vm402_vm0, %v4754_v54, -inf }
 0x3df   : > { %1804 = vrot.lane.b32.xlu1 %v4306_v31, %s4051_s26 }
 0x403   : > { %v1112_v63 = vpop.f32.mrf.mxu2 }
 0x404   : > { %v1131_v62 = vpack.c.bf16 %v1112_v63, %v1112_v63 }
 0x406   : > { %1148 = vst.msk [vmem:[#allocation2 + $0x38] sm:$0xf] %vm1133_vm2, %v1131_v62 }
 0x409   : > { %1343 = vmax.xlane.f32.xlu1 %v1342_v51 }
 0x40b   : > { %v1114_v35 = vpop.f32.mrf.mxu2 }
 0x40c   : > { %v1132_v5 = vpack.c.bf16 %v1114_v35, %v1114_v35 }
 0x40e   : > { %1149 = vst.msk [vmem:[#allocation2 + $0x3c] sm:$0xf] %vm1133_vm2, %v1132_v5 }
 0x411   : > { %1346 = vmax.xlane.f32.xlu1 %v1345_v8 }
 0x413   : > { %v1257_v11 = vpop.f32.mrf.mxu2 }
 0x414   : > { %v4760_v21 = vadd.f32 %v1257_v11, %v4406_v39  ;;  %v1301_v39 = vpop.f32.mrf.mxu3 }
 0x416   : > { %v1330_v42 = vsel %vm402_vm0, %v4760_v21, -inf }
 0x417   : > { %1331 = vmax.xlane.f32.xlu0 %v1330_v42 }
 0x41a   : > { %v1320_v13 = vpop.xlane.xlu2 %1319 }
 0x41b   : > { %v1259_v61 = vpop.f32.mrf.mxu2  ;;  %v1358_v18 = vsub.f32 %v4703_v0, %v1320_v13 }
 0x41c   : > { %v4765_v16 = vadd.f32 %v1259_v61, %v4450_v37  ;;  %v4776_v37 = vadd.f32 %v1301_v39, %v4504_v24  ;;  %v1303_v22 = vpop.f32.mrf.mxu3 }
 0x41d   : > { %v1378_v7 = vmul.f32 1.442695, %v1358_v18  ;;  %v4790_v28 = vadd.f32 %v1303_v22, %v4515_v40 }
 0x41e   : > { %v1333_v19 = vsel %vm402_vm0, %v4765_v16, -inf  ;;  %v1348_v24 = vsel %vm402_vm0, %v4776_v37, -inf }
 0x41f   : > { %1334 = vmax.xlane.f32.xlu2 %v1333_v19  ;;  %v1351_v36 = vsel %vm402_vm0, %v4790_v28, -inf }
 0x421   : > { %v1308_v27 = vpop.xlane.xlu0 %1307 }
 0x422   : > { %v1354_v56 = vsub.f32 %v4709_v53, %v1308_v27  ;;  %v1323_v0 = vpop.xlane.xlu1 %1322 }
 0x423   : > { %v1262_v48 = vpop.f32.mrf.mxu2 }
 0x424   : > { %v4770_v25 = vadd.f32 %v1262_v48, %v4446_v33  ;;  %v1370_v44 = vmul.f32 1.442695, %v1354_v56 }
 0x426   : > { %v1336_v59 = vsel %vm402_vm0, %v4770_v25, -inf  ;;  %3635 = vpow2.f32 %v1370_v44 }
 0x427   : > { %1337 = vmax.xlane.f32.xlu2 %v1336_v59  ;;  %3637 = vpow2.f32 %v1378_v7 }
 0x429   : > { %v1311_v2 = vpop.xlane.xlu2 %1310 }
 0x42a   : > { %v1355_v53 = vsub.f32 %v4719_v15, %v1311_v2  ;;  %v1359_v15 = vsub.f32 %v4712_v23, %v1323_v0 }
 0x42b   : > { %v1264_v49 = vpop.f32.mrf.mxu2  ;;  %1761 = vrot.lane.b32.xlu0 %v4367_v20, %s4052_s29 }
 0x42c   : > { %v4782_v33 = vadd.f32 %v1264_v49, %v4471_v10  ;;  %v1372_v34 = vmul.f32 1.442695, %v1355_v53  ;;  %v4792_v10 = vpop.eup %3635  ;;  %v1380_v55 = vmul.f32 1.442695, %v1359_v15 }
 0x42d   : > { %v1402_v43 = vsel %vm402_vm0, %v4792_v10, 0.0  ;;  %v4799_v6 = vpop.eup %3637 }
 0x42e   : > { %v1339_v14 = vsel %vm402_vm0, %v4782_v33, -inf  ;;  %3639 = vpow2.f32 %v1372_v34  ;;  %v1414_v45 = vsel %vm402_vm0, %v4799_v6, 0.0 }
 0x42f   : > { %1340 = vmax.xlane.f32.xlu1 %v1339_v14  ;;  %1349 = vmax.xlane.f32.xlu2 %v1348_v24  ;;  %3641 = vpow2.f32 %v1380_v55 }
 0x431   : > { %v1314_v40 = vpop.xlane.xlu1 %1313 }
 0x432   : > { %v1356_v26 = vsub.f32 %v4724_v1, %v1314_v40 }
 0x434   : > { %v4801_v30 = vpop.eup %3639  ;;  %v1374_v41 = vmul.f32 1.442695, %v1356_v26 }
 0x435   : > { %v1405_v23 = vsel %vm402_vm0, %v4801_v30, 0.0  ;;  %v4808_v47 = vpop.eup %3641 }
 0x436   : > { %3643 = vpow2.f32 %v1374_v41  ;;  %v1417_v63 = vsel %vm402_vm0, %v4808_v47, 0.0 }
 0x437   : > { %1352 = vmax.xlane.f32.xlu1 %v1351_v36  ;;  %1403 = vadd.xlane.f32.xlu2 %v1402_v43 }
 0x439   : > { %v1317_v52 = vpop.xlane.xlu0 %1316  ;;  %v1326_v1 = vpop.xlane.xlu1 %1325 }
 0x43a   : > { %v1357_v29 = vsub.f32 %v4732_v50, %v1317_v52  ;;  %v1360_v11 = vsub.f32 %v4729_v46, %v1326_v1 }
 0x43c   : > { %v1376_v62 = vmul.f32 1.442695, %v1357_v29  ;;  %v4813_v51 = vpop.eup %3643  ;;  %v1382_v42 = vmul.f32 1.442695, %v1360_v11 }
 0x43d   : > { %v1408_v17 = vsel %vm402_vm0, %v4813_v51, 0.0 }
 0x43e   : > { %3645 = vpow2.f32 %v1376_v62 }
 0x43f   : > { %1406 = vadd.xlane.f32.xlu1 %v1405_v23  ;;  %1415 = vadd.xlane.f32.xlu2 %v1414_v45  ;;  %3647 = vpow2.f32 %v1382_v42 }
 0x441   : > { %v1329_v61 = vpop.xlane.xlu0 %1328 }
 0x442   : > { %v1361_v19 = vsub.f32 %v4740_v38, %v1329_v61 }
 0x444   : > { %v4817_v5 = vpop.eup %3645  ;;  %v1384_v13 = vmul.f32 1.442695, %v1361_v19 }
 0x445   : > { %v1411_v50 = vsel %vm402_vm0, %v4817_v5, 0.0  ;;  %v4828_v48 = vpop.eup %3647 }
 0x446   : > { %3649 = vpow2.f32 %v1384_v13  ;;  %v1420_v59 = vsel %vm402_vm0, %v4828_v48, 0.0  ;;  %v5791_v13 = vld [vmem:[#allocation17_spill] sm:$0xff] }
 0x447   : > { %1418 = vadd.xlane.f32.xlu1 %v1417_v63 }
 0x44c   : > { %v4833_v46 = vpop.eup %3649 }
 0x44d   : > { %v1423_v18 = vsel %vm402_vm0, %v4833_v46, 0.0 }
 0x44f   : > { %1409 = vadd.xlane.f32.xlu1 %v1408_v17  ;;  %v5790_v17 = vld [vmem:[#allocation21_spill] sm:$0xff] }
 0x451   : > { %v1805_v35 = vpop.permute.xlu1 %1804 }
 0x452   : > { %v1816_v8 = vsel %vm564_vm1, %v1805_v35, 0 }
 0x453   : > { %1824 = vmatpush.bf16.xpose.msra.mxu1 %v1816_v8 }
 0x455   : > { %1412 = vadd.xlane.f32.xlu0 %v1411_v50 }
 0x457   : > { %1843 = vrot.lane.b32.xlu2 %v4322_v57, %s4051_s26 }
 0x468   : > { %1802 = vrot.lane.b32.xlu1 %v4324_v60, %s4051_s26 }
 0x47c   : > { %v1344_v27 = vpop.xlane.xlu1 %1343 }
 0x47d   : > { %v1366_v39 = vsub.f32 %v4748_v9, %v1344_v27  ;;  %v5792_v27 = vld [vmem:[#allocation20_spill] sm:$0xff] }
 0x47f   : > { %v1394_v56 = vmul.f32 1.442695, %v1366_v39 }
 0x480   : > { %1421 = vadd.xlane.f32.xlu2 %v1420_v59 }
 0x481   : > { %3651 = vpow2.f32 %v1394_v56 }
 0x484   : > { %v1347_v44 = vpop.xlane.xlu1 %1346 }
 0x485   : > { %v1367_v2 = vsub.f32 %v4754_v54, %v1347_v44 }
 0x487   : > { %v4836_v49 = vpop.eup %3651  ;;  %v1396_v38 = vmul.f32 1.442695, %v1367_v2 }
 0x488   : > { %v1438_v9 = vsel %vm402_vm0, %v4836_v49, 0.0  ;;  %1424 = vadd.xlane.f32.xlu2 %v1423_v18 }
 0x489   : > { %3653 = vpow2.f32 %v1396_v38  ;;  %1439 = vadd.xlane.f32.xlu0 %v1438_v9 }
 0x48a   : > { %v1332_v53 = vpop.xlane.xlu0 %1331 }
 0x48b   : > { %v1362_v14 = vsub.f32 %v4760_v21, %v1332_v53  ;;  %v5793_v53 = vld [vmem:[#allocation22_spill] sm:$0xff] }
 0x48d   : > { %v1386_v24 = vmul.f32 1.442695, %v1362_v14 }
 0x48f   : > { %v4843_v22 = vpop.eup %3653  ;;  %3655 = vpow2.f32 %v1386_v24 }
 0x490   : > { %v1441_v54 = vsel %vm402_vm0, %v4843_v22, 0.0 }
 0x492   : > { %v1335_v7 = vpop.xlane.xlu2 %1334  ;;  %1442 = vadd.xlane.f32.xlu1 %v1441_v54 }
 0x493   : > { %v1363_v34 = vsub.f32 %v4765_v16, %v1335_v7 }
 0x495   : > { %v4848_v0 = vpop.eup %3655  ;;  %v1388_v15 = vmul.f32 1.442695, %v1363_v34 }
 0x496   : > { %v1426_v36 = vsel %vm402_vm0, %v4848_v0, 0.0 }
 0x497   : > { %3657 = vpow2.f32 %v1388_v15  ;;  %1427 = vadd.xlane.f32.xlu2 %v1426_v36 }
 0x49a   : > { %v1338_v21 = vpop.xlane.xlu2 %1337 }
 0x49b   : > { %v1364_v43 = vsub.f32 %v4770_v25, %v1338_v21 }
 0x49d   : > { %v4853_v55 = vpop.eup %3657  ;;  %v1390_v40 = vmul.f32 1.442695, %v1364_v43  ;;  %v1762_v44 = vpop.permute.xlu0 %1761 }
 0x49e   : > { %v1429_v26 = vsel %vm402_vm0, %v4853_v55, 0.0 }
 0x49f   : > { %3659 = vpow2.f32 %v1390_v40  ;;  %1430 = vadd.xlane.f32.xlu0 %v1429_v26 }
 0x4a2   : > { %v1350_v16 = vpop.xlane.xlu2 %1349  ;;  %v4857_v23 = vpop.xlane.xlu1 %1340 }
 0x4a3   : > { %v1368_v15 = vsub.f32 %v4776_v37, %v1350_v16  ;;  %v5795_v16 = vld [vmem:[#allocation16_spill] sm:$0xff] }
 0x4a5   : > { %v4859_v45 = vpop.eup %3659  ;;  %v1398_v40 = vmul.f32 1.442695, %v1368_v15 }
 0x4a6   : > { %v1432_v52 = vsel %vm402_vm0, %v4859_v45, 0.0 }
 0x4a7   : > { %1433 = vadd.xlane.f32.xlu0 %v1432_v52 }
 0x4aa   : > { %v1404_v41 = vpop.xlane.xlu2 %1403  ;;  %v1353_v29 = vpop.xlane.xlu1 %1352 }
 0x4ab   : > { %1633 = vrot.lane.b32.xlu1 %v4336_v3, %s4050_s11  ;;  %3661 = vrcp.f32 %v1404_v41  ;;  %v1369_v52 = vsub.f32 %v4790_v28, %v1353_v29  ;;  %v5794_v41 = vld [vmem:[#allocation18_spill] sm:$0xff] }
 0x4af   : > { %1841 = vrot.lane.b32.xlu2 %v4338_v4, %s4051_s26 }
 0x4b1   : > { %v3662_v62 = vpop.eup %3661 }
 0x4b2   : > { %v1416_v25 = vpop.xlane.xlu2 %1415  ;;  %v1407_v63 = vpop.xlane.xlu1 %1406  ;;  %v1466_v1 = vmul.f32 %v3662_v62, %v4792_v10  ;;  %v1365_v62 = vsub.f32 %v4782_v33, %v4857_v23 }
 0x4b3   : > { %1837 = vrot.lane.b32.xlu1 %v4284_v58, %s4052_s29  ;;  %3663 = vrcp.f32 %v1407_v63 }
 0x4b4   : > { %3665 = vrcp.f32 %v1416_v25  ;;  %v1482_v42 = vpack.c.bf16 %v1466_v1, %v1466_v1  ;;  %v1400_v1 = vmul.f32 1.442695, %v1369_v52  ;;  %v1392_v37 = vmul.f32 1.442695, %v1365_v62 }
 0x4b6   : > { %v1502_v56 = vunpack.c.l.b16 %v1482_v42  ;;  %v5796_v42 = vld [vmem:[#allocation23_spill] sm:$0xff] }
 0x4b7   : > { %1631 = vrot.lane.b32.xlu2 %v5790_v17, %s4050_s11  ;;  %s3466_s11 = sshll.u32 %s4117_s25, 7 }
 0x4b9   : > { %v3664_v35 = vpop.eup %3663 }
 0x4ba   : > { %v1844_v8 = vpop.permute.xlu2 %1843  ;;  %v1419_v50 = vpop.xlane.xlu1 %1418  ;;  %v1467_v61 = vmul.f32 %v3664_v35, %v4801_v30 }
 0x4bb   : > { %v3666_v11 = vpop.eup %3665  ;;  %v1855_v19 = vsel %vm564_vm1, %v1844_v8, 0  ;;  %3667 = vrcp.f32 %v1419_v50  ;;  %1798 = vrot.lane.b32.xlu0 %v5791_v13, %s4052_s29  ;;  %1800 = vrot.lane.b32.xlu1 %v5792_v27, %s4052_s29 }
 0x4bc   : > { %1863 = vmatpush.bf16.xpose.msra.mxu2 %v1855_v19  ;;  %v1483_v10 = vpack.c.bf16 %v1467_v61, %v1467_v61  ;;  %v1470_v39 = vmul.f32 %v3666_v11, %v4799_v6 }
 0x4be   : > { %v1503_v59 = vunpack.c.l.b16 %v1483_v10  ;;  %v1486_v18 = vpack.c.bf16 %v1470_v39, %v1470_v39 }
 0x4c0   : > { %v1506_v38 = vpack.c.b16 %v1503_v59, %v1502_v56  ;;  %v1543_v24 = vunpack.c.l.b16 %v1486_v18 }
 0x4c1   : > { %v3668_v2 = vpop.eup %3667 }
 0x4c2   : > { %v1471_v30 = vmul.f32 %v3668_v2, %v4808_v47  ;;  %v1410_v9 = vpop.xlane.xlu1 %1409  ;;  %3349 = vmatmul.msk.bf16.vlgmr.msrb.gmra.mxu0 %vm402_vm0, %v1506_v38 }
 0x4c3   : > { %3669 = vrcp.f32 %v1410_v9  ;;  %1839 = vrot.lane.b32.xlu1 %v5793_v53, %s4052_s29 }
 0x4c4   : > { %v1487_v14 = vpack.c.bf16 %v1471_v30, %v1471_v30 }
 0x4c6   : > { %v1544_v54 = vunpack.c.l.b16 %v1487_v14 }
 0x4c8   : > { %v1547_v7 = vpack.c.b16 %v1544_v54, %v1543_v24  ;;  %v1413_v6 = vpop.xlane.xlu0 %1412 }
 0x4c9   : > { %v3670_v34 = vpop.eup %3669  ;;  %3671 = vrcp.f32 %v1413_v6 }
 0x4ca   : > { %3351 = vmatmul.msk.bf16.vlgmr.msrb.gmra.mxu1 %vm402_vm0, %v1547_v7  ;;  %v1468_v47 = vmul.f32 %v3670_v34, %v4813_v51  ;;  %3673 = vpow2.f32 %v1398_v40 }
 0x4cb   : > { %1882 = vrot.lane.b32.xlu1 %v4336_v3, %s4051_s26  ;;  %3675 = vpow2.f32 %v1400_v1 }
 0x4cc   : > { %v1484_v43 = vpack.c.bf16 %v1468_v47, %v1468_v47  ;;  %3677 = vpow2.f32 %v1392_v37 }
 0x4ce   : > { %v1504_v25 = vunpack.c.l.b16 %v1484_v43 }
 0x4cf   : > { %v3672_v36 = vpop.eup %3671 }
 0x4d0   : > { %v1469_v21 = vmul.f32 %v3672_v36, %v4817_v5  ;;  %v4898_v29 = vpop.eup %3673 }
 0x4d1   : > { %v1444_v33 = vsel %vm402_vm0, %v4898_v29, 0.0  ;;  %v4902_v23 = vpop.eup %3675 }
 0x4d2   : > { %v1485_v26 = vpack.c.bf16 %v1469_v21, %v1469_v21  ;;  %v4906_v35 = vpop.eup %3677  ;;  %v1447_v8 = vsel %vm402_vm0, %v4902_v23, 0.0 }
 0x4d3   : > { %1876 = vrot.lane.b32.xlu1 %v5794_v41, %s4052_s29  ;;  %v1435_v50 = vsel %vm402_vm0, %v4906_v35, 0.0 }
 0x4d4   : > { %v1505_v63 = vunpack.c.l.b16 %v1485_v26 }
 0x4d6   : > { %v1507_v51 = vpack.c.b16 %v1505_v63, %v1504_v25 }
 0x4d8   : > { %3350 = vmatmul.msk.bf16.gmra.mxu0 %vm402_vm0, %v1507_v51 }
 0x4da   : > { %v1803_v5 = vpop.permute.xlu1 %1802 }
 0x4db   : > { %2117 = vrot.lane.b32.xlu1 %v5795_v16, %s4053_s18  ;;  %v1813_v28 = vsel %vm564_vm1, %v1803_v5, 0 }
 0x4dc   : > { %1825 = vmatpush.bf16.xpose.msra.mxu1 %v1813_v28 }
 0x4e0   : > { %1445 = vadd.xlane.f32.xlu2 %v1444_v33 }
 0x4e3   : > { %2160 = vrot.lane.b32.xlu1 %v4306_v31, %s4053_s18 }
 0x4e5   : > { %1448 = vadd.xlane.f32.xlu0 %v1447_v8 }
 0x4e8   : > { %1436 = vadd.xlane.f32.xlu2 %v1435_v50  ;;  %3357 = vmatmul.msk.bf16.vlgmr.msra.gmra.mxu0 %vm564_vm1, %v4684_v32 }
 0x4eb   : > { %2370 = vrot.lane.b32.xlu1 %v4367_v20, %s4054_s7  ;;  %v5797_v20 = vld [vmem:[#allocation19_spill] sm:$0xff] }
 0x4f3   : > { %v1422_v11 = vpop.xlane.xlu2 %1421  ;;  %2411 = vrot.lane.b32.xlu1 %v4324_v60, %s4055_s15 }
 0x4f4   : > { %3679 = vrcp.f32 %v1422_v11 }
 0x4f8   : > { %3358 = vmatmul.msk.bf16.gmra.mxu0 %vm564_vm1, %v1762_v44 }
 0x4f9   : > { %1878 = vrot.lane.b32.xlu0 %v5796_v42, %s4052_s29 }
 0x4fa   : > { %v3680_v19 = vpop.eup %3679 }
 0x4fb   : > { %v1425_v61 = vpop.xlane.xlu2 %1424  ;;  %v1472_v32 = vmul.f32 %v3680_v19, %v4828_v48 }
 0x4fc   : > { %3681 = vrcp.f32 %v1425_v61  ;;  %v1440_v38 = vpop.xlane.xlu0 %1439 }
 0x4fd   : > { %v1488_v56 = vpack.c.bf16 %v1472_v32, %v1472_v32 }
 0x4ff   : > { %v1545_v44 = vunpack.c.l.b16 %v1488_v56 }
 0x500   : > { %1880 = vrot.lane.b32.xlu2 %v5790_v17, %s4051_s26 }
 0x501   : > { %2119 = vrot.lane.b32.xlu0 %v5797_v20, %s4053_s18 }
 0x502   : > { %v3682_v10 = vpop.eup %3681 }
 0x503   : > { %v1473_v39 = vmul.f32 %v3682_v10, %v4833_v46 }
 0x505   : > { %v1489_v59 = vpack.c.bf16 %v1473_v39, %v1473_v39  ;;  %v1443_v30 = vpop.xlane.xlu1 %1442 }
 0x507   : > { %v1546_v2 = vunpack.c.l.b16 %v1489_v59 }
 0x508   : > { %2374 = vrot.lane.b32.xlu2 %v5797_v20, %s4055_s15 }
 0x509   : > { %2372 = vrot.lane.b32.xlu0 %v5795_v16, %s4055_s15  ;;  %v1548_v48 = vpack.c.b16 %v1546_v2, %v1545_v44 }
 0x50a   : > { %v1428_v18 = vpop.xlane.xlu2 %1427 }
 0x50b   : > { %3352 = vmatmul.msk.bf16.gmra.mxu1 %vm402_vm0, %v1548_v48  ;;  %3683 = vrcp.f32 %v1428_v18 }
 0x50c   : > { %3685 = vrcp.f32 %v1443_v30 }
 0x50d   : > { %3687 = vrcp.f32 %v1440_v38 }
 0x510   : > { %2158 = vrot.lane.b32.xlu2 %v4324_v60, %s4053_s18 }
 0x511   : > { %2201 = vrot.lane.b32.xlu0 %v4322_v57, %s4053_s18  ;;  %v3684_v14 = vpop.eup %3683 }
 0x512   : > { %v1842_v46 = vpop.permute.xlu2 %1841  ;;  %v1431_v9 = vpop.xlane.xlu0 %1430  ;;  %v1474_v6 = vmul.f32 %v3684_v14, %v4848_v0 }
 0x513   : > { %3689 = vrcp.f32 %v1431_v9  ;;  %v1852_v24 = vsel %vm564_vm1, %v1842_v46, 0  ;;  %v3686_v54 = vpop.eup %3685 }
 0x514   : > { %1864 = vmatpush.bf16.xpose.msra.mxu2 %v1852_v24  ;;  %v3688_v7 = vpop.eup %3687  ;;  %v1479_v34 = vmul.f32 %v3686_v54, %v4843_v22  ;;  %v1490_v36 = vpack.c.bf16 %v1474_v6, %v1474_v6 }
 0x515   : > { %v1478_v15 = vmul.f32 %v3688_v7, %v4836_v49 }
 0x516   : > { %v1495_v43 = vpack.c.bf16 %v1479_v34, %v1479_v34  ;;  %v1584_v25 = vunpack.c.l.b16 %v1490_v36  ;;  %v4969_v36 = vld [vmem:[#allocation9] sm:$0xff] }
 0x517   : > { %v1494_v26 = vpack.c.bf16 %v1478_v15, %v1478_v15 }
 0x518   : > { %2368 = vrot.lane.b32.xlu2 %v4355_v12, %s4054_s7  ;;  %v1626_v22 = vunpack.c.l.b16 %v1495_v43 }
 0x519   : > { %v3690_v47 = vpop.eup %3689  ;;  %2199 = vrot.lane.b32.xlu0 %v4338_v4, %s4053_s18  ;;  %v1625_v12 = vunpack.c.l.b16 %v1494_v26 }
 0x51a   : > { %v1475_v21 = vmul.f32 %v3690_v47, %v4853_v55  ;;  %v1632_v49 = vpop.permute.xlu2 %1631  ;;  %v1434_v51 = vpop.xlane.xlu0 %1433 }
 0x51b   : > { %v1629_v62 = vpack.c.b16 %v1626_v22, %v1625_v12 }
 0x51c   : > { %v1491_v40 = vpack.c.bf16 %v1475_v21, %v1475_v21 }
 0x51d   : > { %v1634_v52 = vpop.permute.xlu1 %1633 }
 0x51e   : > { %v1585_v0 = vunpack.c.l.b16 %v1491_v40  ;;  %1649 = vmatpush.bf16.msrb.mxu3 %v1634_v52 }
 0x520   : > { %v1588_v63 = vpack.c.b16 %v1585_v0, %v1584_v25  ;;  %2413 = vrot.lane.b32.xlu2 %v4306_v31, %s4055_s15  ;;  %v4978_v0 = vld [vmem:[#allocation9 + $0x8] sm:$0xff] }
 0x522   : > { %3353 = vmatmul.msk.bf16.vlgmr.msrb.gmra.mxu2 %vm402_vm0, %v1588_v63  ;;  %1650 = vmatpush.bf16.msrb.mxu3 %v1632_v49 }
 0x525   : > { %3355 = vmatmul.msk.bf16.vlgmr.msrb.gmra.mxu3 %vm402_vm0, %v1629_v62  ;;  %v4949_v55 = vpop.permute.xlu1 %1837 }
 0x52d   : > { %v1799_v1 = vpop.permute.xlu0 %1798  ;;  %v1801_v37 = vpop.permute.xlu1 %1800 }
 0x52e   : > { %3359 = vmatmul.msk.bf16.vlgmr.msra.gmra.mxu1 %vm564_vm1, %v1799_v1 }
 0x535   : > { %v4952_v5 = vpop.permute.xlu1 %1839 }
 0x53d   : > { %v1883_v28 = vpop.permute.xlu1 %1882 }
 0x53e   : > { %v1894_v33 = vsel %vm564_vm1, %v1883_v28, 0  ;;  %3360 = vmatmul.msk.bf16.gmra.mxu1 %vm564_vm1, %v1801_v37 }
 0x53f   : > { %1902 = vmatpush.bf16.xpose.msra.mxu3 %v1894_v33  ;;  %v4956_v8 = vpop.f32.mrf.mxu0 }
 0x545   : > { %v1877_v50 = vpop.permute.xlu1 %1876 }
 0x547   : > { %v4958_v11 = vpop.f32.mrf.mxu0 }
 0x54d   : > { %v2118_v61 = vpop.permute.xlu1 %2117 }
 0x553   : > { %v1446_v19 = vpop.xlane.xlu2 %1445 }
 0x554   : > { %3691 = vrcp.f32 %v1446_v19 }
 0x555   : > { %v4960_v32 = vpop.f32.mrf.mxu0  ;;  %v2161_v10 = vpop.permute.xlu1 %2160  ;;  %3693 = vrcp.f32 %v1434_v51 }
 0x556   : > { %2176 = vmatpush.bf16.msrb.mxu1 %v2161_v10 }
 0x558   : > { %v1449_v39 = vpop.xlane.xlu0 %1448 }
 0x559   : > { %3695 = vrcp.f32 %v1449_v39 }
 0x55a   : > { %v3692_v56 = vpop.eup %3691 }
 0x55b   : > { %v1437_v59 = vpop.xlane.xlu2 %1436  ;;  %v3694_v44 = vpop.eup %3693  ;;  %v1480_v2 = vmul.f32 %v3692_v56, %v4898_v29 }
 0x55c   : > { %3697 = vrcp.f32 %v1437_v59  ;;  %v1476_v18 = vmul.f32 %v3694_v44, %v4859_v45 }
 0x55d   : > { %v4963_v48 = vpop.f32.mrf.mxu0  ;;  %v1496_v46 = vpack.c.bf16 %v1480_v2, %v1480_v2  ;;  %v4991_v37 = vpop.permute.xlu1 %2370 }
 0x55e   : > { %5798 = vst [vmem:[#allocation21_spill] sm:$0xff] %v4963_v48  ;;  %v1492_v7 = vpack.c.bf16 %v1476_v18, %v1476_v18  ;;  %v5007_v18 = vld [vmem:[#allocation9 + $0x20] sm:$0xff] }
 0x55f   : > { %v3696_v38 = vpop.eup %3695  ;;  %v1627_v34 = vunpack.c.l.b16 %v1496_v46 }
 0x560   : > { %v1481_v30 = vmul.f32 %v3696_v38, %v4902_v23  ;;  %v1586_v21 = vunpack.c.l.b16 %v1492_v7 }
 0x562   : > { %v3698_v9 = vpop.eup %3697  ;;  %v1497_v14 = vpack.c.bf16 %v1481_v30, %v1481_v30 }
 0x563   : > { %v1881_v24 = vpop.permute.xlu2 %1880  ;;  %v1477_v54 = vmul.f32 %v3698_v9, %v4906_v35  ;;  %v5014_v9 = vld [vmem:[#allocation9 + $0x18] sm:$0xff] }
 0x564   : > { %v1891_v6 = vsel %vm564_vm1, %v1881_v24, 0  ;;  %v1628_v47 = vunpack.c.l.b16 %v1497_v14 }
 0x565   : > { %v1788_v15 = vpop.f32.mrf.mxu0  ;;  %1903 = vmatpush.bf16.xpose.msra.mxu3 %v1891_v6  ;;  %v1493_v29 = vpack.c.bf16 %v1477_v54, %v1477_v54  ;;  %v5019_v54 = vld [vmem:[#allocation9 + $0x28] sm:$0xff] }
 0x566   : > { %v4972_v45 = vadd.f32 %v4969_v36, %v1788_v15  ;;  %v1630_v23 = vpack.c.b16 %v1628_v47, %v1627_v34  ;;  %v5028_v47 = vld [vmem:[#allocation9 + $0x10] sm:$0xff] }
 0x567   : > { %v1587_v43 = vunpack.c.l.b16 %v1493_v29 }
 0x568   : > { %3356 = vmatmul.msk.bf16.gmra.mxu3 %vm402_vm0, %v1630_v23  ;;  %v1915_v35 = vsel %vm402_vm0, %v4972_v45, -inf  ;;  %v5033_v23 = vld [vmem:[#allocation9 + $0x30] sm:$0xff] }
 0x569   : > { %1916 = vmax.xlane.f32.xlu1 %v1915_v35  ;;  %v1589_v40 = vpack.c.b16 %v1587_v43, %v1586_v21 }
 0x56b   : > { %3354 = vmatmul.msk.bf16.gmra.mxu2 %vm402_vm0, %v1589_v40  ;;  %v2375_v26 = vpop.permute.xlu2 %2374  ;;  %v1879_v52 = vpop.permute.xlu0 %1878 }
 0x56c   : > { %v2386_v62 = vsel %vm564_vm1, %v2375_v26, 0  ;;  %v5042_v26 = vld [vmem:[#allocation9 + $0x38] sm:$0xff] }
 0x56d   : > { %v1790_v25 = vpop.f32.mrf.mxu0 }
 0x56e   : > { %v4981_v22 = vadd.f32 %v4978_v0, %v1790_v25 }
 0x570   : > { %v1918_v63 = vsel %vm402_vm0, %v4981_v22, -inf }
 0x571   : > { %1919 = vmax.xlane.f32.xlu0 %v1918_v63 }
 0x573   : > { %v2159_v12 = vpop.permute.xlu2 %2158  ;;  %v2120_v49 = vpop.permute.xlu0 %2119 }
 0x574   : > { %2135 = vmatpush.bf16.msrb.mxu0 %v2120_v49  ;;  %2177 = vmatpush.bf16.msrb.mxu1 %v2159_v12 }
 0x575   : > { %v1793_v2 = vpop.f32.mrf.mxu0 }
 0x576   : > { %v5031_v15 = vadd.f32 %v5028_v47, %v1793_v2  ;;  %v5066_v2 = vld [vmem:[#allocation9 + $0x60] sm:$0xff] }
 0x578   : > { %3363 = vmatmul.msk.bf16.vlgmr.msra.gmra.mxu3 %vm564_vm1, %v1877_v50  ;;  %2136 = vmatpush.bf16.msrb.mxu0 %v2118_v61  ;;  %v4995_v50 = vpop.f32.mrf.mxu1  ;;  %v2412_v61 = vpop.permute.xlu1 %2411  ;;  %v1921_v43 = vsel %vm402_vm0, %v5031_v15, -inf }
 0x579   : > { %5799 = vst [vmem:[#allocation17_spill] sm:$0xff] %v4995_v50 }
 0x57b   : > { %v4987_v51 = vpop.permute.xlu2 %2368  ;;  %v2373_v1 = vpop.permute.xlu0 %2372  ;;  %3361 = vmatmul.msk.bf16.vlgmr.msra.gmra.mxu2 %vm564_vm1, %v4949_v55  ;;  %v2422_v55 = vsel %vm564_vm1, %v2412_v61, 0 }
 0x57c   : > { %2394 = vmatpush.bf16.xpose.msra.mxu0 %v2386_v62  ;;  %v2383_v28 = vsel %vm564_vm1, %v2373_v1, 0 }
 0x57d   : > { %v1795_v46 = vpop.f32.mrf.mxu0 }
 0x57e   : > { %v5017_v14 = vadd.f32 %v5014_v9, %v1795_v46 }
 0x580   : > { %v5001_v56 = vpop.f32.mrf.mxu1  ;;  %v1924_v34 = vsel %vm402_vm0, %v5017_v14, -inf }
 0x581   : > { %5800 = vst [vmem:[#allocation20_spill] sm:$0xff] %v5001_v56 }
 0x583   : > { %v2414_v33 = vpop.permute.xlu2 %2413  ;;  %v2202_v19 = vpop.permute.xlu0 %2201 }
 0x584   : > { %2395 = vmatpush.bf16.xpose.msra.mxu0 %v2383_v28  ;;  %v2425_v10 = vsel %vm564_vm1, %v2414_v33, 0  ;;  %2217 = vmatpush.bf16.msrb.mxu2 %v2202_v19 }
 0x585   : > { %2433 = vmatpush.bf16.xpose.msra.mxu1 %v2425_v10 }
 0x588   : > { %3364 = vmatmul.msk.bf16.gmra.mxu3 %vm564_vm1, %v1879_v52  ;;  %v5003_v59 = vpop.f32.mrf.mxu1 }
 0x589   : > { %5801 = vst [vmem:[#allocation22_spill] sm:$0xff] %v5003_v59 }
 0x58b   : > { %v2200_v39 = vpop.permute.xlu0 %2199  ;;  %3362 = vmatmul.msk.bf16.gmra.mxu2 %vm564_vm1, %v4952_v5 }
 0x58c   : > { %2218 = vmatpush.bf16.msrb.mxu2 %v2200_v39 }
 0x58d   : > { %2434 = vmatpush.bf16.xpose.msra.mxu1 %v2422_v55 }
 0x590   : > { %v5005_v44 = vpop.f32.mrf.mxu1 }
 0x591   : > { %5802 = vst [vmem:[#allocation18_spill] sm:$0xff] %v5005_v44 }
 0x5a5   : > { %v5051_v12 = vpop.f32.mrf.mxu2 }
 0x5a6   : > { %5804 = vst [vmem:[#allocation23_spill] sm:$0xff] %v5051_v12 }
 0x5a8   : > { %v5049_v63 = vpop.f32.mrf.mxu3 }
 0x5a9   : > { %5803 = vst [vmem:[#allocation16_spill] sm:$0xff] %v5049_v63 }
 0x5ab   : > { %v1827_v38 = vpop.f32.mrf.mxu1 }
 0x5ac   : > { %v5010_v30 = vadd.f32 %v5007_v18, %v1827_v38 }
 0x5ad   : > { %v5055_v62 = vpop.f32.mrf.mxu2 }
 0x5ae   : > { %v1927_v5 = vsel %vm402_vm0, %v5010_v30, -inf  ;;  %5806 = vst [vmem:[#allocation24_spill] sm:$0xff] %v5055_v62 }
 0x5af   : > { %1928 = vmax.xlane.f32.xlu1 %v1927_v5 }
 0x5b0   : > { %v5053_v49 = vpop.f32.mrf.mxu3 }
 0x5b1   : > { %5805 = vst [vmem:[#allocation19_spill] sm:$0xff] %v5053_v49 }
 0x5b3   : > { %v1829_v24 = vpop.f32.mrf.mxu1 }
 0x5b4   : > { %v5022_v7 = vadd.f32 %v5019_v54, %v1829_v24  ;;  %v5073_v24 = vld [vmem:[#allocation9 + $0x40] sm:$0xff] }
 0x5b6   : > { %v1930_v6 = vsel %vm402_vm0, %v5022_v7, -inf }
 0x5b7   : > { %1931 = vmax.xlane.f32.xlu2 %v1930_v6  ;;  %1925 = vmax.xlane.f32.xlu1 %v1924_v34 }
 0x5bb   : > { %v1832_v29 = vpop.f32.mrf.mxu1 }
 0x5bc   : > { %v5036_v21 = vadd.f32 %v5033_v23, %v1832_v29 }
 0x5be   : > { %v1933_v35 = vsel %vm402_vm0, %v5036_v21, -inf }
 0x5bf   : > { %1922 = vmax.xlane.f32.xlu2 %v1921_v43  ;;  %1934 = vmax.xlane.f32.xlu0 %v1933_v35  ;;  %v5082_v43 = vld [vmem:[#allocation9 + $0x68] sm:$0xff] }
 0x5c3   : > { %v1834_v40 = vpop.f32.mrf.mxu1 }
 0x5c4   : > { %v5045_v52 = vadd.f32 %v5042_v26, %v1834_v40 }
 0x5c6   : > { %v1936_v25 = vsel %vm402_vm0, %v5045_v52, -inf }
 0x5c7   : > { %1937 = vmax.xlane.f32.xlu1 %v1936_v25 }
 0x5dc   : > { %v1917_v33 = vpop.xlane.xlu1 %1916 }
 0x5dd   : > { %v1963_v10 = vsub.f32 %v4972_v45, %v1917_v33  ;;  %v5089_v33 = vld [vmem:[#allocation9 + $0x48] sm:$0xff] }
 0x5df   : > { %v1979_v39 = vmul.f32 1.442695, %v1963_v10 }
 0x5e1   : > { %3699 = vpow2.f32 %v1979_v39 }
 0x5e7   : > { %v5080_v34 = vpop.eup %3699 }
 0x5e8   : > { %v2011_v25 = vsel %vm402_vm0, %v5080_v34, 0.0 }
 0x5eb   : > { %v5057_v1 = vpop.f32.mrf.mxu3 }
 0x5ec   : > { %5807 = vst [vmem:[#allocation25_spill] sm:$0xff] %v5057_v1 }
 0x5ee   : > { %v5059_v28 = vpop.f32.mrf.mxu2 }
 0x5ef   : > { %5808 = vst [vmem:[#allocation26_spill] sm:$0xff] %v5059_v28 }
 0x5f3   : > { %v5061_v19 = vpop.f32.mrf.mxu3 }
 0x5f4   : > { %5809 = vst [vmem:[#allocation27_spill] sm:$0xff] %v5061_v19  ;;  %v5103_v19 = vld [vmem:[#allocation9 + $0x50] sm:$0xff] }
 0x5f6   : > { %v5064_v61 = vpop.f32.mrf.mxu2 }
 0x5f7   : > { %5810 = vst [vmem:[#allocation28_spill] sm:$0xff] %v5064_v61 }
 0x5fb   : > { %v1905_v55 = vpop.f32.mrf.mxu3 }
 0x5fc   : > { %v5069_v38 = vadd.f32 %v5066_v2, %v1905_v55 }
 0x5fe   : > { %v1866_v5 = vpop.f32.mrf.mxu2  ;;  %v1951_v46 = vsel %vm402_vm0, %v5069_v38, -inf }
 0x5ff   : > { %v5076_v6 = vadd.f32 %v5073_v24, %v1866_v5  ;;  %1952 = vmax.xlane.f32.xlu1 %v1951_v46  ;;  %v5098_v46 = vld [vmem:[#allocation9 + $0x70] sm:$0xff] }
 0x601   : > { %v1939_v45 = vsel %vm402_vm0, %v5076_v6, -inf }
 0x602   : > { %1940 = vmax.xlane.f32.xlu2 %v1939_v45 }
 0x603   : > { %v1907_v29 = vpop.f32.mrf.mxu3 }
 0x604   : > { %v5085_v35 = vadd.f32 %v5082_v43, %v1907_v29 }
 0x606   : > { %v1868_v40 = vpop.f32.mrf.mxu2  ;;  %v1954_v55 = vsel %vm402_vm0, %v5085_v35, -inf }
 0x607   : > { %v5092_v10 = vadd.f32 %v5089_v33, %v1868_v40  ;;  %2012 = vadd.xlane.f32.xlu1 %v2011_v25 }
 0x609   : > { %v1942_v39 = vsel %vm402_vm0, %v5092_v10, -inf }
 0x60a   : > { %1943 = vmax.xlane.f32.xlu0 %v1942_v39  ;;  %1955 = vmax.xlane.f32.xlu2 %v1954_v55  ;;  %v5112_v55 = vld [vmem:[#allocation9 + $0x58] sm:$0xff] }
 0x60b   : > { %v1910_v5 = vpop.f32.mrf.mxu3 }
 0x60c   : > { %v5101_v45 = vadd.f32 %v5098_v46, %v1910_v5 }
 0x60e   : > { %v1871_v29 = vpop.f32.mrf.mxu2  ;;  %v1957_v25 = vsel %vm402_vm0, %v5101_v45, -inf }
 0x60f   : > { %v5106_v40 = vadd.f32 %v5103_v19, %v1871_v29  ;;  %v5119_v29 = vld [vmem:[#allocation9 + $0x78] sm:$0xff] }
 0x611   : > { %v1945_v49 = vsel %vm402_vm0, %v5106_v40, -inf }
 0x612   : > { %1958 = vmax.xlane.f32.xlu0 %v1957_v25  ;;  %1946 = vmax.xlane.f32.xlu2 %v1945_v49  ;;  %v1920_v25 = vpop.xlane.xlu0 %1919 }
 0x613   : > { %v1912_v1 = vpop.f32.mrf.mxu3  ;;  %v1964_v28 = vsub.f32 %v4981_v22, %v1920_v25 }
 0x614   : > { %v5122_v63 = vadd.f32 %v5119_v29, %v1912_v1 }
 0x616   : > { %v1873_v39 = vpop.f32.mrf.mxu2  ;;  %v1960_v49 = vsel %vm402_vm0, %v5122_v63, -inf }
 0x617   : > { %v5115_v5 = vadd.f32 %v5112_v55, %v1873_v39 }
 0x619   : > { %v1948_v61 = vsel %vm402_vm0, %v5115_v5, -inf }
 0x61a   : > { %1949 = vmax.xlane.f32.xlu2 %v1948_v61  ;;  %v1981_v61 = vmul.f32 1.442695, %v1964_v28 }
 0x620   : > { %2407 = vrot.lane.b32.xlu1 %v5791_v13, %s4054_s7 }
 0x622   : > { %1961 = vmax.xlane.f32.xlu2 %v1960_v49  ;;  %v1929_v39 = vpop.xlane.xlu1 %1928 }
 0x623   : > { %v1967_v62 = vsub.f32 %v5010_v30, %v1929_v39 }
 0x625   : > { %v1987_v12 = vmul.f32 1.442695, %v1967_v62 }
 0x627   : > { %3701 = vpow2.f32 %v1987_v12 }
 0x628   : > { %3703 = vpow2.f32 %v1981_v61 }
 0x62a   : > { %v1932_v44 = vpop.xlane.xlu2 %1931  ;;  %v1926_v49 = vpop.xlane.xlu1 %1925 }
 0x62b   : > { %v1968_v1 = vsub.f32 %v5022_v7, %v1932_v44  ;;  %v1966_v30 = vsub.f32 %v5017_v14, %v1926_v49 }
 0x62d   : > { %v5130_v59 = vpop.eup %3701  ;;  %v1989_v56 = vmul.f32 1.442695, %v1968_v1  ;;  %v1985_v7 = vmul.f32 1.442695, %v1966_v30 }
 0x62e   : > { %v2023_v13 = vsel %vm402_vm0, %v5130_v59, 0.0  ;;  %v5135_v48 = vpop.eup %3703 }
 0x62f   : > { %2024 = vadd.xlane.f32.xlu2 %v2023_v13  ;;  %3705 = vpow2.f32 %v1989_v56  ;;  %v2014_v28 = vsel %vm402_vm0, %v5135_v48, 0.0 }
 0x632   : > { %v1923_v50 = vpop.xlane.xlu2 %1922  ;;  %v1935_v62 = vpop.xlane.xlu0 %1934 }
 0x633   : > { %v1965_v22 = vsub.f32 %v5031_v15, %v1923_v50  ;;  %v1969_v44 = vsub.f32 %v5036_v21, %v1935_v62 }
 0x635   : > { %v1983_v12 = vmul.f32 1.442695, %v1965_v22  ;;  %v5142_v25 = vpop.eup %3705  ;;  %v1991_v39 = vmul.f32 1.442695, %v1969_v44 }
 0x636   : > { %v2026_v56 = vsel %vm402_vm0, %v5142_v25, 0.0 }
 0x637   : > { %3707 = vpow2.f32 %v1983_v12  ;;  %2015 = vadd.xlane.f32.xlu2 %v2014_v28 }
 0x638   : > { %3709 = vpow2.f32 %v1985_v7 }
 0x639   : > { %3711 = vpow2.f32 %v1991_v39 }
 0x63a   : > { %v1938_v13 = vpop.xlane.xlu1 %1937 }
 0x63b   : > { %v1970_v49 = vsub.f32 %v5045_v52, %v1938_v13 }
 0x63d   : > { %v5144_v61 = vpop.eup %3707  ;;  %v1993_v22 = vmul.f32 1.442695, %v1970_v49 }
 0x63e   : > { %v2017_v50 = vsel %vm402_vm0, %v5144_v61, 0.0  ;;  %v5150_v14 = vpop.eup %3709 }
 0x63f   : > { %2018 = vadd.xlane.f32.xlu0 %v2017_v50  ;;  %2027 = vadd.xlane.f32.xlu2 %v2026_v56  ;;  %v5152_v15 = vpop.eup %3711  ;;  %v2020_v21 = vsel %vm402_vm0, %v5150_v14, 0.0  ;;  %3713 = vpow2.f32 %v1993_v22 }
 0x640   : > { %v2029_v1 = vsel %vm402_vm0, %v5152_v15, 0.0 }
 0x645   : > { %v5165_v39 = vpop.eup %3713 }
 0x646   : > { %v2032_v50 = vsel %vm402_vm0, %v5165_v39, 0.0 }
 0x647   : > { %2021 = vadd.xlane.f32.xlu2 %v2020_v21 }
 0x64a   : > { %2030 = vadd.xlane.f32.xlu1 %v2029_v1 }
 0x653   : > { %2450 = vrot.lane.b32.xlu0 %v4338_v4, %s4055_s15 }
 0x65f   : > { %2452 = vrot.lane.b32.xlu2 %v4322_v57, %s4055_s15 }
 0x672   : > { %v1953_v30 = vpop.xlane.xlu1 %1952 }
 0x673   : > { %v1975_v12 = vsub.f32 %v5069_v38, %v1953_v30 }
 0x675   : > { %v2003_v62 = vmul.f32 1.442695, %v1975_v12  ;;  %v1941_v28 = vpop.xlane.xlu2 %1940 }
 0x676   : > { %v1971_v44 = vsub.f32 %v5076_v6, %v1941_v28 }
 0x677   : > { %3715 = vpow2.f32 %v2003_v62 }
 0x678   : > { %v1995_v7 = vmul.f32 1.442695, %v1971_v44 }
 0x67a   : > { %3717 = vpow2.f32 %v1995_v7 }
 0x67d   : > { %v5169_v56 = vpop.eup %3715  ;;  %v1944_v52 = vpop.xlane.xlu0 %1943  ;;  %2033 = vadd.xlane.f32.xlu0 %v2032_v50 }
 0x67e   : > { %v1956_v21 = vpop.xlane.xlu2 %1955  ;;  %v1972_v1 = vsub.f32 %v5092_v10, %v1944_v52  ;;  %v2047_v6 = vsel %vm402_vm0, %v5169_v56, 0.0 }
 0x67f   : > { %v1976_v38 = vsub.f32 %v5085_v35, %v1956_v21  ;;  %2048 = vadd.xlane.f32.xlu1 %v2047_v6 }
 0x680   : > { %v1997_v13 = vmul.f32 1.442695, %v1972_v1  ;;  %v5175_v22 = vpop.eup %3717 }
 0x681   : > { %v2005_v49 = vmul.f32 1.442695, %v1976_v38  ;;  %v2035_v30 = vsel %vm402_vm0, %v5175_v22, 0.0 }
 0x682   : > { %3719 = vpow2.f32 %v1997_v13 }
 0x683   : > { %3721 = vpow2.f32 %v2005_v49  ;;  %v2013_v49 = vpop.xlane.xlu1 %2012 }
 0x685   : > { %2036 = vadd.xlane.f32.xlu0 %v2035_v30 }
 0x686   : > { %v1947_v12 = vpop.xlane.xlu2 %1946 }
 0x687   : > { %v1973_v62 = vsub.f32 %v5106_v40, %v1947_v12 }
 0x688   : > { %v5180_v10 = vpop.eup %3719 }
 0x689   : > { %v1999_v35 = vmul.f32 1.442695, %v1973_v62  ;;  %v5182_v28 = vpop.eup %3721  ;;  %v2038_v44 = vsel %vm402_vm0, %v5180_v10, 0.0 }
 0x68a   : > { %v2050_v7 = vsel %vm402_vm0, %v5182_v28, 0.0  ;;  %2039 = vadd.xlane.f32.xlu1 %v2038_v44 }
 0x68b   : > { %3723 = vpow2.f32 %v1999_v35  ;;  %2051 = vadd.xlane.f32.xlu2 %v2050_v7 }
 0x68e   : > { %v1950_v50 = vpop.xlane.xlu2 %1949 }
 0x68f   : > { %v1974_v52 = vsub.f32 %v5115_v5, %v1950_v50  ;;  %v1959_v5 = vpop.xlane.xlu0 %1958 }
 0x691   : > { %v2001_v21 = vmul.f32 1.442695, %v1974_v52  ;;  %v5189_v1 = vpop.eup %3723 }
 0x692   : > { %v2041_v40 = vsel %vm402_vm0, %v5189_v1, 0.0 }
 0x693   : > { %3725 = vpow2.f32 %v2001_v21  ;;  %2042 = vadd.xlane.f32.xlu2 %v2041_v40 }
 0x694   : > { %3727 = vrcp.f32 %v2013_v49 }
 0x696   : > { %v1962_v13 = vpop.xlane.xlu2 %1961 }
 0x699   : > { %v5193_v38 = vpop.eup %3725 }
 0x69a   : > { %v2044_v6 = vsel %vm402_vm0, %v5193_v38, 0.0  ;;  %v3728_v62 = vpop.eup %3727 }
 0x69b   : > { %2045 = vadd.xlane.f32.xlu0 %v2044_v6  ;;  %v2075_v35 = vmul.f32 %v3728_v62, %v5080_v34 }
 0x69d   : > { %v2091_v7 = vpack.c.bf16 %v2075_v35, %v2075_v35 }
 0x6a2   : > { %v2025_v30 = vpop.xlane.xlu2 %2024 }
 0x6a3   : > { %2242 = vrot.lane.b32.xlu1 %v4336_v3, %s4053_s18 }
 0x6aa   : > { %v2016_v12 = vpop.xlane.xlu2 %2015 }
 0x6ab   : > { %3729 = vrcp.f32 %v2016_v12  ;;  %2240 = vrot.lane.b32.xlu2 %v5790_v17, %s4053_s18  ;;  %2446 = vrot.lane.b32.xlu1 %v4284_v58, %s4054_s7  ;;  %v2111_v58 = vunpack.c.l.b16 %v2091_v7  ;;  %s3155_s18 = scalar_lea.hbm %s5755_s6, %s3466_s11 }
 0x6ac   : > { %3731 = vrcp.f32 %v2025_v30 }
 0x6af   : > { %2409 = vrot.lane.b32.xlu0 %v5792_v27, %s4054_s7 }
 0x6b1   : > { %v3730_v44 = vpop.eup %3729 }
 0x6b2   : > { %v2076_v50 = vmul.f32 %v3730_v44, %v5135_v48  ;;  %v2019_v52 = vpop.xlane.xlu0 %2018  ;;  %v2028_v21 = vpop.xlane.xlu2 %2027 }
 0x6b3   : > { %2448 = vrot.lane.b32.xlu1 %v5793_v53, %s4054_s7  ;;  %v3732_v40 = vpop.eup %3731  ;;  %3733 = vrcp.f32 %v2028_v21  ;;  %v1978_v21 = vsub.f32 %v5122_v63, %v1962_v13 }
 0x6b4   : > { %v2092_v6 = vpack.c.bf16 %v2076_v50, %v2076_v50  ;;  %3735 = vrcp.f32 %v2019_v52  ;;  %v2079_v34 = vmul.f32 %v3732_v40, %v5130_v59 }
 0x6b6   : > { %v2112_v49 = vunpack.c.l.b16 %v2092_v6  ;;  %v2095_v48 = vpack.c.bf16 %v2079_v34, %v2079_v34  ;;  %v2009_v34 = vmul.f32 1.442695, %v1978_v21 }
 0x6b8   : > { %v2115_v30 = vpack.c.b16 %v2112_v49, %v2111_v58  ;;  %v2152_v7 = vunpack.c.l.b16 %v2095_v48 }
 0x6b9   : > { %v3734_v12 = vpop.eup %3733 }
 0x6ba   : > { %v2022_v27 = vpop.xlane.xlu2 %2021  ;;  %3365 = vmatmul.msk.bf16.vlgmr.msrb.gmra.mxu0 %vm402_vm0, %v2115_v30  ;;  %v3736_v62 = vpop.eup %3735  ;;  %v2080_v35 = vmul.f32 %v3734_v12, %v5142_v25 }
 0x6bb   : > { %3737 = vrcp.f32 %v2022_v27  ;;  %2491 = vrot.lane.b32.xlu1 %v4336_v3, %s4055_s15  ;;  %v2077_v44 = vmul.f32 %v3736_v62, %v5144_v61  ;;  %v1977_v61 = vsub.f32 %v5101_v45, %v1959_v5 }
 0x6bc   : > { %v2096_v53 = vpack.c.bf16 %v2080_v35, %v2080_v35  ;;  %3739 = vpow2.f32 %v2009_v34  ;;  %v2408_v35 = vpop.permute.xlu1 %2407 }
 0x6bd   : > { %v2093_v58 = vpack.c.bf16 %v2077_v44, %v2077_v44  ;;  %v2007_v13 = vmul.f32 1.442695, %v1977_v61 }
 0x6be   : > { %v2153_v50 = vunpack.c.l.b16 %v2096_v53 }
 0x6bf   : > { %v2113_v30 = vunpack.c.l.b16 %v2093_v58  ;;  %3741 = vpow2.f32 %v2007_v13 }
 0x6c0   : > { %v2156_v59 = vpack.c.b16 %v2153_v50, %v2152_v7 }
 0x6c1   : > { %v3738_v52 = vpop.eup %3737 }
 0x6c2   : > { %v2453_v40 = vpop.permute.xlu2 %2452  ;;  %v2078_v6 = vmul.f32 %v3738_v52, %v5150_v14  ;;  %3367 = vmatmul.msk.bf16.vlgmr.msrb.gmra.mxu1 %vm402_vm0, %v2156_v59  ;;  %v5226_v62 = vpop.eup %3739 }
 0x6c3   : > { %v2464_v25 = vsel %vm564_vm1, %v2453_v40, 0  ;;  %2489 = vrot.lane.b32.xlu1 %v5790_v17, %s4055_s15  ;;  %v2056_v45 = vsel %vm402_vm0, %v5226_v62, 0.0  ;;  %s3158_s15 = sshll.u32 %s3155_s18, 4  ;;  %s3159_s15 = int_to_ptr.hbm [resolvable:$true] %s3158_s15 }
 0x6c4   : > { %2472 = vmatpush.bf16.xpose.msra.mxu2 %v2464_v25  ;;  %v2094_v49 = vpack.c.bf16 %v2078_v6, %v2078_v6  ;;  %v2031_v53 = vpop.xlane.xlu1 %2030  ;;  %s3977_s25 = sshra.s32 %s3159_s15, 4  ;;  %s3978_s25 = int_to_ptr.hbm [resolvable:$true] %s3977_s25 }
 0x6c5   : > { %v2451_v27 = vpop.permute.xlu0 %2450  ;;  %v5230_v5 = vpop.eup %3741  ;;  %3743 = vrcp.f32 %v2031_v53  ;;  %p3984_p11 = scmp.lt.s32.totalorder %s3978_s25, %s5755_s6 }
 0x6c6   : > { %v2114_v12 = vunpack.c.l.b16 %v2094_v49  ;;  %v2461_v14 = vsel %vm564_vm1, %v2451_v27, 0  ;;  %v2053_v48 = vsel %vm402_vm0, %v5230_v5, 0.0 }
 0x6c8   : > { %v2116_v63 = vpack.c.b16 %v2114_v12, %v2113_v30 }
 0x6ca   : > { %3366 = vmatmul.msk.bf16.gmra.mxu0 %vm402_vm0, %v2116_v63 }
 0x6cb   : > { %2728 = vrot.lane.b32.xlu1 %v5797_v20, %s4056_s16  ;;  %v3744_v44 = vpop.eup %3743 }
 0x6cc   : > { %2473 = vmatpush.bf16.xpose.msra.mxu2 %v2461_v14  ;;  %v2081_v7 = vmul.f32 %v3744_v44, %v5152_v15 }
 0x6ce   : > { %v2097_v52 = vpack.c.bf16 %v2081_v7, %v2081_v7 }
 0x6d4   : > { %2057 = vadd.xlane.f32.xlu2 %v2056_v45 }
 0x6d9   : > { %2054 = vadd.xlane.f32.xlu0 %v2053_v48 }
 0x6da   : > { %3373 = vmatmul.msk.bf16.vlgmr.msra.gmra.mxu0 %vm564_vm1, %v4987_v51 }
 0x6ea   : > { %3374 = vmatmul.msk.bf16.gmra.mxu0 %vm564_vm1, %v4991_v37 }
 0x6ec   : > { %2487 = vrot.lane.b32.xlu2 %v5796_v42, %s4054_s7  ;;  %v2154_v42 = vunpack.c.l.b16 %v2097_v52 }
 0x6ed   : > { %2485 = vrot.lane.b32.xlu0 %v5794_v41, %s4054_s7  ;;  %s3156_s7 = sshll.u32 %s5654_s13, 4  ;;  %s3157_s7 = int_to_ptr.vmem [resolvable:$true] %s3156_s7 }
 0x6f0   : > { %v2034_v20 = vpop.xlane.xlu0 %2033 }
 0x6f1   : > { %3745 = vrcp.f32 %v2034_v20 }
 0x6f2   : > { %v2049_v51 = vpop.xlane.xlu1 %2048 }
 0x6f4   : > { %2726 = vrot.lane.b32.xlu2 %v5795_v16, %s4056_s16 }
 0x6f7   : > { %v3746_v50 = vpop.eup %3745 }
 0x6f8   : > { %v2082_v37 = vmul.f32 %v3746_v50, %v5165_v39  ;;  %v2037_v59 = vpop.xlane.xlu0 %2036 }
 0x6f9   : > { %3747 = vrcp.f32 %v2037_v59 }
 0x6fa   : > { %v2098_v21 = vpack.c.bf16 %v2082_v37, %v2082_v37 }
 0x6fc   : > { %v2155_v40 = vunpack.c.l.b16 %v2098_v21 }
 0x6fd   : > { %v2040_v6 = vpop.xlane.xlu1 %2039 }
 0x6fe   : > { %v2052_v41 = vpop.xlane.xlu2 %2051  ;;  %3749 = vrcp.f32 %v2040_v6  ;;  %v2157_v58 = vpack.c.b16 %v2155_v40, %v2154_v42 }
 0x6ff   : > { %v3748_v25 = vpop.eup %3747  ;;  %3751 = vrcp.f32 %v2052_v41 }
 0x700   : > { %3368 = vmatmul.msk.bf16.gmra.mxu1 %vm402_vm0, %v2157_v58  ;;  %v2083_v15 = vmul.f32 %v3748_v25, %v5175_v22  ;;  %3753 = vrcp.f32 %v2049_v51 }
 0x702   : > { %v2099_v49 = vpack.c.bf16 %v2083_v15, %v2083_v15 }
 0x704   : > { %v3750_v16 = vpop.eup %3749  ;;  %v2193_v30 = vunpack.c.l.b16 %v2099_v49 }
 0x705   : > { %v2084_v61 = vmul.f32 %v3750_v16, %v5180_v10  ;;  %v3752_v63 = vpop.eup %3751 }
 0x706   : > { %v2043_v39 = vpop.xlane.xlu2 %2042  ;;  %v3754_v13 = vpop.eup %3753  ;;  %v2088_v22 = vmul.f32 %v3752_v63, %v5182_v28 }
 0x707   : > { %v2100_v34 = vpack.c.bf16 %v2084_v61, %v2084_v61  ;;  %3755 = vrcp.f32 %v2043_v39  ;;  %v2087_v10 = vmul.f32 %v3754_v13, %v5169_v56 }
 0x708   : > { %v2104_v53 = vpack.c.bf16 %v2088_v22, %v2088_v22 }
 0x709   : > { %v2194_v12 = vunpack.c.l.b16 %v2100_v34  ;;  %v2103_v44 = vpack.c.bf16 %v2087_v10, %v2087_v10 }
 0x70a   : > { %v2235_v52 = vunpack.c.l.b16 %v2104_v53 }
 0x70b   : > { %v2197_v27 = vpack.c.b16 %v2194_v12, %v2193_v30  ;;  %v2234_v59 = vunpack.c.l.b16 %v2103_v44 }
 0x70d   : > { %3369 = vmatmul.msk.bf16.vlgmr.msrb.gmra.mxu2 %vm402_vm0, %v2197_v27  ;;  %v3756_v45 = vpop.eup %3755 }
 0x70e   : > { %v2046_v14 = vpop.xlane.xlu0 %2045  ;;  %v2085_v48 = vmul.f32 %v3756_v45, %v5189_v1  ;;  %v2241_v42 = vpop.permute.xlu2 %2240 }
 0x70f   : > { %3757 = vrcp.f32 %v2046_v14 }
 0x710   : > { %3375 = vmatmul.msk.bf16.vlgmr.msra.gmra.mxu1 %vm564_vm1, %v2408_v35  ;;  %v2101_v7 = vpack.c.bf16 %v2085_v48, %v2085_v48  ;;  %v2238_v35 = vpack.c.b16 %v2235_v52, %v2234_v59 }
 0x712   : > { %v2195_v21 = vunpack.c.l.b16 %v2101_v7 }
 0x715   : > { %v3758_v20 = vpop.eup %3757  ;;  %v2243_v50 = vpop.permute.xlu1 %2242 }
 0x716   : > { %v2086_v51 = vmul.f32 %v3758_v20, %v5193_v38  ;;  %2258 = vmatpush.bf16.msrb.mxu3 %v2243_v50 }
 0x718   : > { %v2102_v37 = vpack.c.bf16 %v2086_v51, %v2086_v51 }
 0x71a   : > { %v2196_v28 = vunpack.c.l.b16 %v2102_v37  ;;  %2259 = vmatpush.bf16.msrb.mxu3 %v2241_v42 }
 0x71c   : > { %v2198_v40 = vpack.c.b16 %v2196_v28, %v2195_v21 }
 0x71d   : > { %3371 = vmatmul.msk.bf16.vlgmr.msrb.gmra.mxu3 %vm402_vm0, %v2238_v35  ;;  %v2447_v56 = vpop.permute.xlu1 %2446 }
 0x71e   : > { %3370 = vmatmul.msk.bf16.gmra.mxu2 %vm402_vm0, %v2198_v40 }
 0x721   : > { %v2410_v1 = vpop.permute.xlu0 %2409 }
 0x722   : > { %3376 = vmatmul.msk.bf16.gmra.mxu1 %vm564_vm1, %v2410_v1 }
 0x725   : > { %v2449_v38 = vpop.permute.xlu1 %2448 }
 0x72d   : > { %v2492_v6 = vpop.permute.xlu1 %2491 }
 0x72e   : > { %3377 = vmatmul.msk.bf16.vlgmr.msra.gmra.mxu2 %vm564_vm1, %v2447_v56  ;;  %v2503_v41 = vsel %vm564_vm1, %v2492_v6, 0 }
 0x72f   : > { %2511 = vmatpush.bf16.xpose.msra.mxu3 %v2503_v41 }
 0x735   : > { %v2490_v58 = vpop.permute.xlu1 %2489 }
 0x736   : > { %v2500_v25 = vsel %vm564_vm1, %v2490_v58, 0 }
 0x737   : > { %v5261_v15 = vpop.f32.mrf.mxu0  ;;  %2512 = vmatpush.bf16.xpose.msra.mxu3 %v2500_v25 }
 0x73d   : > { %v2729_v16 = vpop.permute.xlu1 %2728 }
 0x73e   : > { %3378 = vmatmul.msk.bf16.gmra.mxu2 %vm564_vm1, %v2449_v38  ;;  %2744 = vmatpush.bf16.msrb.mxu0 %v2729_v16 }
 0x73f   : > { %v5264_v49 = vpop.f32.mrf.mxu0  ;;  %v5285_v21 = vpop.f32.mrf.mxu1 }
 0x747   : > { %v2058_v61 = vpop.xlane.xlu2 %2057  ;;  %v5266_v39 = vpop.f32.mrf.mxu0 }
 0x748   : > { %3759 = vrcp.f32 %v2058_v61  ;;  %v5288_v42 = vpop.f32.mrf.mxu1 }
 0x74c   : > { %v2055_v34 = vpop.xlane.xlu0 %2054 }
 0x74d   : > { %3761 = vrcp.f32 %v2055_v34 }
 0x74e   : > { %v3760_v30 = vpop.eup %3759 }
 0x74f   : > { %v2090_v12 = vmul.f32 %v3760_v30, %v5226_v62  ;;  %v2488_v27 = vpop.permute.xlu2 %2487  ;;  %v5269_v63 = vpop.f32.mrf.mxu0 }
 0x751   : > { %v2106_v14 = vpack.c.bf16 %v2090_v12, %v2090_v12 }
 0x753   : > { %v3762_v13 = vpop.eup %3761  ;;  %v2237_v10 = vunpack.c.l.b16 %v2106_v14 }
 0x754   : > { %v2089_v45 = vmul.f32 %v3762_v13, %v5230_v5 }
 0x756   : > { %v2105_v22 = vpack.c.bf16 %v2089_v45, %v2089_v45 }
 0x757   : > { %v2727_v53 = vpop.permute.xlu2 %2726  ;;  %v2397_v20 = vpop.f32.mrf.mxu0 }
 0x758   : > { %v2236_v48 = vunpack.c.l.b16 %v2105_v22  ;;  %v5273_v44 = vadd.f32 %v4969_v36, %v2397_v20  ;;  %2745 = vmatpush.bf16.msrb.mxu0 %v2727_v53 }
 0x75a   : > { %v2239_v7 = vpack.c.b16 %v2237_v10, %v2236_v48  ;;  %v2524_v62 = vsel %vm402_vm0, %v5273_v44, -inf }
 0x75b   : > { %2525 = vmax.xlane.f32.xlu1 %v2524_v62 }
 0x75c   : > { %3372 = vmatmul.msk.bf16.gmra.mxu3 %vm402_vm0, %v2239_v7 }
 0x75f   : > { %v2399_v51 = vpop.f32.mrf.mxu0  ;;  %v2486_v36 = vpop.permute.xlu0 %2485 }
 0x760   : > { %v2400_v50 = vadd.f32 %v4978_v0, %v2399_v51 }
 0x762   : > { %v2527_v5 = vsel %vm402_vm0, %v2400_v50, -inf }
 0x763   : > { %2528 = vmax.xlane.f32.xlu0 %v2527_v5 }
 0x767   : > { %v2402_v52 = vpop.f32.mrf.mxu0 }
 0x768   : > { %v5281_v37 = vadd.f32 %v5028_v47, %v2402_v52 }
 0x76a   : > { %v2530_v59 = vsel %vm402_vm0, %v5281_v37, -inf }
 0x76b   : > { %2531 = vmax.xlane.f32.xlu2 %v2530_v59 }
 0x76c   : > { %3379 = vmatmul.msk.bf16.vlgmr.msra.gmra.mxu3 %vm564_vm1, %v2486_v36 }
 0x76f   : > { %v2404_v61 = vpop.f32.mrf.mxu0 }
 0x77c   : > { %3380 = vmatmul.msk.bf16.gmra.mxu3 %vm564_vm1, %v2488_v27 }
 0x77d   : > { %v5291_v0 = vpop.f32.mrf.mxu1 }
 0x785   : > { %v5293_v28 = vpop.f32.mrf.mxu1 }
 0x78d   : > { %v2436_v35 = vpop.f32.mrf.mxu1 }
 0x78e   : > { %v2437_v47 = vadd.f32 %v5007_v18, %v2436_v35 }
 0x790   : > { %v5296_v40 = vpop.f32.mrf.mxu2  ;;  %v2536_v56 = vsel %vm402_vm0, %v2437_v47, -inf }
 0x791   : > { %2537 = vmax.xlane.f32.xlu1 %v2536_v56 }
 0x795   : > { %v2438_v1 = vpop.f32.mrf.mxu1 }
 0x796   : > { %v5300_v38 = vadd.f32 %v5019_v54, %v2438_v1  ;;  %v5314_v54 = vadd.f32 %v5014_v9, %v2404_v61 }
 0x798   : > { %v5302_v6 = vpop.f32.mrf.mxu2  ;;  %v2539_v41 = vsel %vm402_vm0, %v5300_v38, -inf  ;;  %v2533_v27 = vsel %vm402_vm0, %v5314_v54, -inf }
 0x799   : > { %2540 = vmax.xlane.f32.xlu0 %v2539_v41 }
 0x79f   : > { %v2441_v58 = vpop.f32.mrf.mxu1 }
 0x7a0   : > { %v5307_v25 = vadd.f32 %v5033_v23, %v2441_v58  ;;  %v5335_v53 = vpop.f32.mrf.mxu3 }
 0x7a1   : > { %v5309_v18 = vpop.f32.mrf.mxu2 }
 0x7a2   : > { %v2542_v16 = vsel %vm402_vm0, %v5307_v25, -inf }
 0x7a3   : > { %2543 = vmax.xlane.f32.xlu1 %v2542_v16 }
 0x7a7   : > { %v2443_v34 = vpop.f32.mrf.mxu1 }
 0x7a8   : > { %v5317_v30 = vadd.f32 %v5042_v26, %v2443_v34  ;;  %v5337_v20 = vpop.f32.mrf.mxu3 }
 0x7a9   : > { %v5319_v12 = vpop.f32.mrf.mxu2 }
 0x7aa   : > { %v2545_v23 = vsel %vm402_vm0, %v5317_v30, -inf }
 0x7ab   : > { %2546 = vmax.xlane.f32.xlu2 %v2545_v23  ;;  %2534 = vmax.xlane.f32.xlu1 %v2533_v27 }
 0x7b1   : > { %v2475_v13 = vpop.f32.mrf.mxu2 }
 0x7b2   : > { %v5326_v14 = vadd.f32 %v5073_v24, %v2475_v13 }
 0x7b4   : > { %v2548_v9 = vsel %vm402_vm0, %v5326_v14, -inf }
 0x7b5   : > { %2549 = vmax.xlane.f32.xlu2 %v2548_v9 }
 0x7b9   : > { %v2477_v26 = vpop.f32.mrf.mxu2 }
 0x7c1   : > { %v2480_v45 = vpop.f32.mrf.mxu2 }
 0x7c2   : > { %v5366_v34 = vadd.f32 %v5103_v19, %v2480_v45 }
 0x7c9   : > { %v2482_v22 = vpop.f32.mrf.mxu2 }
 0x7ca   : > { %v5331_v10 = vadd.f32 %v5112_v55, %v2482_v22 }
 0x7cc   : > { %v2557_v48 = vsel %vm402_vm0, %v5331_v10, -inf }
 0x7cd   : > { %2558 = vmax.xlane.f32.xlu1 %v2557_v48 }
 0x7ce   : > { %v2526_v41 = vpop.xlane.xlu1 %2525 }
 0x7d6   : > { %v2529_v24 = vpop.xlane.xlu0 %2528 }
 0x7d7   : > { %v2573_v7 = vsub.f32 %v2400_v50, %v2529_v24  ;;  %v5353_v50 = vadd.f32 %v5089_v33, %v2477_v26 }
 0x7d9   : > { %v2590_v62 = vmul.f32 1.442695, %v2573_v7  ;;  %v2551_v56 = vsel %vm402_vm0, %v5353_v50, -inf }
 0x7db   : > { %3763 = vpow2.f32 %v2590_v62 }
 0x7de   : > { %v2532_v13 = vpop.xlane.xlu2 %2531 }
 0x7df   : > { %v5339_v51 = vpop.f32.mrf.mxu3  ;;  %v2574_v19 = vsub.f32 %v5281_v37, %v2532_v13 }
 0x7e1   : > { %v5341_v5 = vpop.eup %3763  ;;  %v2592_v48 = vmul.f32 1.442695, %v2574_v19 }
 0x7e2   : > { %v2623_v55 = vsel %vm402_vm0, %v5341_v5, 0.0 }
 0x7e3   : > { %2624 = vadd.xlane.f32.xlu1 %v2623_v55 }
 0x7e7   : > { %v5345_v52 = vpop.f32.mrf.mxu3 }
 0x7ef   : > { %v2514_v36 = vpop.f32.mrf.mxu3 }
 0x7f0   : > { %v5348_v59 = vadd.f32 %v5066_v2, %v2514_v36  ;;  %v2572_v2 = vsub.f32 %v5273_v44, %v2526_v41 }
 0x7f2   : > { %v2560_v35 = vsel %vm402_vm0, %v5348_v59, -inf  ;;  %v2588_v33 = vmul.f32 1.442695, %v2572_v2 }
 0x7f3   : > { %2561 = vmax.xlane.f32.xlu0 %v2560_v35 }
 0x7f4   : > { %3765 = vpow2.f32 %v2588_v33 }
 0x7f7   : > { %v2516_v1 = vpop.f32.mrf.mxu3 }
 0x7f8   : > { %v5360_v58 = vadd.f32 %v5082_v43, %v2516_v1 }
 0x7fa   : > { %v2563_v16 = vsel %vm402_vm0, %v5360_v58, -inf  ;;  %v5371_v9 = vpop.eup %3765 }
 0x7fb   : > { %2552 = vmax.xlane.f32.xlu0 %v2551_v56  ;;  %v2620_v45 = vsel %vm402_vm0, %v5371_v9, 0.0 }
 0x7fc   : > { %2767 = vrot.lane.b32.xlu1 %v4324_v60, %s4056_s16  ;;  %v2554_v60 = vsel %vm402_vm0, %v5366_v34, -inf }
 0x7ff   : > { %v2519_v41 = vpop.f32.mrf.mxu3 }
 0x800   : > { %v5395_v33 = vadd.f32 %v5098_v46, %v2519_v41 }
 0x803   : > { %2564 = vmax.xlane.f32.xlu0 %v2563_v16 }
 0x804   : > { %v2538_v61 = vpop.xlane.xlu1 %2537 }
 0x805   : > { %v2576_v23 = vsub.f32 %v2437_v47, %v2538_v61 }
 0x807   : > { %v2596_v27 = vmul.f32 1.442695, %v2576_v23 }
 0x809   : > { %3767 = vpow2.f32 %v2596_v27  ;;  %v2566_v27 = vsel %vm402_vm0, %v5395_v33, -inf }
 0x80b   : > { %2555 = vmax.xlane.f32.xlu0 %v2554_v60  ;;  %v2521_v60 = vpop.f32.mrf.mxu3 }
 0x80c   : > { %v2541_v43 = vpop.xlane.xlu0 %2540 }
 0x80d   : > { %v2577_v44 = vsub.f32 %v5300_v38, %v2541_v43 }
 0x80f   : > { %v5373_v26 = vpop.eup %3767  ;;  %v2598_v22 = vmul.f32 1.442695, %v2577_v44  ;;  %v5405_v44 = vadd.f32 %v5119_v29, %v2521_v60 }
 0x810   : > { %v2632_v47 = vsel %vm402_vm0, %v5373_v26, 0.0 }
 0x811   : > { %3769 = vpow2.f32 %v2598_v22  ;;  %2633 = vadd.xlane.f32.xlu2 %v2632_v47  ;;  %v2569_v46 = vsel %vm402_vm0, %v5405_v44, -inf }
 0x812   : > { %3771 = vpow2.f32 %v2592_v48 }
 0x813   : > { %2621 = vadd.xlane.f32.xlu0 %v2620_v45 }
 0x816   : > { %v2544_v24 = vpop.xlane.xlu1 %2543 }
 0x817   : > { %v2578_v38 = vsub.f32 %v5307_v25, %v2544_v24  ;;  %v5381_v7 = vpop.eup %3769 }
 0x818   : > { %v2635_v37 = vsel %vm402_vm0, %v5381_v7, 0.0  ;;  %v5385_v36 = vpop.eup %3771 }
 0x819   : > { %v2600_v62 = vmul.f32 1.442695, %v2578_v38  ;;  %v2626_v25 = vsel %vm402_vm0, %v5385_v36, 0.0 }
 0x81b   : > { %3773 = vpow2.f32 %v2600_v62  ;;  %2636 = vadd.xlane.f32.xlu0 %v2635_v37 }
 0x81e   : > { %v2535_v55 = vpop.xlane.xlu1 %2534  ;;  %v2547_v56 = vpop.xlane.xlu2 %2546 }
 0x81f   : > { %v2575_v35 = vsub.f32 %v5314_v54, %v2535_v55  ;;  %v2579_v19 = vsub.f32 %v5317_v30, %v2547_v56 }
 0x821   : > { %v5388_v1 = vpop.eup %3773  ;;  %v2594_v2 = vmul.f32 1.442695, %v2575_v35  ;;  %v2602_v29 = vmul.f32 1.442695, %v2579_v19 }
 0x822   : > { %v2638_v16 = vsel %vm402_vm0, %v5388_v1, 0.0 }
 0x823   : > { %2627 = vadd.xlane.f32.xlu0 %v2626_v25  ;;  %2639 = vadd.xlane.f32.xlu2 %v2638_v16  ;;  %3775 = vpow2.f32 %v2594_v2 }
 0x828   : > { %v2550_v61 = vpop.xlane.xlu2 %2549 }
 0x829   : > { %v2580_v54 = vsub.f32 %v5326_v14, %v2550_v61  ;;  %v5398_v23 = vpop.eup %3775 }
 0x82a   : > { %v2629_v13 = vsel %vm402_vm0, %v5398_v23, 0.0 }
 0x82b   : > { %v2604_v43 = vmul.f32 1.442695, %v2580_v54  ;;  %2567 = vmax.xlane.f32.xlu2 %v2566_v27  ;;  %2630 = vadd.xlane.f32.xlu0 %v2629_v13 }
 0x82d   : > { %3777 = vpow2.f32 %v2604_v43 }
 0x82e   : > { %3779 = vpow2.f32 %v2602_v29 }
 0x833   : > { %v5409_v14 = vpop.eup %3777  ;;  %2570 = vmax.xlane.f32.xlu2 %v2569_v46 }
 0x834   : > { %v2644_v22 = vsel %vm402_vm0, %v5409_v14, 0.0  ;;  %v5418_v47 = vpop.eup %3779 }
 0x835   : > { %2645 = vadd.xlane.f32.xlu1 %v2644_v22  ;;  %v2641_v48 = vsel %vm402_vm0, %v5418_v47, 0.0 }
 0x83f   : > { %2769 = vrot.lane.b32.xlu0 %v4306_v31, %s4056_s16 }
 0x840   : > { %v2559_v31 = vpop.xlane.xlu1 %2558 }
 0x841   : > { %v2583_v30 = vsub.f32 %v5331_v10, %v2559_v31 }
 0x843   : > { %v2610_v41 = vmul.f32 1.442695, %v2583_v30 }
 0x84b   : > { %2810 = vrot.lane.b32.xlu2 %v4322_v57, %s4056_s16 }
 0x856   : > { %v2625_v2 = vpop.xlane.xlu1 %2624 }
 0x866   : > { %v2562_v45 = vpop.xlane.xlu0 %2561 }
 0x869   : > { %2642 = vadd.xlane.f32.xlu0 %v2641_v48 }
 0x86e   : > { %v2553_v24 = vpop.xlane.xlu0 %2552 }
 0x86f   : > { %v2581_v38 = vsub.f32 %v5353_v50, %v2553_v24 }
 0x871   : > { %v2606_v62 = vmul.f32 1.442695, %v2581_v38 }
 0x873   : > { %3781 = vpow2.f32 %v2606_v62 }
 0x876   : > { %v2565_v37 = vpop.xlane.xlu0 %2564 }
 0x877   : > { %v2585_v57 = vsub.f32 %v5360_v58, %v2565_v37 }
 0x879   : > { %v5425_v55 = vpop.eup %3781  ;;  %v2614_v35 = vmul.f32 1.442695, %v2585_v57 }
 0x87a   : > { %v2647_v56 = vsel %vm402_vm0, %v5425_v55, 0.0 }
 0x87b   : > { %3783 = vpow2.f32 %v2614_v35  ;;  %2648 = vadd.xlane.f32.xlu2 %v2647_v56 }
 0x87c   : > { %3785 = vpow2.f32 %v2610_v41 }
 0x87d   : > { %2808 = vrot.lane.b32.xlu0 %v4338_v4, %s4056_s16  ;;  %3787 = vrcp.f32 %v2625_v2 }
 0x87e   : > { %v2556_v50 = vpop.xlane.xlu0 %2555 }
 0x87f   : > { %v2582_v25 = vsub.f32 %v5366_v34, %v2556_v50 }
 0x881   : > { %v5432_v58 = vpop.eup %3783  ;;  %v2608_v10 = vmul.f32 1.442695, %v2582_v25 }
 0x882   : > { %v2659_v16 = vsel %vm402_vm0, %v5432_v58, 0.0  ;;  %v5436_v61 = vpop.eup %3785 }
 0x883   : > { %3789 = vpow2.f32 %v2608_v10  ;;  %2660 = vadd.xlane.f32.xlu1 %v2659_v16  ;;  %v3788_v27 = vpop.eup %3787  ;;  %v2653_v43 = vsel %vm402_vm0, %v5436_v61, 0.0 }
 0x884   : > { %v2685_v4 = vmul.f32 %v3788_v27, %v5341_v5  ;;  %v2634_v22 = vpop.xlane.xlu2 %2633  ;;  %v2584_v5 = vsub.f32 %v5348_v59, %v2562_v45 }
 0x886   : > { %v2622_v54 = vpop.xlane.xlu0 %2621  ;;  %v2701_v46 = vpack.c.bf16 %v2685_v4, %v2685_v4  ;;  %v2612_v57 = vmul.f32 1.442695, %v2584_v5  ;;  %v1662_v5 = vpack.c.bf16 %v4956_v8, %v4956_v8 }
 0x887   : > { %3791 = vrcp.f32 %v2622_v54 }
 0x888   : > { %v2721_v24 = vunpack.c.l.b16 %v2701_v46  ;;  %v2271_v46 = vpack.c.bf16 %v5261_v15, %v5261_v15 }
 0x889   : > { %v5438_v60 = vpop.eup %3789 }
 0x88a   : > { %v2650_v34 = vsel %vm402_vm0, %v5438_v60, 0.0 }
 0x88b   : > { %2651 = vadd.xlane.f32.xlu2 %v2650_v34  ;;  %2654 = vadd.xlane.f32.xlu1 %v2653_v43 }
 0x88d   : > { %v3792_v13 = vpop.eup %3791 }
 0x88e   : > { %v2684_v19 = vmul.f32 %v3792_v13, %v5371_v9  ;;  %v2637_v29 = vpop.xlane.xlu0 %2636 }
 0x890   : > { %v2700_v48 = vpack.c.bf16 %v2684_v19, %v2684_v19 }
 0x892   : > { %v2720_v38 = vunpack.c.l.b16 %v2700_v48 }
 0x894   : > { %v2724_v62 = vpack.c.b16 %v2721_v24, %v2720_v38  ;;  %v2272_v38 = vpack.c.bf16 %v5264_v49, %v5264_v49  ;;  %v1664_v49 = vpack.c.bf16 %v4960_v32, %v4960_v32 }
 0x896   : > { %v2628_v31 = vpop.xlane.xlu0 %2627  ;;  %v5447_v37 = vpop.xlane.xlu2 %2639  ;;  %3381 = vmatmul.msk.bf16.vlgmr.msrb.gmra.mxu0 %vm402_vm0, %v2724_v62 }
 0x897   : > { %3793 = vrcp.f32 %v2628_v31 }
 0x898   : > { %3795 = vpow2.f32 %v2612_v57 }
 0x89d   : > { %v3794_v56 = vpop.eup %3793 }
 0x89e   : > { %v2568_v30 = vpop.xlane.xlu2 %2567  ;;  %v2631_v35 = vpop.xlane.xlu0 %2630  ;;  %v2686_v9 = vmul.f32 %v3794_v56, %v5385_v36  ;;  %v1663_v36 = vpack.c.bf16 %v4958_v11, %v4958_v11  ;;  %v5811_v56 = vld [vmem:[#allocation21_spill] sm:$0xff] }
 0x89f   : > { %3797 = vrcp.f32 %v2631_v35  ;;  %v5453_v41 = vpop.eup %3795  ;;  %v2586_v15 = vsub.f32 %v5395_v33, %v2568_v30 }
 0x8a0   : > { %3799 = vrcp.f32 %v2637_v29  ;;  %v2656_v50 = vsel %vm402_vm0, %v5453_v41, 0.0  ;;  %v2702_v10 = vpack.c.bf16 %v2686_v9, %v2686_v9  ;;  %v1665_v9 = vpack.c.bf16 %v5811_v56, %v5811_v56 }
 0x8a1   : > { %3801 = vrcp.f32 %v2634_v22  ;;  %v2616_v62 = vmul.f32 1.442695, %v2586_v15 }
 0x8a3   : > { %2849 = vrot.lane.b32.xlu2 %v5790_v17, %s4056_s16 }
 0x8a4   : > { %2851 = vrot.lane.b32.xlu1 %v4336_v3, %s4056_s16  ;;  %v2722_v3 = vunpack.c.l.b16 %v2702_v10  ;;  %v2275_v10 = vpack.c.bf16 %v5285_v21, %v5285_v21  ;;  %s3143_s16 = scalar_lea.sflag [#allocation5], %s4214_s19 }
 0x8a5   : > { %v3798_v59 = vpop.eup %3797 }
 0x8a6   : > { %v2571_v45 = vpop.xlane.xlu2 %2570  ;;  %v2687_v25 = vmul.f32 %v3798_v59, %v5398_v23  ;;  %v3800_v17 = vpop.eup %3799 }
 0x8a7   : > { %v2587_v2 = vsub.f32 %v5405_v44, %v2571_v45  ;;  %2657 = vadd.xlane.f32.xlu0 %v2656_v50  ;;  %v3802_v27 = vpop.eup %3801  ;;  %v2689_v4 = vmul.f32 %v3800_v17, %v5381_v7  ;;  %v2768_v7 = vpop.permute.xlu1 %2767 }
 0x8a8   : > { %v2703_v54 = vpack.c.bf16 %v2687_v25, %v2687_v25  ;;  %v2688_v23 = vmul.f32 %v3802_v27, %v5373_v26 }
 0x8a9   : > { %v2618_v16 = vmul.f32 1.442695, %v2587_v2  ;;  %v2705_v13 = vpack.c.bf16 %v2689_v4, %v2689_v4 }
 0x8aa   : > { %v2723_v44 = vunpack.c.l.b16 %v2703_v54  ;;  %v2704_v22 = vpack.c.bf16 %v2688_v23, %v2688_v23 }
 0x8ab   : > { %3803 = vpow2.f32 %v2618_v16  ;;  %1696 = vrot.lane.b32.xlu2 %v1663_v36, %s4057_s20  ;;  %v2762_v26 = vunpack.c.l.b16 %v2705_v13 }
 0x8ac   : > { %v2725_v34 = vpack.c.b16 %v2723_v44, %v2722_v3  ;;  %v2761_v48 = vunpack.c.l.b16 %v2704_v22  ;;  %3805 = vpow2.f32 %v2616_v62 }
 0x8ad   : > { %3807 = vrcp.f32 %v5447_v37 }
 0x8ae   : > { %v2811_v43 = vpop.permute.xlu2 %2810  ;;  %3382 = vmatmul.msk.bf16.gmra.mxu0 %vm402_vm0, %v2725_v34  ;;  %v2765_v24 = vpack.c.b16 %v2762_v26, %v2761_v48 }
 0x8af   : > { %2826 = vmatpush.bf16.msrb.mxu2 %v2811_v43  ;;  %v2646_v2 = vpop.xlane.xlu1 %2645 }
 0x8b1   : > { %v5467_v11 = vpop.eup %3803  ;;  %v2770_v19 = vpop.permute.xlu0 %2769 }
 0x8b2   : > { %v2665_v29 = vsel %vm402_vm0, %v5467_v11, 0.0  ;;  %2785 = vmatpush.bf16.msrb.mxu1 %v2770_v19  ;;  %v5482_v31 = vpop.eup %3805 }
 0x8b3   : > { %2303 = vrot.lane.b32.xlu2 %v2271_v46, %s4058_s27  ;;  %2666 = vadd.xlane.f32.xlu0 %v2665_v29  ;;  %v2662_v57 = vsel %vm402_vm0, %v5482_v31, 0.0  ;;  %v3808_v30 = vpop.eup %3807 }
 0x8b4   : > { %v2690_v8 = vmul.f32 %v3808_v30, %v5388_v1 }
 0x8b6   : > { %2786 = vmatpush.bf16.msrb.mxu1 %v2768_v7  ;;  %v2706_v59 = vpack.c.bf16 %v2690_v8, %v2690_v8 }
 0x8b8   : > { %v2763_v32 = vunpack.c.l.b16 %v2706_v59  ;;  %v2273_v59 = vpack.c.bf16 %v5266_v39, %v5266_v39 }
 0x8b9   : > { %3383 = vmatmul.msk.bf16.vlgmr.msrb.gmra.mxu1 %vm402_vm0, %v2765_v24 }
 0x8bb   : > { %2305 = vrot.lane.b32.xlu2 %v2272_v38, %s4058_s27 }
 0x8c7   : > { %1694 = vrot.lane.b32.xlu0 %v1662_v5, %s4057_s20 }
 0x8ce   : > { %2663 = vadd.xlane.f32.xlu1 %v2662_v57 }
 0x8cf   : > { %1698 = vrot.lane.b32.xlu0 %v1664_v49, %s4057_s20  ;;  %v2274_v49 = vpack.c.bf16 %v5269_v63, %v5269_v63 }
 0x8dc   : > { %v2643_v33 = vpop.xlane.xlu0 %2642 }
 0x8dd   : > { %3809 = vrcp.f32 %v2643_v33 }
 0x8de   : > { %3811 = vrcp.f32 %v2646_v2 }
 0x8e3   : > { %v3810_v35 = vpop.eup %3809 }
 0x8e4   : > { %v2691_v45 = vmul.f32 %v3810_v35, %v5418_v47  ;;  %v3812_v17 = vpop.eup %3811 }
 0x8e5   : > { %v2692_v47 = vmul.f32 %v3812_v17, %v5409_v14 }
 0x8e6   : > { %v2707_v50 = vpack.c.bf16 %v2691_v45, %v2691_v45 }
 0x8e7   : > { %1700 = vrot.lane.b32.xlu1 %v1665_v9, %s4057_s20  ;;  %v2708_v54 = vpack.c.bf16 %v2692_v47, %v2692_v47 }
 0x8e8   : > { %v2764_v25 = vunpack.c.l.b16 %v2707_v50 }
 0x8e9   : > { %v2802_v4 = vunpack.c.l.b16 %v2708_v54 }
 0x8ea   : > { %v2766_v37 = vpack.c.b16 %v2764_v25, %v2763_v32 }
 0x8ec   : > { %3384 = vmatmul.msk.bf16.gmra.mxu1 %vm402_vm0, %v2766_v37 }
 0x8ee   : > { %v2649_v1 = vpop.xlane.xlu2 %2648 }
 0x8ef   : > { %3813 = vrcp.f32 %v2649_v1  ;;  %2311 = vrot.lane.b32.xlu1 %v2275_v10, %s4058_s27  ;;  %v2809_v36 = vpop.permute.xlu0 %2808  ;;  %v5812_v10 = vld [vmem:[#allocation17_spill] sm:$0xff] }
 0x8f0   : > { %2827 = vmatpush.bf16.msrb.mxu2 %v2809_v36  ;;  %v5813_v36 = vld [vmem:[#allocation20_spill] sm:$0xff] }
 0x8f1   : > { %v1667_v47 = vpack.c.bf16 %v5813_v36, %v5813_v36 }
 0x8f5   : > { %v3814_v16 = vpop.eup %3813 }
 0x8f6   : > { %v2693_v27 = vmul.f32 %v3814_v16, %v5425_v55  ;;  %v2661_v3 = vpop.xlane.xlu1 %2660  ;;  %v2276_v16 = vpack.c.bf16 %v5288_v42, %v5288_v42 }
 0x8f8   : > { %v2709_v44 = vpack.c.bf16 %v2693_v27, %v2693_v27 }
 0x8fa   : > { %v2803_v34 = vunpack.c.l.b16 %v2709_v44 }
 0x8fc   : > { %v2806_v21 = vpack.c.b16 %v2803_v34, %v2802_v4  ;;  %v5814_v34 = vld [vmem:[#allocation22_spill] sm:$0xff] }
 0x8fe   : > { %v2652_v23 = vpop.xlane.xlu2 %2651  ;;  %3385 = vmatmul.msk.bf16.vlgmr.msrb.gmra.mxu2 %vm402_vm0, %v2806_v21  ;;  %v2655_v43 = vpop.xlane.xlu1 %2654  ;;  %v1668_v21 = vpack.c.bf16 %v5814_v34, %v5814_v34 }
 0x8ff   : > { %3815 = vrcp.f32 %v2652_v23 }
 0x900   : > { %3817 = vrcp.f32 %v2655_v43 }
 0x901   : > { %3819 = vrcp.f32 %v2661_v3 }
 0x905   : > { %v3816_v13 = vpop.eup %3815 }
 0x906   : > { %v3818_v46 = vpop.eup %3817  ;;  %v2694_v22 = vmul.f32 %v3816_v13, %v5438_v60  ;;  %v2850_v14 = vpop.permute.xlu2 %2849  ;;  %v2277_v13 = vpack.c.bf16 %v5291_v0, %v5291_v0  ;;  %v5816_v0 = vld [vmem:[#allocation23_spill] sm:$0xff] }
 0x907   : > { %v2695_v19 = vmul.f32 %v3818_v46, %v5436_v61  ;;  %v3820_v57 = vpop.eup %3819 }
 0x908   : > { %v2710_v29 = vpack.c.bf16 %v2694_v22, %v2694_v22  ;;  %v2697_v8 = vmul.f32 %v3820_v57, %v5432_v58  ;;  %v5818_v57 = vld [vmem:[#allocation24_spill] sm:$0xff] }
 0x909   : > { %v2711_v55 = vpack.c.bf16 %v2695_v19, %v2695_v19  ;;  %v5815_v19 = vld [vmem:[#allocation18_spill] sm:$0xff] }
 0x90a   : > { %v2804_v26 = vunpack.c.l.b16 %v2710_v29  ;;  %v2713_v56 = vpack.c.bf16 %v2697_v8, %v2697_v8  ;;  %v1669_v29 = vpack.c.bf16 %v5815_v19, %v5815_v19 }
 0x90b   : > { %v2805_v7 = vunpack.c.l.b16 %v2711_v55 }
 0x90c   : > { %v2844_v45 = vunpack.c.l.b16 %v2713_v56  ;;  %v2284_v56 = vpack.c.bf16 %v5337_v20, %v5337_v20 }
 0x90d   : > { %v2807_v48 = vpack.c.b16 %v2805_v7, %v2804_v26 }
 0x90e   : > { %v1697_v24 = vpop.permute.xlu2 %1696 }
 0x90f   : > { %1744 = vst.msk [vmem:[#allocation2 + $0x4] sm:$0xf] %vm1742_vm3, %v1697_v24  ;;  %3386 = vmatmul.msk.bf16.gmra.mxu2 %vm402_vm0, %v2807_v48  ;;  %v5817_v24 = vld [vmem:[#allocation26_spill] sm:$0xff] }
 0x913   : > { %v2747_v38 = vpop.f32.mrf.mxu0 }
 0x914   : > { %v2880_v15 = vpack.c.bf16 %v2747_v38, %v2747_v38  ;;  %v1672_v38 = vpack.c.bf16 %v5817_v24, %v5817_v24 }
 0x916   : > { %v2304_v62 = vpop.permute.xlu2 %2303  ;;  %2912 = vrot.lane.b32.xlu0 %v2880_v15, %s4059_s8  ;;  %v2852_v60 = vpop.permute.xlu1 %2851 }
 0x917   : > { %2867 = vmatpush.bf16.msrb.mxu3 %v2852_v60 }
 0x91a   : > { %v2658_v61 = vpop.xlane.xlu0 %2657 }
 0x91b   : > { %v2749_v5 = vpop.f32.mrf.mxu0  ;;  %2868 = vmatpush.bf16.msrb.mxu3 %v2850_v14  ;;  %3821 = vrcp.f32 %v2658_v61  ;;  %v2282_v61 = vpack.c.bf16 %v5319_v12, %v5319_v12 }
 0x91c   : > { %v2881_v33 = vpack.c.bf16 %v2749_v5, %v2749_v5  ;;  %v3463_v5 = vld [vmem:[#allocation8] sm:$0xff] }
 0x91e   : > { %v2306_v30 = vpop.permute.xlu2 %2305  ;;  %2309 = vrot.lane.b32.xlu0 %v2274_v49, %s4058_s27  ;;  %2914 = vrot.lane.b32.xlu2 %v2881_v33, %s4059_s8  ;;  %v1671_v49 = vpack.c.bf16 %v5818_v57, %v5818_v57 }
 0x91f   : > { %2353 = vst.msk [vmem:[#allocation2 + $0x4] sm:$0xf] %vm2351_vm4, %v2306_v30  ;;  %v5819_v30 = vld [vmem:[#allocation16_spill] sm:$0xff] }
 0x920   : > { %v1674_v8 = vpack.c.bf16 %v5819_v30, %v5819_v30 }
 0x921   : > { %v3822_v35 = vpop.eup %3821 }
 0x922   : > { %v2696_v9 = vmul.f32 %v3822_v35, %v5453_v41  ;;  %v1666_v41 = vpack.c.bf16 %v5812_v10, %v5812_v10  ;;  %v2279_v35 = vpack.c.bf16 %v5296_v40, %v5296_v40 }
 0x924   : > { %v2712_v63 = vpack.c.bf16 %v2696_v9, %v2696_v9 }
 0x926   : > { %2307 = vrot.lane.b32.xlu2 %v2273_v59, %s4058_s27  ;;  %v2843_v2 = vunpack.c.l.b16 %v2712_v63  ;;  %v2667_v58 = vpop.xlane.xlu0 %2666 }
 0x927   : > { %3823 = vrcp.f32 %v2667_v58 }
 0x928   : > { %v2847_v50 = vpack.c.b16 %v2844_v45, %v2843_v2  ;;  %v5820_v45 = vld [vmem:[#allocation25_spill] sm:$0xff] }
 0x929   : > { %v1676_v2 = vpack.c.bf16 %v5820_v45, %v5820_v45 }
 0x92a   : > { %3387 = vmatmul.msk.bf16.vlgmr.msrb.gmra.mxu3 %vm402_vm0, %v2847_v50 }
 0x92b   : > { %v2752_v32 = vpop.f32.mrf.mxu0 }
 0x92c   : > { %v2882_v25 = vpack.c.bf16 %v2752_v32, %v2752_v32  ;;  %v5821_v32 = vld [vmem:[#allocation28_spill] sm:$0xff] }
 0x92d   : > { %v3824_v44 = vpop.eup %3823 }
 0x92e   : > { %2916 = vrot.lane.b32.xlu2 %v2882_v25, %s4059_s8  ;;  %v2699_v23 = vmul.f32 %v3824_v44, %v5467_v11  ;;  %v2278_v11 = vpack.c.bf16 %v5293_v28, %v5293_v28  ;;  %v2280_v28 = vpack.c.bf16 %v5302_v6, %v5302_v6  ;;  %v1673_v25 = vpack.c.bf16 %v5821_v32, %v5821_v32 }
 0x92f   : > { %v2283_v44 = vpack.c.bf16 %v5335_v53, %v5335_v53 }
 0x930   : > { %v2715_v46 = vpack.c.bf16 %v2699_v23, %v2699_v23 }
 0x932   : > { %v2846_v55 = vunpack.c.l.b16 %v2715_v46 }
 0x933   : > { %v2754_v37 = vpop.f32.mrf.mxu0 }
 0x934   : > { %v2883_v1 = vpack.c.bf16 %v2754_v37, %v2754_v37  ;;  %v2286_v37 = vpack.c.bf16 %v5345_v52, %v5345_v52 }
 0x936   : > { %1702 = vrot.lane.b32.xlu2 %v1666_v41, %s4057_s20  ;;  %2918 = vrot.lane.b32.xlu0 %v2883_v1, %s4059_s8  ;;  %v2788_v39 = vpop.f32.mrf.mxu1 }
 0x937   : > { %v2884_v42 = vpack.c.bf16 %v2788_v39, %v2788_v39  ;;  %v2281_v39 = vpack.c.bf16 %v5309_v18, %v5309_v18 }
 0x939   : > { %v1695_v17 = vpop.permute.xlu0 %1694 }
 0x93a   : > { %1743 = vst.msk [vmem:[#allocation2] sm:$0xf] %vm1742_vm3, %v1695_v17 }
 0x93b   : > { %2352 = vst.msk [vmem:[#allocation2] sm:$0xf] %vm2351_vm4, %v2304_v62  ;;  %v3464_v62 = vld [vmem:[#allocation8 + $0x8] sm:$0xff] }
 0x93c   : > { %3083 = vmatpush.bf16.msra.mxu0 %v3464_v62 }
 0x93e   : > { %2313 = vrot.lane.b32.xlu2 %v2276_v16, %s4058_s27  ;;  %1704 = vrot.lane.b32.xlu0 %v1667_v47, %s4057_s20  ;;  %v2790_v54 = vpop.f32.mrf.mxu1 }
 0x93f   : > { %v2885_v27 = vpack.c.bf16 %v2790_v54, %v2790_v54  ;;  %v5822_v54 = vld [vmem:[#allocation19_spill] sm:$0xff] }
 0x940   : > { %3084 = vmatpush.bf16.msra.mxu0 %v3463_v5 }
 0x941   : > { %v2664_v3 = vpop.xlane.xlu1 %2663  ;;  %v1699_v4 = vpop.permute.xlu0 %1698  ;;  %2922 = vrot.lane.b32.xlu1 %v2885_v27, %s4059_s8  ;;  %v1675_v27 = vpack.c.bf16 %v5822_v54, %v5822_v54 }
 0x942   : > { %3825 = vrcp.f32 %v2664_v3  ;;  %1745 = vst.msk [vmem:[#allocation2 + $0x8] sm:$0xf] %vm1742_vm3, %v1699_v4 }
 0x946   : > { %1706 = vrot.lane.b32.xlu2 %v1668_v21, %s4057_s20  ;;  %2920 = vrot.lane.b32.xlu0 %v2884_v42, %s4059_s8 }
 0x948   : > { %v3826_v43 = vpop.eup %3825 }
 0x949   : > { %v2698_v22 = vmul.f32 %v3826_v43, %v5482_v31  ;;  %2315 = vrot.lane.b32.xlu1 %v2277_v13, %s4058_s27  ;;  %v1670_v31 = vpack.c.bf16 %v5816_v0, %v5816_v0 }
 0x94b   : > { %v2714_v14 = vpack.c.bf16 %v2698_v22, %v2698_v22  ;;  %v5823_v22 = vld [vmem:[#allocation27_spill] sm:$0xff] }
 0x94d   : > { %v2845_v26 = vunpack.c.l.b16 %v2714_v14  ;;  %v1677_v14 = vpack.c.bf16 %v5823_v22, %v5823_v22 }
 0x94e   : > { %2317 = vrot.lane.b32.xlu2 %v2278_v11, %s4058_s27  ;;  %1708 = vrot.lane.b32.xlu0 %v1669_v29, %s4057_s20 }
 0x94f   : > { %v2848_v7 = vpack.c.b16 %v2846_v55, %v2845_v26  ;;  %v2285_v26 = vpack.c.bf16 %v5339_v51, %v5339_v51 }
 0x951   : > { %3388 = vmatmul.msk.bf16.gmra.mxu3 %vm402_vm0, %v2848_v7 }
 0x956   : > { %1710 = vrot.lane.b32.xlu2 %v1670_v31, %s4057_s20 }
 0x959   : > { %v1701_v48 = vpop.permute.xlu1 %1700 }
 0x95a   : > { %1746 = vst.msk [vmem:[#allocation2 + $0xc] sm:$0xf] %vm1742_vm3, %v1701_v48 }
 0x95e   : > { %2321 = vrot.lane.b32.xlu2 %v2280_v28, %s4058_s27 }
 0x961   : > { %v2312_v17 = vpop.permute.xlu1 %2311 }
 0x966   : > { %1714 = vrot.lane.b32.xlu2 %v1672_v38, %s4057_s20 }
 0x969   : > { %v2793_v15 = vpop.f32.mrf.mxu1 }
 0x96a   : > { %v2886_v60 = vpack.c.bf16 %v2793_v15, %v2793_v15 }
 0x96c   : > { %2924 = vrot.lane.b32.xlu0 %v2886_v60, %s4059_s8 }
 0x96e   : > { %2325 = vrot.lane.b32.xlu2 %v2282_v61, %s4058_s27 }
 0x971   : > { %v2795_v6 = vpop.f32.mrf.mxu1 }
 0x972   : > { %v2887_v33 = vpack.c.bf16 %v2795_v6, %v2795_v6 }
 0x974   : > { %1712 = vrot.lane.b32.xlu0 %v1671_v49, %s4057_s20  ;;  %2926 = vrot.lane.b32.xlu1 %v2887_v33, %s4059_s8 }
 0x976   : > { %1718 = vrot.lane.b32.xlu2 %v1674_v8, %s4057_s20 }
 0x978   : > { %v2915_v12 = vpop.permute.xlu2 %2914 }
 0x979   : > { %2962 = vst.msk [vmem:[#allocation2 + $0x4] sm:$0xf] %vm2960_vm5, %v2915_v12 }
 0x97c   : > { %2319 = vrot.lane.b32.xlu1 %v2279_v35, %s4058_s27 }
 0x97e   : > { %2329 = vrot.lane.b32.xlu2 %v2284_v56, %s4058_s27 }
 0x980   : > { %v2308_v9 = vpop.permute.xlu2 %2307 }
 0x981   : > { %2354 = vst.msk [vmem:[#allocation2 + $0x8] sm:$0xf] %vm2351_vm4, %v2308_v9  ;;  %v2829_v59 = vpop.f32.mrf.mxu2  ;;  %v5648_v9 = vld [vmem:[%s5753_s4] ss:$0 sm:$0xff] }
 0x982   : > { %v2888_v63 = vpack.c.bf16 %v2829_v59, %v2829_v59 }
 0x984   : > { %2928 = vrot.lane.b32.xlu0 %v2888_v63, %s4059_s8 }
 0x986   : > { %1722 = vrot.lane.b32.xlu2 %v1676_v2, %s4057_s20 }
 0x988   : > { %v2913_v40 = vpop.permute.xlu0 %2912  ;;  %v2917_v20 = vpop.permute.xlu2 %2916 }
 0x989   : > { %2961 = vst.msk [vmem:[#allocation2] sm:$0xf] %vm2960_vm5, %v2913_v40  ;;  %v2831_v50 = vpop.f32.mrf.mxu2 }
 0x98a   : > { %2963 = vst.msk [vmem:[#allocation2 + $0x8] sm:$0xf] %vm2960_vm5, %v2917_v20  ;;  %v2889_v58 = vpack.c.bf16 %v2831_v50, %v2831_v50 }
 0x98c   : > { %1716 = vrot.lane.b32.xlu0 %v1673_v25, %s4057_s20  ;;  %2930 = vrot.lane.b32.xlu1 %v2889_v58, %s4059_s8 }
 0x98e   : > { %2333 = vrot.lane.b32.xlu2 %v2286_v37, %s4058_s27 }
 0x990   : > { %v2310_v10 = vpop.permute.xlu0 %2309  ;;  %v3455_v41 = vld [vmem:[#allocation2] sm:$0xff]  ;;  %v1703_v1 = vpop.permute.xlu2 %1702 }
 0x991   : > { %2355 = vst.msk [vmem:[#allocation2 + $0xc] sm:$0xf] %vm2351_vm4, %v2310_v10  ;;  %3429 = vmatmul.msk.bf16.vlgmr.msra.gmra.mxu0 %vm402_vm0, %v3455_v41 }
 0x992   : > { %1747 = vst.msk [vmem:[#allocation2 + $0x10] sm:$0xf] %vm1742_vm3, %v1703_v1  ;;  %v2834_v36 = vpop.f32.mrf.mxu2 }
 0x993   : > { %2356 = vst.msk [vmem:[#allocation2 + $0x10] sm:$0xf] %vm2351_vm4, %v2312_v17  ;;  %v2890_v47 = vpack.c.bf16 %v2834_v36, %v2834_v36 }
 0x994   : > { %2323 = vrot.lane.b32.xlu1 %v2281_v39, %s4058_s27 }
 0x995   : > { %2932 = vrot.lane.b32.xlu0 %v2890_v47, %s4059_s8 }
 0x998   : > { %v2314_v52 = vpop.permute.xlu2 %2313 }
 0x99a   : > { %v2836_v16 = vpop.f32.mrf.mxu2 }
 0x99b   : > { %v2891_v3 = vpack.c.bf16 %v2836_v16, %v2836_v16 }
 0x99d   : > { %1720 = vrot.lane.b32.xlu0 %v1675_v27, %s4057_s20  ;;  %2934 = vrot.lane.b32.xlu1 %v2891_v3, %s4059_s8 }
 0x9a0   : > { %v1707_v18 = vpop.permute.xlu2 %1706 }
 0x9a1   : > { %1749 = vst.msk [vmem:[#allocation2 + $0x18] sm:$0xf] %vm1742_vm3, %v1707_v18 }
 0x9a5   : > { %2327 = vrot.lane.b32.xlu1 %v2283_v44, %s4058_s27 }
 0x9a8   : > { %v2318_v4 = vpop.permute.xlu2 %2317  ;;  %v2919_v34 = vpop.permute.xlu0 %2918 }
 0x9a9   : > { %2964 = vst.msk [vmem:[#allocation2 + $0xc] sm:$0xf] %vm2960_vm5, %v2919_v34 }
 0x9ad   : > { %v2870_v21 = vpop.f32.mrf.mxu3 }
 0x9ae   : > { %v2892_v23 = vpack.c.bf16 %v2870_v21, %v2870_v21 }
 0x9b0   : > { %v1711_v42 = vpop.permute.xlu2 %1710  ;;  %v1705_v43 = vpop.permute.xlu0 %1704  ;;  %2936 = vrot.lane.b32.xlu0 %v2892_v23, %s4059_s8  ;;  %v3456_v13 = vld [vmem:[#allocation2 + $0x8] sm:$0xff] }
 0x9b1   : > { %1751 = vst.msk [vmem:[#allocation2 + $0x20] sm:$0xf] %vm1742_vm3, %v1711_v42  ;;  %3430 = vmatmul.msk.bf16.gmra.mxu0 %vm402_vm0, %v3456_v13 }
 0x9b2   : > { %1748 = vst.msk [vmem:[#allocation2 + $0x14] sm:$0xf] %vm1742_vm3, %v1705_v43 }
 0x9b3   : > { %2357 = vst.msk [vmem:[#allocation2 + $0x14] sm:$0xf] %vm2351_vm4, %v2314_v52  ;;  %v2923_v53 = vpop.permute.xlu1 %2922 }
 0x9b4   : > { %2966 = vst.msk [vmem:[#allocation2 + $0x14] sm:$0xf] %vm2960_vm5, %v2923_v53 }
 0x9b5   : > { %v2872_v46 = vpop.f32.mrf.mxu3 }
 0x9b6   : > { %v2893_v19 = vpack.c.bf16 %v2872_v46, %v2872_v46 }
 0x9b8   : > { %v2322_v29 = vpop.permute.xlu2 %2321  ;;  %v2921_v11 = vpop.permute.xlu0 %2920  ;;  %1724 = vrot.lane.b32.xlu0 %v1677_v14, %s4057_s20  ;;  %2938 = vrot.lane.b32.xlu1 %v2893_v19, %s4059_s8 }
 0x9b9   : > { %2965 = vst.msk [vmem:[#allocation2 + $0x10] sm:$0xf] %vm2960_vm5, %v2921_v11 }
 0x9bb   : > { %v2316_v55 = vpop.permute.xlu1 %2315 }
 0x9bc   : > { %2358 = vst.msk [vmem:[#allocation2 + $0x18] sm:$0xf] %vm2351_vm4, %v2316_v55 }
 0x9c0   : > { %v1715_v7 = vpop.permute.xlu2 %1714  ;;  %v1709_v0 = vpop.permute.xlu0 %1708  ;;  %2331 = vrot.lane.b32.xlu1 %v2285_v26, %s4058_s27  ;;  %v3457_v31 = vld [vmem:[#allocation2 + $0x10] sm:$0xff]  ;;  %s3979_s27 = scalar_lea.hbm %s3978_s25, 128 }
 0x9c1   : > { %1753 = vst.msk [vmem:[#allocation2 + $0x28] sm:$0xf] %vm1742_vm3, %v1715_v7  ;;  %3431 = vmatmul.msk.bf16.gmra.mxu0 %vm402_vm0, %v3457_v31  ;;  %p3980_p1 = scmp.ne.s32.totalorder %s3978_s25, %s3979_s27  ;;  %p3985_p9 = scmp.lt.s32.totalorder %s3983_s9, %s3979_s27 }
 0x9c2   : > { %1750 = vst.msk [vmem:[#allocation2 + $0x1c] sm:$0xf] %vm1742_vm3, %v1709_v0 }
 0x9c3   : > { %2359 = vst.msk [vmem:[#allocation2 + $0x1c] sm:$0xf] %vm2351_vm4, %v2318_v4  ;;  %p3981_p4 = pnand %p3980_p1, %p4184_p3  ;;  %p3986_p2 = por %p3985_p9, %p3984_p11 }
 0x9c5   : > { %p3982_p8 = pneg %p3981_p4 }
 0x9c7   : > { %p3987_p10 = pnand %p3986_p2, %p3982_p8 }
 0x9c8   : > { %v2326_v48 = vpop.permute.xlu2 %2325 }
 0x9d0   : > { %v1719_v28 = vpop.permute.xlu2 %1718 }
 0x9d1   : > { %1755 = vst.msk [vmem:[#allocation2 + $0x30] sm:$0xf] %vm1742_vm3, %v1719_v28 }
 0x9d4   : > { %v2875_v24 = vpop.f32.mrf.mxu3 }
 0x9d5   : > { %v2894_v38 = vpack.c.bf16 %v2875_v24, %v2875_v24 }
 0x9d7   : > { %2940 = vrot.lane.b32.xlu0 %v2894_v38, %s4059_s8 }
 0x9d8   : > { %v2330_v51 = vpop.permute.xlu2 %2329 }
 0x9dc   : > { %v2877_v15 = vpop.f32.mrf.mxu3 }
 0x9dd   : > { %v2895_v62 = vpack.c.bf16 %v2877_v15, %v2877_v15 }
 0x9de   : > { %v2925_v60 = vpop.permute.xlu0 %2924 }
 0x9df   : > { %2942 = vrot.lane.b32.xlu1 %v2895_v62, %s4059_s8  ;;  %2967 = vst.msk [vmem:[#allocation2 + $0x18] sm:$0xf] %vm2960_vm5, %v2925_v60 }
 0x9e0   : > { %v1723_v61 = vpop.permute.xlu2 %1722 }
 0x9e1   : > { %1757 = vst.msk [vmem:[#allocation2 + $0x38] sm:$0xf] %vm1742_vm3, %v1723_v61 }
 0x9e6   : > { %v1713_v5 = vpop.permute.xlu0 %1712  ;;  %v2927_v6 = vpop.permute.xlu1 %2926 }
 0x9e7   : > { %1752 = vst.msk [vmem:[#allocation2 + $0x24] sm:$0xf] %vm1742_vm3, %v1713_v5 }
 0x9e8   : > { %2361 = vst.msk [vmem:[#allocation2 + $0x24] sm:$0xf] %vm2351_vm4, %v2322_v29  ;;  %v2334_v10 = vpop.permute.xlu2 %2333 }
 0x9e9   : > { %2968 = vst.msk [vmem:[#allocation2 + $0x1c] sm:$0xf] %vm2960_vm5, %v2927_v6 }
 0x9ee   : > { %v2320_v57 = vpop.permute.xlu1 %2319 }
 0x9ef   : > { %2360 = vst.msk [vmem:[#allocation2 + $0x20] sm:$0xf] %vm2351_vm4, %v2320_v57 }
 0x9f0   : > { %v3458_v49 = vld [vmem:[#allocation2 + $0x18] sm:$0xff] }
 0x9f1   : > { %3432 = vmatmul.msk.bf16.gmra.mxu0 %vm402_vm0, %v3458_v49 }
 0x9f6   : > { %v2929_v33 = vpop.permute.xlu0 %2928 }
 0x9f7   : > { %2969 = vst.msk [vmem:[#allocation2 + $0x20] sm:$0xf] %vm2960_vm5, %v2929_v33 }
 0x9fe   : > { %v1717_v30 = vpop.permute.xlu0 %1716  ;;  %v2931_v8 = vpop.permute.xlu1 %2930 }
 0x9ff   : > { %1754 = vst.msk [vmem:[#allocation2 + $0x2c] sm:$0xf] %vm1742_vm3, %v1717_v30 }
 0xa00   : > { %2363 = vst.msk [vmem:[#allocation2 + $0x2c] sm:$0xf] %vm2351_vm4, %v2326_v48 }
 0xa01   : > { %2970 = vst.msk [vmem:[#allocation2 + $0x24] sm:$0xf] %vm2960_vm5, %v2931_v8 }
 0xa06   : > { %v2324_v12 = vpop.permute.xlu1 %2323 }
 0xa07   : > { %v2933_v35 = vpop.permute.xlu0 %2932  ;;  %2362 = vst.msk [vmem:[#allocation2 + $0x28] sm:$0xf] %vm2351_vm4, %v2324_v12 }
 0xa08   : > { %2971 = vst.msk [vmem:[#allocation2 + $0x28] sm:$0xf] %vm2960_vm5, %v2933_v35  ;;  %v3459_v56 = vld [vmem:[#allocation2 + $0x20] sm:$0xff] }
 0xa09   : > { %3433 = vmatmul.msk.bf16.gmra.mxu0 %vm402_vm0, %v3459_v56 }
 0xa0e   : > { %v3086_v45 = vpop.f32.mrf.mxu0 }
 0xa0f   : > { %v1721_v59 = vpop.permute.xlu0 %1720  ;;  %v2935_v63 = vpop.permute.xlu1 %2934  ;;  %v3087_v2 = vadd.f32 %v5648_v9, %v3086_v45 }
 0xa10   : > { %1756 = vst.msk [vmem:[#allocation2 + $0x34] sm:$0xf] %vm1742_vm3, %v1721_v59 }
 0xa11   : > { %2365 = vst.msk [vmem:[#allocation2 + $0x34] sm:$0xf] %vm2351_vm4, %v2330_v51 }
 0xa12   : > { %2972 = vst.msk [vmem:[#allocation2 + $0x2c] sm:$0xf] %vm2960_vm5, %v2935_v63 }
 0xa13   : > { %3126 = vst.msk [vmem:[%s5654_s13] sm:$0xff] %vm402_vm0, %v3087_v2 }
 0xa16   : > { %v3088_v20 = vpop.f32.mrf.mxu0 }
 0xa17   : > { %v2328_v40 = vpop.permute.xlu1 %2327  ;;  %v3089_v50 = vadd.f32 %v5648_v9, %v3088_v20 }
 0xa18   : > { %2364 = vst.msk [vmem:[#allocation2 + $0x30] sm:$0xf] %vm2351_vm4, %v2328_v40 }
 0xa19   : > { %v3460_v32 = vld [vmem:[#allocation2 + $0x28] sm:$0xff]  ;;  %3127 = vst.msk [vmem:[%s5654_s13 + $0x8] sm:$0xff] %vm402_vm0, %v3089_v50 }
 0xa1a   : > { %3434 = vmatmul.msk.bf16.gmra.mxu0 %vm402_vm0, %v3460_v32 }
 0xa22   : > { %v2937_v25 = vpop.permute.xlu0 %2936 }
 0xa23   : > { %2973 = vst.msk [vmem:[#allocation2 + $0x30] sm:$0xf] %vm2960_vm5, %v2937_v25 }
 0xa2a   : > { %v1725_v58 = vpop.permute.xlu0 %1724  ;;  %v2939_v37 = vpop.permute.xlu1 %2938 }
 0xa2b   : > { %1758 = vst.msk [vmem:[#allocation2 + $0x3c] sm:$0xf] %vm1742_vm3, %v1725_v58 }
 0xa2c   : > { %2367 = vst.msk [vmem:[#allocation2 + $0x3c] sm:$0xf] %vm2351_vm4, %v2334_v10 }
 0xa2d   : > { %2974 = vst.msk [vmem:[#allocation2 + $0x34] sm:$0xf] %vm2960_vm5, %v2939_v37 }
 0xa2e   : > { %v3091_v41 = vpop.f32.mrf.mxu0 }
 0xa2f   : > { %v3092_v1 = vadd.f32 %v5648_v9, %v3091_v41 }
 0xa31   : > { %3128 = vst.msk [vmem:[%s5654_s13 + $0x10] sm:$0xff] %vm402_vm0, %v3092_v1 }
 0xa32   : > { %v2332_v39 = vpop.permute.xlu1 %2331 }
 0xa33   : > { %2366 = vst.msk [vmem:[#allocation2 + $0x38] sm:$0xf] %vm2351_vm4, %v2332_v39 }
 0xa34   : > { %v3461_v17 = vld [vmem:[#allocation2 + $0x30] sm:$0xff] }
 0xa35   : > { %3435 = vmatmul.msk.bf16.gmra.mxu0 %vm402_vm0, %v3461_v17 }
 0xa36   : > { %v3093_v36 = vpop.f32.mrf.mxu0 }
 0xa37   : > { %v3094_v47 = vadd.f32 %v5648_v9, %v3093_v36 }
 0xa39   : > { %3129 = vst.msk [vmem:[%s5654_s13 + $0x18] sm:$0xff] %vm402_vm0, %v3094_v47 }
 0xa3e   : > { %v3096_v52 = vpop.f32.mrf.mxu0 }
 0xa3f   : > { %v3097_v16 = vadd.f32 %v5648_v9, %v3096_v52 }
 0xa41   : > { %3130 = vst.msk [vmem:[%s5654_s13 + $0x20] sm:$0xff] %vm402_vm0, %v3097_v16 }
 0xa46   : > { %v3098_v54 = vpop.f32.mrf.mxu0 }
 0xa47   : > { %v3099_v27 = vadd.f32 %v5648_v9, %v3098_v54 }
 0xa49   : > { %v2941_v3 = vpop.permute.xlu0 %2940  ;;  %3131 = vst.msk [vmem:[%s5654_s13 + $0x28] sm:$0xff] %vm402_vm0, %v3099_v27 }
 0xa4a   : > { %2975 = vst.msk [vmem:[#allocation2 + $0x38] sm:$0xf] %vm2960_vm5, %v2941_v3 }
 0xa51   : > { %v2943_v18 = vpop.permute.xlu1 %2942 }
 0xa52   : > { %2976 = vst.msk [vmem:[#allocation2 + $0x3c] sm:$0xf] %vm2960_vm5, %v2943_v18 }
 0xa59   : > { %v3462_v44 = vld [vmem:[#allocation2 + $0x38] sm:$0xff] }
 0xa5a   : > { %3436 = vmatmul.msk.bf16.gmra.mxu0 %vm402_vm0, %v3462_v44 }
 0xa6e   : > { %v3101_v4 = vpop.f32.mrf.mxu0 }
 0xa6f   : > { %v3102_v34 = vadd.f32 %v5648_v9, %v3101_v4 }
 0xa71   : > { %3132 = vst.msk [vmem:[%s5654_s13 + $0x30] sm:$0xff] %vm402_vm0, %v3102_v34 }
 0xa76   : > { %v3103_v21 = vpop.f32.mrf.mxu0 }
 0xa77   : > { %v3104_v23 = vadd.f32 %v5648_v9, %v3103_v21 }
 0xa79   : > { %3133 = vst.msk [vmem:[%s5654_s13 + $0x38] sm:$0xff] %vm402_vm0, %v3104_v23 }
 0xa86   : > { %v3106_v42 = vpop.f32.mrf.mxu0 }
 0xa87   : > { %v3107_v43 = vadd.f32 %v5648_v9, %v3106_v42 }
 0xa89   : > { %3134 = vst.msk [vmem:[%s5654_s13 + $0x40] sm:$0xff] %vm402_vm0, %v3107_v43 }
 0xa8e   : > { %v3108_v13 = vpop.f32.mrf.mxu0 }
 0xa8f   : > { %v3109_v53 = vadd.f32 %v5648_v9, %v3108_v13 }
 0xa91   : > { %3135 = vst.msk [vmem:[%s5654_s13 + $0x48] sm:$0xff] %vm402_vm0, %v3109_v53 }
 0xa97   : > { %v3111_v46 = vpop.f32.mrf.mxu0 }
 0xa98   : > { %v3112_v22 = vadd.f32 %v5648_v9, %v3111_v46 }
 0xa9a   : > { %3136 = vst.msk [vmem:[%s5654_s13 + $0x50] sm:$0xff] %vm402_vm0, %v3112_v22 }
 0xa9f   : > { %v3113_v14 = vpop.f32.mrf.mxu0 }
 0xaa0   : > { %v3114_v19 = vadd.f32 %v5648_v9, %v3113_v14 }
 0xaa2   : > { %3137 = vst.msk [vmem:[%s5654_s13 + $0x58] sm:$0xff] %vm402_vm0, %v3114_v19 }
 0xab2   : > { %v3116_v29 = vpop.f32.mrf.mxu0 }
 0xab3   : > { %v3117_v11 = vadd.f32 %v5648_v9, %v3116_v29 }
 0xab5   : > { %3138 = vst.msk [vmem:[%s5654_s13 + $0x60] sm:$0xff] %vm402_vm0, %v3117_v11 }
 0xaba   : > { %v3118_v55 = vpop.f32.mrf.mxu0 }
 0xabb   : > { %v3119_v26 = vadd.f32 %v5648_v9, %v3118_v55 }
 0xabd   : > { %3139 = vst.msk [vmem:[%s5654_s13 + $0x68] sm:$0xff] %vm402_vm0, %v3119_v26 }
 0xad7   : > { %v3121_v7 = vpop.f32.mrf.mxu0 }
 0xad8   : > { %v3122_v0 = vadd.f32 %v5648_v9, %v3121_v7 }
 0xada   : > { %3140 = vst.msk [vmem:[%s5654_s13 + $0x70] sm:$0xff] %vm402_vm0, %v3122_v0 }
 0xadf   : > { %v3123_v31 = vpop.f32.mrf.mxu0 }
 0xae0   : > { %v3124_v48 = vadd.f32 %v5648_v9, %v3123_v31 }
 0xae2   : > { %3141 = vst.msk [vmem:[%s5654_s13 + $0x78] sm:$0xff] %vm402_vm0, %v3124_v48 }
 0xae3   : > { %3990 = shalt.err (!%p3987_p10)
}
 0xae4   : > { %s4060_s19 = smov 128  }
 0xae5   : > { %3487 = dma.vmem_to_hbm [thread:$0]  (%p4184_p3), %s3157_s7, 2048, %s3159_s15, %s3143_s16, %s4060_s19, %s4060_s19, %s4057_s20  }
 0xae6 PF: > { %s3173_s13 = sand.u32 1, %s4025_s21   ;;  %p5824_p12 = scmp.ge.s32.totalorder %s4037_s24, 2 }
 0xae7   : > { %s3174_s26 = scalar_lea.sflag [#allocation5], %s3173_s13 }
 0xae8   : > { %p3504_p13 = pnand %p5824_p12, %p4131_p6 }
 0xaea   : > { %p3505_p0 = pneg %p3504_p13 }
 0xaec   : > { %4020 = dma.done.wait (%p3505_p0), %s3174_s26, 2048  }
 0xaed   : > { %4022 = vsyncadd (%p3505_p0), %s3174_s26, 4294965248  ;;  %p21_p5 = scmp.ge.s32.totalorder %s4171_s10, 4   ;;  %s5825_s21 = smov %s4029_s22 }
 0xaee   : > { %s5826_s22 = smov %s4033_s23  ;;  %s5827_s23 = smov %s4180_s17 }
 0xaef   : > { %s5828_s24 = smov %s4171_s10  ;;  %23 = sbr.rel (!%p21_p5) target bundleno = 7 (0x7), region = 101 }
 0xaf4   :  { %3180 = vsyncpa [#allocation4], 1 }
 0xaf5   :  { %3182 = vsyncpa [#allocation4 + $0x1], 1 }
 0xaf6   :  { %3183 = vsyncpa [#allocation7], 1 }
 0xaf7   :  { %3184 = vsyncpa [#allocation10], 1 }
 0xaf8   :  { %3185 = vsyncpa [#allocation5], 1 }
 0xaf9   :  { %3187 = vsyncpa [#allocation5 + $0x1], 1 }

</bundles_post_ra>
